<compile_context>
chip_gen: v7x
topology: tpu7x:2x2x1
jax: 0.10.0
libtpu: 0.0.40
codegen_flags: <defaults>
</compile_context>

<pallas_src>
from functools import partial

import jax
import jax.numpy as jnp
from jax.experimental import pallas as pl
from jax.experimental.pallas import tpu as pltpu

_EPS = 1e-3  # matches nn.BatchNorm2d(eps=0.001) inside the PyTorch Conv block


# --------------------------------------------------------------------------
# Fused kernel: one image per grid step.  Per-image layout is (C, H*W) f32 in
# HBM (a free view of NCHW); compute happens in a (HW, C) bf16 layout.
# --------------------------------------------------------------------------
def asff2_fused_kernel(x1_ref, x2_ref, w1_ref, w2_ref, bc_ref, wld_ref,
                       bd_ref, w3_ref, b3_ref, out_ref, pad_ref, *, H, W, C):
    HW = H * W

    # NCHW -> "NHWC" inside the kernel: f32 XLU transpose, then one downcast.
    # bf16 is the only activation copy that survives (native MXU operand).
    x1 = x1_ref[0].T.astype(jnp.bfloat16)            # (HW, C) bf16
    x2 = x2_ref[0].T.astype(jnp.bfloat16)            # (HW, C) bf16

    # Both 1x1 Conv+BN compress branches in one pre-activation: w1/w2 hold the
    # folded weights in disjoint column blocks [0:8) / [8:16), so the sum
    # below equals the channel-concat of the two branches.  One SiLU.
    pre = (jnp.dot(x1, w1_ref[...], preferred_element_type=jnp.float32)
           + jnp.dot(x2, w2_ref[...], preferred_element_type=jnp.float32)
           + bc_ref[...])                            # (HW, 16) f32
    ab = pre * jax.nn.sigmoid(pre)                   # SiLU, (HW, 16) f32

    # weight_levels 1x1 conv + 2-way softmax folded into a single logit
    # difference: p1 = sigmoid(<ab, w_row0 - w_row1> + (b0 - b1)).
    logit = jnp.sum(ab * wld_ref[...], axis=1, keepdims=True) + bd_ref[...]
    p1 = jax.nn.sigmoid(logit)                       # (HW, 1) f32
    fused = (x1 * p1.astype(jnp.bfloat16)
             + x2 * (1.0 - p1).astype(jnp.bfloat16))  # (HW, C) bf16

    # Zero-padded fused map in VMEM.  Zeroed every step (a few KiB of stores)
    # so the kernel is correct when the 'parallel' grid axis is sharded across
    # v7x's two TensorCores; only the 1-pixel border strictly needs it.
    pad_ref[...] = jnp.zeros_like(pad_ref)
    pad_ref[pl.ds(1, H), pl.ds(1, W), :] = fused.reshape(H, W, C)

    # 3x3 Conv+BN: nine accumulating MXU dots straight from pad_ref slices
    # (no im2col buffer), f32 accumulator.
    acc = jnp.zeros((HW, C), jnp.float32)
    for kh in range(3):
        for kw in range(3):
            patch = pad_ref[pl.ds(kh, H), pl.ds(kw, W), :].reshape(HW, C)
            acc = acc + jnp.dot(patch, w3_ref[kh * 3 + kw],
                                preferred_element_type=jnp.float32)
    y = acc + b3_ref[...]                            # (HW, C) f32
    y = y * jax.nn.sigmoid(y)                        # SiLU
    out_ref[0] = y.T                                 # back to (C, HW) f32


# --------------------------------------------------------------------------
# BN folding helpers (host-side glue, plain JAX)
# --------------------------------------------------------------------------
def _bn_scale_bias(gamma, beta, mean, var):
    scale = gamma / jnp.sqrt(var + _EPS)
    return scale, beta - mean * scale


def fold_compress(p):
    """Both 1x1 Conv+BN branches folded into disjoint column blocks of (C,16)
    bf16 weights, plus the concatenated (1,16) f32 bias."""
    s1, t1 = _bn_scale_bias(*p["bn1"])
    s2, t2 = _bn_scale_bias(*p["bn2"])
    w1 = (p["wl1_w"][:, :, 0, 0] * s1[:, None]).T            # (C, 8)
    w2 = (p["wl2_w"][:, :, 0, 0] * s2[:, None]).T            # (C, 8)
    z = jnp.zeros_like(w1)
    w1p = jnp.concatenate([w1, z], axis=1).astype(jnp.bfloat16)   # (C, 16)
    w2p = jnp.concatenate([z, w2], axis=1).astype(jnp.bfloat16)   # (C, 16)
    bc = jnp.concatenate([t1, t2])[None, :].astype(jnp.float32)   # (1, 16)
    return w1p, w2p, bc


def fold_levels(p):
    """weight_levels 1x1 conv + 2-way softmax folded to a logit difference."""
    w = p["wlv_w"][:, :, 0, 0]                                # (2, 16)
    wld = (w[0] - w[1])[None, :].astype(jnp.float32)          # (1, 16)
    bd = (p["wlv_b"][0] - p["wlv_b"][1]).reshape(1, 1).astype(jnp.float32)
    return wld, bd


def fold_3x3(w_oihw, gamma, beta, mean, var):
    O, I, _, _ = w_oihw.shape
    scale, bias = _bn_scale_bias(gamma, beta, mean, var)
    wf = w_oihw * scale[:, None, None, None]                  # (O, I, 3, 3)
    # tap index = kh*3 + kw; per-tap weight oriented (C_in, C_out).
    wf = jnp.transpose(wf, (2, 3, 1, 0)).reshape(9, I, O)
    return wf.astype(jnp.bfloat16), bias[None, :].astype(jnp.float32)


# --------------------------------------------------------------------------
# ASFF_2 forward (Pallas).  NCHW f32 in, NCHW f32 out.
# --------------------------------------------------------------------------
def asff2_pallas(x1_nchw, x2_nchw, params):
    N, C, H, W = x1_nchw.shape
    HW = H * W
    x1 = x1_nchw.reshape(N, C, HW)      # free view of NCHW — no transpose/cast
    x2 = x2_nchw.reshape(N, C, HW)

    w1p, w2p, bc = fold_compress(params)
    wld, bd = fold_levels(params)
    w3f, b3f = fold_3x3(params["conv3_w"], *params["bn3"])

    out = pl.pallas_call(
        partial(asff2_fused_kernel, H=H, W=W, C=C),
        out_shape=jax.ShapeDtypeStruct((N, C, HW), jnp.float32),
        grid_spec=pltpu.PrefetchScalarGridSpec(
            num_scalar_prefetch=0,
            grid=(N,),
            in_specs=[
                pl.BlockSpec((1, C, HW), lambda n: (n, 0, 0)),
                pl.BlockSpec((1, C, HW), lambda n: (n, 0, 0)),
                pl.BlockSpec((C, 16), lambda n: (0, 0)),
                pl.BlockSpec((C, 16), lambda n: (0, 0)),
                pl.BlockSpec((1, 16), lambda n: (0, 0)),
                pl.BlockSpec((1, 16), lambda n: (0, 0)),
                pl.BlockSpec((1, 1), lambda n: (0, 0)),
                pl.BlockSpec((9, C, C), lambda n: (0, 0, 0)),
                pl.BlockSpec((1, C), lambda n: (0, 0)),
            ],
            out_specs=pl.BlockSpec((1, C, HW), lambda n: (n, 0, 0)),
            scratch_shapes=[
                pltpu.VMEM((H + 2, W + 2, C), jnp.bfloat16),   # padded fused map
            ],
        ),
        compiler_params=pltpu.CompilerParams(
            dimension_semantics=("parallel",),
            vmem_limit_bytes=32 * 1024 * 1024,
        ),
    )(x1, x2, w1p, w2p, bc, wld, bd, w3f, b3f)

    return out.reshape(N, C, H, W)


# --------------------------------------------------------------------------
# Pure-JAX reference (mirrors the PyTorch module, NCHW, explicit BN, f32)
# --------------------------------------------------------------------------
def _conv_bn_silu_ref(x, w, bn, pad):
    gamma, beta, mean, var = bn
    y = jax.lax.conv_general_dilated(
        x, w, (1, 1), pad, dimension_numbers=("NCHW", "OIHW", "NCHW"))
    scale = gamma / jnp.sqrt(var + _EPS)
    y = y * scale[None, :, None, None] + (beta - mean * scale)[None, :, None, None]
    return y * jax.nn.sigmoid(y)


def asff2_reference(x1, x2, p):
    a = _conv_bn_silu_ref(x1, p["wl1_w"], p["bn1"], [(0, 0), (0, 0)])
    b = _conv_bn_silu_ref(x2, p["wl2_w"], p["bn2"], [(0, 0), (0, 0)])
    cat = jnp.concatenate([a, b], axis=1)
    logits = jax.lax.conv_general_dilated(
        cat, p["wlv_w"], (1, 1), [(0, 0), (0, 0)],
        dimension_numbers=("NCHW", "OIHW", "NCHW")) + p["wlv_b"][None, :, None, None]
    w = jax.nn.softmax(logits, axis=1)
    fused = x1 * w[:, 0:1] + x2 * w[:, 1:2]
    return _conv_bn_silu_ref(fused, p["conv3_w"], p["bn3"], [(1, 1), (1, 1)])


# --------------------------------------------------------------------------
if __name__ == "__main__":
    N, C, H, W = 2, 128, 16, 16          # inter_dim = 128, compress_c = 8
    CC = 8

    key = jax.random.PRNGKey(0)
    ks = jax.random.split(key, 16)

    def bn_params(k, ch):
        k1, k2, k3, k4 = jax.random.split(k, 4)
        gamma = jax.random.uniform(k1, (ch,), minval=0.5, maxval=1.5)
        beta = 0.1 * jax.random.normal(k2, (ch,))
        mean = 0.1 * jax.random.normal(k3, (ch,))
        var = jax.random.uniform(k4, (ch,), minval=0.5, maxval=1.5)
        return (gamma, beta, mean, var)

    params = {
        "wl1_w": 0.05 * jax.random.normal(ks[0], (CC, C, 1, 1)),
        "bn1": bn_params(ks[1], CC),
        "wl2_w": 0.05 * jax.random.normal(ks[2], (CC, C, 1, 1)),
        "bn2": bn_params(ks[3], CC),
        "wlv_w": 0.05 * jax.random.normal(ks[4], (2, 2 * CC, 1, 1)),
        "wlv_b": 0.05 * jax.random.normal(ks[5], (2,)),
        "conv3_w": 0.05 * jax.random.normal(ks[6], (C, C, 3, 3)),
        "bn3": bn_params(ks[7], C),
    }

    x1 = jax.random.normal(ks[8], (N, C, H, W), dtype=jnp.float32)
    x2 = jax.random.normal(ks[9], (N, C, H, W), dtype=jnp.float32)

    out = jax.jit(asff2_pallas)(x1, x2, params)
    out = jax.block_until_ready(out)

    ref = jax.block_until_ready(asff2_reference(x1, x2, params))
    assert out.shape == (N, C, H, W)
    assert jnp.allclose(out, ref, atol=5e-2, rtol=5e-2), \
        float(jnp.max(jnp.abs(out - ref)))

    print("KERNEL_OK")
</pallas_src>

<mosaic_0001>
module attributes {stable_mosaic.version = 11 : i64} {
  func.func @asff2_fused_kernel(%arg0: i32, %arg1: memref<1x128x256xf32, #tpu.memory_space<vmem>>, %arg2: memref<1x128x256xf32, #tpu.memory_space<vmem>>, %arg3: memref<128x16xbf16, #tpu.memory_space<vmem>>, %arg4: memref<128x16xbf16, #tpu.memory_space<vmem>>, %arg5: memref<1x16xf32, #tpu.memory_space<vmem>>, %arg6: memref<1x16xf32, #tpu.memory_space<vmem>>, %arg7: memref<1x1xf32, #tpu.memory_space<vmem>>, %arg8: memref<9x128x128xbf16, #tpu.memory_space<vmem>>, %arg9: memref<1x128xf32, #tpu.memory_space<vmem>>, %arg10: memref<1x128x256xf32, #tpu.memory_space<vmem>>, %arg11: memref<18x18x128xbf16, #tpu.memory_space<vmem>>) attributes {dimension_semantics = [#tpu.dimension_semantics<parallel>], iteration_bounds = array<i64: 2>, scalar_prefetch = 0 : i64, scratch_operands = 1 : i64, tpu.core_type = #tpu.core_type<tc>, window_params = [{transform_indices = @transform_0, window_bounds = array<i64: 1, 128, 256>}, {transform_indices = @transform_1, window_bounds = array<i64: 1, 128, 256>}, {pipeline_mode = #tpu.pipeline_mode<synchronous>, transform_indices = @transform_2, window_bounds = array<i64: 128, 16>}, {pipeline_mode = #tpu.pipeline_mode<synchronous>, transform_indices = @transform_3, window_bounds = array<i64: 128, 16>}, {pipeline_mode = #tpu.pipeline_mode<synchronous>, transform_indices = @transform_4, window_bounds = array<i64: 1, 16>}, {pipeline_mode = #tpu.pipeline_mode<synchronous>, transform_indices = @transform_5, window_bounds = array<i64: 1, 16>}, {pipeline_mode = #tpu.pipeline_mode<synchronous>, transform_indices = @transform_6, window_bounds = array<i64: 1, 1>}, {pipeline_mode = #tpu.pipeline_mode<synchronous>, transform_indices = @transform_7, window_bounds = array<i64: 9, 128, 128>}, {pipeline_mode = #tpu.pipeline_mode<synchronous>, transform_indices = @transform_8, window_bounds = array<i64: 1, 128>}, {transform_indices = @transform_9, window_bounds = array<i64: 1, 128, 256>}]} {
    %c0 = arith.constant 0 : index
    %c0_0 = arith.constant 0 : index
    %c0_1 = arith.constant 0 : index
    %0 = vector.load %arg1[%c0, %c0_0, %c0_1] : memref<1x128x256xf32, #tpu.memory_space<vmem>>, vector<1x128x256xf32>
    %1 = vector.shape_cast %0 : vector<1x128x256xf32> to vector<128x256xf32>
    %2 = tpu.transpose %1, [1, 0] : vector<128x256xf32> -> vector<256x128xf32>
    %3 = arith.truncf %2 : vector<256x128xf32> to vector<256x128xbf16>
    %c0_2 = arith.constant 0 : index
    %c0_3 = arith.constant 0 : index
    %c0_4 = arith.constant 0 : index
    %4 = vector.load %arg2[%c0_2, %c0_3, %c0_4] : memref<1x128x256xf32, #tpu.memory_space<vmem>>, vector<1x128x256xf32>
    %5 = vector.shape_cast %4 : vector<1x128x256xf32> to vector<128x256xf32>
    %6 = tpu.transpose %5, [1, 0] : vector<128x256xf32> -> vector<256x128xf32>
    %7 = arith.truncf %6 : vector<256x128xf32> to vector<256x128xbf16>
    %c0_5 = arith.constant 0 : index
    %c0_6 = arith.constant 0 : index
    %8 = vector.load %arg3[%c0_5, %c0_6] : memref<128x16xbf16, #tpu.memory_space<vmem>>, vector<128x16xbf16>
    %cst = arith.constant dense<0.000000e+00> : vector<256x16xf32>
    %9 = tpu.matmul %3, %8, %cst {dimension_numbers = #tpu.dot_dimension_numbers<[1], [0], [0], [1], [0, 0, 1, 1], [], []>} : vector<256x128xbf16>, vector<128x16xbf16>, vector<256x16xf32> -> vector<256x16xf32>
    %c0_7 = arith.constant 0 : index
    %c0_8 = arith.constant 0 : index
    %10 = vector.load %arg4[%c0_7, %c0_8] : memref<128x16xbf16, #tpu.memory_space<vmem>>, vector<128x16xbf16>
    %cst_9 = arith.constant dense<0.000000e+00> : vector<256x16xf32>
    %11 = tpu.matmul %7, %10, %cst_9 {dimension_numbers = #tpu.dot_dimension_numbers<[1], [0], [0], [1], [0, 0, 1, 1], [], []>} : vector<256x128xbf16>, vector<128x16xbf16>, vector<256x16xf32> -> vector<256x16xf32>
    %12 = arith.addf %9, %11 : vector<256x16xf32>
    %c0_10 = arith.constant 0 : index
    %c0_11 = arith.constant 0 : index
    %13 = vector.load %arg5[%c0_10, %c0_11] : memref<1x16xf32, #tpu.memory_space<vmem>>, vector<1x16xf32>
    %14 = vector.broadcast %13 : vector<1x16xf32> to vector<256x16xf32>
    %15 = arith.addf %12, %14 : vector<256x16xf32>
    %16 = arith.negf %15 : vector<256x16xf32>
    %17 = math.exp %16 : vector<256x16xf32>
    %cst_12 = arith.constant 1.000000e+00 : f32
    %18 = vector.broadcast %cst_12 : f32 to vector<256x16xf32>
    %19 = arith.addf %18, %17 : vector<256x16xf32>
    %20 = arith.divf %18, %19 : vector<256x16xf32>
    %21 = arith.mulf %15, %20 : vector<256x16xf32>
    %c0_13 = arith.constant 0 : index
    %c0_14 = arith.constant 0 : index
    %22 = vector.load %arg6[%c0_13, %c0_14] : memref<1x16xf32, #tpu.memory_space<vmem>>, vector<1x16xf32>
    %23 = vector.broadcast %22 : vector<1x16xf32> to vector<256x16xf32>
    %24 = arith.mulf %21, %23 : vector<256x16xf32>
    %cst_15 = arith.constant dense<0.000000e+00> : vector<256xf32>
    %25 = vector.multi_reduction <add>, %24, %cst_15 [1] : vector<256x16xf32> to vector<256xf32>
    %26 = vector.shape_cast %25 : vector<256xf32> to vector<256x1xf32>
    %c0_16 = arith.constant 0 : index
    %c0_17 = arith.constant 0 : index
    %27 = vector.load %arg7[%c0_16, %c0_17] : memref<1x1xf32, #tpu.memory_space<vmem>>, vector<1x1xf32>
    %28 = vector.broadcast %27 : vector<1x1xf32> to vector<256x1xf32>
    %29 = arith.addf %26, %28 : vector<256x1xf32>
    %30 = arith.negf %29 : vector<256x1xf32>
    %31 = math.exp %30 : vector<256x1xf32>
    %cst_18 = arith.constant 1.000000e+00 : f32
    %32 = vector.broadcast %cst_18 : f32 to vector<256x1xf32>
    %33 = arith.addf %32, %31 : vector<256x1xf32>
    %34 = arith.divf %32, %33 : vector<256x1xf32>
    %35 = arith.truncf %34 : vector<256x1xf32> to vector<256x1xbf16>
    %36 = vector.broadcast %35 : vector<256x1xbf16> to vector<256x128xbf16>
    %37 = arith.mulf %3, %36 : vector<256x128xbf16>
    %cst_19 = arith.constant 1.000000e+00 : f32
    %38 = vector.broadcast %cst_19 : f32 to vector<256x1xf32>
    %39 = arith.subf %38, %34 : vector<256x1xf32>
    %40 = arith.truncf %39 : vector<256x1xf32> to vector<256x1xbf16>
    %41 = vector.broadcast %40 : vector<256x1xbf16> to vector<256x128xbf16>
    %42 = arith.mulf %7, %41 : vector<256x128xbf16>
    %43 = arith.addf %37, %42 : vector<256x128xbf16>
    %cst_20 = arith.constant 0.000000e+00 : bf16
    %44 = vector.broadcast %cst_20 : bf16 to vector<18x18x128xbf16>
    %c0_21 = arith.constant 0 : index
    %c0_22 = arith.constant 0 : index
    %c0_23 = arith.constant 0 : index
    %45 = vector.load %arg11[%c0_21, %c0_22, %c0_23] : memref<18x18x128xbf16, #tpu.memory_space<vmem>>, vector<18x18x128xbf16>
    tpu.vector_store %arg11[%c0_21, %c0_22, %c0_23], %44 {strides = array<i32>} : memref<18x18x128xbf16, #tpu.memory_space<vmem>>, vector<18x18x128xbf16>,
    %46 = vector.shape_cast %43 : vector<256x128xbf16> to vector<16x16x128xbf16>
    %c1 = arith.constant 1 : index
    %c1_24 = arith.constant 1 : index
    %c0_25 = arith.constant 0 : index
    %47 = vector.load %arg11[%c1, %c1_24, %c0_25] : memref<18x18x128xbf16, #tpu.memory_space<vmem>>, vector<16x16x128xbf16>
    tpu.vector_store %arg11[%c1, %c1_24, %c0_25], %46 {strides = array<i32>} : memref<18x18x128xbf16, #tpu.memory_space<vmem>>, vector<16x16x128xbf16>,
    %cst_26 = arith.constant 0.000000e+00 : f32
    %48 = vector.broadcast %cst_26 : f32 to vector<256x128xf32>
    %c0_27 = arith.constant 0 : index
    %c0_28 = arith.constant 0 : index
    %c0_29 = arith.constant 0 : index
    %49 = vector.load %arg11[%c0_27, %c0_28, %c0_29] : memref<18x18x128xbf16, #tpu.memory_space<vmem>>, vector<16x16x128xbf16>
    %50 = vector.shape_cast %49 : vector<16x16x128xbf16> to vector<256x128xbf16>
    %c0_30 = arith.constant 0 : index
    %c0_31 = arith.constant 0 : index
    %c0_32 = arith.constant 0 : index
    %51 = vector.load %arg8[%c0_30, %c0_31, %c0_32] : memref<9x128x128xbf16, #tpu.memory_space<vmem>>, vector<1x128x128xbf16>
    %52 = vector.shape_cast %51 : vector<1x128x128xbf16> to vector<128x128xbf16>
    %cst_33 = arith.constant dense<0.000000e+00> : vector<256x128xf32>
    %53 = tpu.matmul %50, %52, %cst_33 {dimension_numbers = #tpu.dot_dimension_numbers<[1], [0], [0], [1], [0, 0, 1, 1], [], []>} : vector<256x128xbf16>, vector<128x128xbf16>, vector<256x128xf32> -> vector<256x128xf32>
    %54 = arith.addf %48, %53 : vector<256x128xf32>
    %c0_34 = arith.constant 0 : index
    %c1_35 = arith.constant 1 : index
    %c0_36 = arith.constant 0 : index
    %55 = vector.load %arg11[%c0_34, %c1_35, %c0_36] : memref<18x18x128xbf16, #tpu.memory_space<vmem>>, vector<16x16x128xbf16>
    %56 = vector.shape_cast %55 : vector<16x16x128xbf16> to vector<256x128xbf16>
    %c1_37 = arith.constant 1 : index
    %c0_38 = arith.constant 0 : index
    %c0_39 = arith.constant 0 : index
    %57 = vector.load %arg8[%c1_37, %c0_38, %c0_39] : memref<9x128x128xbf16, #tpu.memory_space<vmem>>, vector<1x128x128xbf16>
    %58 = vector.shape_cast %57 : vector<1x128x128xbf16> to vector<128x128xbf16>
    %cst_40 = arith.constant dense<0.000000e+00> : vector<256x128xf32>
    %59 = tpu.matmul %56, %58, %cst_40 {dimension_numbers = #tpu.dot_dimension_numbers<[1], [0], [0], [1], [0, 0, 1, 1], [], []>} : vector<256x128xbf16>, vector<128x128xbf16>, vector<256x128xf32> -> vector<256x128xf32>
    %60 = arith.addf %54, %59 : vector<256x128xf32>
    %c0_41 = arith.constant 0 : index
    %c2 = arith.constant 2 : index
    %c0_42 = arith.constant 0 : index
    %61 = vector.load %arg11[%c0_41, %c2, %c0_42] : memref<18x18x128xbf16, #tpu.memory_space<vmem>>, vector<16x16x128xbf16>
    %62 = vector.shape_cast %61 : vector<16x16x128xbf16> to vector<256x128xbf16>
    %c2_43 = arith.constant 2 : index
    %c0_44 = arith.constant 0 : index
    %c0_45 = arith.constant 0 : index
    %63 = vector.load %arg8[%c2_43, %c0_44, %c0_45] : memref<9x128x128xbf16, #tpu.memory_space<vmem>>, vector<1x128x128xbf16>
    %64 = vector.shape_cast %63 : vector<1x128x128xbf16> to vector<128x128xbf16>
    %cst_46 = arith.constant dense<0.000000e+00> : vector<256x128xf32>
    %65 = tpu.matmul %62, %64, %cst_46 {dimension_numbers = #tpu.dot_dimension_numbers<[1], [0], [0], [1], [0, 0, 1, 1], [], []>} : vector<256x128xbf16>, vector<128x128xbf16>, vector<256x128xf32> -> vector<256x128xf32>
    %66 = arith.addf %60, %65 : vector<256x128xf32>
    %c1_47 = arith.constant 1 : index
    %c0_48 = arith.constant 0 : index
    %c0_49 = arith.constant 0 : index
    %67 = vector.load %arg11[%c1_47, %c0_48, %c0_49] : memref<18x18x128xbf16, #tpu.memory_space<vmem>>, vector<16x16x128xbf16>
    %68 = vector.shape_cast %67 : vector<16x16x128xbf16> to vector<256x128xbf16>
    %c3 = arith.constant 3 : index
    %c0_50 = arith.constant 0 : index
    %c0_51 = arith.constant 0 : index
    %69 = vector.load %arg8[%c3, %c0_50, %c0_51] : memref<9x128x128xbf16, #tpu.memory_space<vmem>>, vector<1x128x128xbf16>
    %70 = vector.shape_cast %69 : vector<1x128x128xbf16> to vector<128x128xbf16>
    %cst_52 = arith.constant dense<0.000000e+00> : vector<256x128xf32>
    %71 = tpu.matmul %68, %70, %cst_52 {dimension_numbers = #tpu.dot_dimension_numbers<[1], [0], [0], [1], [0, 0, 1, 1], [], []>} : vector<256x128xbf16>, vector<128x128xbf16>, vector<256x128xf32> -> vector<256x128xf32>
    %72 = arith.addf %66, %71 : vector<256x128xf32>
    %c1_53 = arith.constant 1 : index
    %c1_54 = arith.constant 1 : index
    %c0_55 = arith.constant 0 : index
    %73 = vector.load %arg11[%c1_53, %c1_54, %c0_55] : memref<18x18x128xbf16, #tpu.memory_space<vmem>>, vector<16x16x128xbf16>
    %74 = vector.shape_cast %73 : vector<16x16x128xbf16> to vector<256x128xbf16>
    %c4 = arith.constant 4 : index
    %c0_56 = arith.constant 0 : index
    %c0_57 = arith.constant 0 : index
    %75 = vector.load %arg8[%c4, %c0_56, %c0_57] : memref<9x128x128xbf16, #tpu.memory_space<vmem>>, vector<1x128x128xbf16>
    %76 = vector.shape_cast %75 : vector<1x128x128xbf16> to vector<128x128xbf16>
    %cst_58 = arith.constant dense<0.000000e+00> : vector<256x128xf32>
    %77 = tpu.matmul %74, %76, %cst_58 {dimension_numbers = #tpu.dot_dimension_numbers<[1], [0], [0], [1], [0, 0, 1, 1], [], []>} : vector<256x128xbf16>, vector<128x128xbf16>, vector<256x128xf32> -> vector<256x128xf32>
    %78 = arith.addf %72, %77 : vector<256x128xf32>
    %c1_59 = arith.constant 1 : index
    %c2_60 = arith.constant 2 : index
    %c0_61 = arith.constant 0 : index
    %79 = vector.load %arg11[%c1_59, %c2_60, %c0_61] : memref<18x18x128xbf16, #tpu.memory_space<vmem>>, vector<16x16x128xbf16>
    %80 = vector.shape_cast %79 : vector<16x16x128xbf16> to vector<256x128xbf16>
    %c5 = arith.constant 5 : index
    %c0_62 = arith.constant 0 : index
    %c0_63 = arith.constant 0 : index
    %81 = vector.load %arg8[%c5, %c0_62, %c0_63] : memref<9x128x128xbf16, #tpu.memory_space<vmem>>, vector<1x128x128xbf16>
    %82 = vector.shape_cast %81 : vector<1x128x128xbf16> to vector<128x128xbf16>
    %cst_64 = arith.constant dense<0.000000e+00> : vector<256x128xf32>
    %83 = tpu.matmul %80, %82, %cst_64 {dimension_numbers = #tpu.dot_dimension_numbers<[1], [0], [0], [1], [0, 0, 1, 1], [], []>} : vector<256x128xbf16>, vector<128x128xbf16>, vector<256x128xf32> -> vector<256x128xf32>
    %84 = arith.addf %78, %83 : vector<256x128xf32>
    %c2_65 = arith.constant 2 : index
    %c0_66 = arith.constant 0 : index
    %c0_67 = arith.constant 0 : index
    %85 = vector.load %arg11[%c2_65, %c0_66, %c0_67] : memref<18x18x128xbf16, #tpu.memory_space<vmem>>, vector<16x16x128xbf16>
    %86 = vector.shape_cast %85 : vector<16x16x128xbf16> to vector<256x128xbf16>
    %c6 = arith.constant 6 : index
    %c0_68 = arith.constant 0 : index
    %c0_69 = arith.constant 0 : index
    %87 = vector.load %arg8[%c6, %c0_68, %c0_69] : memref<9x128x128xbf16, #tpu.memory_space<vmem>>, vector<1x128x128xbf16>
    %88 = vector.shape_cast %87 : vector<1x128x128xbf16> to vector<128x128xbf16>
    %cst_70 = arith.constant dense<0.000000e+00> : vector<256x128xf32>
    %89 = tpu.matmul %86, %88, %cst_70 {dimension_numbers = #tpu.dot_dimension_numbers<[1], [0], [0], [1], [0, 0, 1, 1], [], []>} : vector<256x128xbf16>, vector<128x128xbf16>, vector<256x128xf32> -> vector<256x128xf32>
    %90 = arith.addf %84, %89 : vector<256x128xf32>
    %c2_71 = arith.constant 2 : index
    %c1_72 = arith.constant 1 : index
    %c0_73 = arith.constant 0 : index
    %91 = vector.load %arg11[%c2_71, %c1_72, %c0_73] : memref<18x18x128xbf16, #tpu.memory_space<vmem>>, vector<16x16x128xbf16>
    %92 = vector.shape_cast %91 : vector<16x16x128xbf16> to vector<256x128xbf16>
    %c7 = arith.constant 7 : index
    %c0_74 = arith.constant 0 : index
    %c0_75 = arith.constant 0 : index
    %93 = vector.load %arg8[%c7, %c0_74, %c0_75] : memref<9x128x128xbf16, #tpu.memory_space<vmem>>, vector<1x128x128xbf16>
    %94 = vector.shape_cast %93 : vector<1x128x128xbf16> to vector<128x128xbf16>
    %cst_76 = arith.constant dense<0.000000e+00> : vector<256x128xf32>
    %95 = tpu.matmul %92, %94, %cst_76 {dimension_numbers = #tpu.dot_dimension_numbers<[1], [0], [0], [1], [0, 0, 1, 1], [], []>} : vector<256x128xbf16>, vector<128x128xbf16>, vector<256x128xf32> -> vector<256x128xf32>
    %96 = arith.addf %90, %95 : vector<256x128xf32>
    %c2_77 = arith.constant 2 : index
    %c2_78 = arith.constant 2 : index
    %c0_79 = arith.constant 0 : index
    %97 = vector.load %arg11[%c2_77, %c2_78, %c0_79] : memref<18x18x128xbf16, #tpu.memory_space<vmem>>, vector<16x16x128xbf16>
    %98 = vector.shape_cast %97 : vector<16x16x128xbf16> to vector<256x128xbf16>
    %c8 = arith.constant 8 : index
    %c0_80 = arith.constant 0 : index
    %c0_81 = arith.constant 0 : index
    %99 = vector.load %arg8[%c8, %c0_80, %c0_81] : memref<9x128x128xbf16, #tpu.memory_space<vmem>>, vector<1x128x128xbf16>
    %100 = vector.shape_cast %99 : vector<1x128x128xbf16> to vector<128x128xbf16>
    %cst_82 = arith.constant dense<0.000000e+00> : vector<256x128xf32>
    %101 = tpu.matmul %98, %100, %cst_82 {dimension_numbers = #tpu.dot_dimension_numbers<[1], [0], [0], [1], [0, 0, 1, 1], [], []>} : vector<256x128xbf16>, vector<128x128xbf16>, vector<256x128xf32> -> vector<256x128xf32>
    %102 = arith.addf %96, %101 : vector<256x128xf32>
    %c0_83 = arith.constant 0 : index
    %c0_84 = arith.constant 0 : index
    %103 = vector.load %arg9[%c0_83, %c0_84] : memref<1x128xf32, #tpu.memory_space<vmem>>, vector<1x128xf32>
    %104 = vector.broadcast %103 : vector<1x128xf32> to vector<256x128xf32>
    %105 = arith.addf %102, %104 : vector<256x128xf32>
    %106 = arith.negf %105 : vector<256x128xf32>
    %107 = math.exp %106 : vector<256x128xf32>
    %cst_85 = arith.constant 1.000000e+00 : f32
    %108 = vector.broadcast %cst_85 : f32 to vector<256x128xf32>
    %109 = arith.addf %108, %107 : vector<256x128xf32>
    %110 = arith.divf %108, %109 : vector<256x128xf32>
    %111 = arith.mulf %105, %110 : vector<256x128xf32>
    %112 = tpu.transpose %111, [1, 0] : vector<256x128xf32> -> vector<128x256xf32>
    %c0_86 = arith.constant 0 : index
    %c0_87 = arith.constant 0 : index
    %c0_88 = arith.constant 0 : index
    %113 = vector.load %arg10[%c0_86, %c0_87, %c0_88] : memref<1x128x256xf32, #tpu.memory_space<vmem>>, vector<1x128x256xf32>
    %114 = vector.shape_cast %113 : vector<1x128x256xf32> to vector<128x256xf32>
    %115 = vector.shape_cast %112 : vector<128x256xf32> to vector<1x128x256xf32>
    tpu.vector_store %arg10[%c0_86, %c0_87, %c0_88], %115 {strides = array<i32>} : memref<1x128x256xf32, #tpu.memory_space<vmem>>, vector<1x128x256xf32>,
    return
  }
  func.func @transform_0(%arg0: i32) -> (i32, i32, i32) {
    %c0_i32 = arith.constant 0 : i32
    %c0_i32_0 = arith.constant 0 : i32
    %c0_i32_1 = arith.constant 0 : i32
    return %arg0, %c0_i32, %c0_i32_0 : i32, i32, i32
  }
  func.func @transform_1(%arg0: i32) -> (i32, i32, i32) {
    %c0_i32 = arith.constant 0 : i32
    %c0_i32_0 = arith.constant 0 : i32
    %c0_i32_1 = arith.constant 0 : i32
    return %arg0, %c0_i32, %c0_i32_0 : i32, i32, i32
  }
  func.func @transform_2(%arg0: i32) -> (i32, i32) {
    %c0_i32 = arith.constant 0 : i32
    %c0_i32_0 = arith.constant 0 : i32
    %c0_i32_1 = arith.constant 0 : i32
    return %c0_i32, %c0_i32_0 : i32, i32
  }
  func.func @transform_3(%arg0: i32) -> (i32, i32) {
    %c0_i32 = arith.constant 0 : i32
    %c0_i32_0 = arith.constant 0 : i32
    %c0_i32_1 = arith.constant 0 : i32
    return %c0_i32, %c0_i32_0 : i32, i32
  }
  func.func @transform_4(%arg0: i32) -> (i32, i32) {
    %c0_i32 = arith.constant 0 : i32
    %c0_i32_0 = arith.constant 0 : i32
    %c0_i32_1 = arith.constant 0 : i32
    return %c0_i32, %c0_i32_0 : i32, i32
  }
  func.func @transform_5(%arg0: i32) -> (i32, i32) {
    %c0_i32 = arith.constant 0 : i32
    %c0_i32_0 = arith.constant 0 : i32
    %c0_i32_1 = arith.constant 0 : i32
    return %c0_i32, %c0_i32_0 : i32, i32
  }
  func.func @transform_6(%arg0: i32) -> (i32, i32) {
    %c0_i32 = arith.constant 0 : i32
    %c0_i32_0 = arith.constant 0 : i32
    %c0_i32_1 = arith.constant 0 : i32
    return %c0_i32, %c0_i32_0 : i32, i32
  }
  func.func @transform_7(%arg0: i32) -> (i32, i32, i32) {
    %c0_i32 = arith.constant 0 : i32
    %c0_i32_0 = arith.constant 0 : i32
    %c0_i32_1 = arith.constant 0 : i32
    %c0_i32_2 = arith.constant 0 : i32
    return %c0_i32, %c0_i32_0, %c0_i32_1 : i32, i32, i32
  }
  func.func @transform_8(%arg0: i32) -> (i32, i32) {
    %c0_i32 = arith.constant 0 : i32
    %c0_i32_0 = arith.constant 0 : i32
    %c0_i32_1 = arith.constant 0 : i32
    return %c0_i32, %c0_i32_0 : i32, i32
  }
  func.func @transform_9(%arg0: i32) -> (i32, i32, i32) {
    %c0_i32 = arith.constant 0 : i32
    %c0_i32_0 = arith.constant 0 : i32
    %c0_i32_1 = arith.constant 0 : i32
    return %arg0, %c0_i32, %c0_i32_0 : i32, i32, i32
  }
}

</mosaic_0001>

<bundles_post_ra>
// kernel: asff2_pallas.1
= control target key start
LH: loop header
LB: loop body
LE: loop exit
PB: predicated region body
PF: predicated region fallthrough
CT: control target
= control target key end

     0   :  { %s10047_s11 = smov 0   ;;  %s12645_s0 = inlined_call_operand.vmem [shape: f32[2,128,256], index: 0, kind: input, shape index: {}]   ;;  %s12646_s1 = inlined_call_operand.vmem [shape: f32[2,128,256], index: 1, kind: input, shape index: {}]   ;;  %s12647_s2 = inlined_call_operand.vmem [shape: bf16[128,16], index: 2, kind: input, shape index: {}]   ;;  %s12648_s3 = inlined_call_operand.vmem [shape: bf16[128,16], index: 3, kind: input, shape index: {}]   ;;  %s12649_s4 = inlined_call_operand.vmem [shape: f32[1,16], index: 4, kind: input, shape index: {}]   ;;  %s12650_s5 = inlined_call_operand.vmem [shape: f32[1,16], index: 5, kind: input, shape index: {}]   ;;  %s12651_s6 = inlined_call_operand.<no memory space> [shape: f32[1,1], index: 6, kind: input, shape index: {}]   ;;  %s12652_s7 = inlined_call_operand.vmem [shape: bf16[9,128,128], index: 7, kind: input, shape index: {}]   ;;  %s12653_s8 = inlined_call_operand.vmem [shape: f32[1,128], index: 8, kind: input, shape index: {}]   ;;  %s12654_s9 = inlined_call_operand.vmem [shape: f32[2,128,256], index: 9, kind: output, shape index: {}]  }
   0x1   :  { %v14_v0 = vstv %s12651_s6 }
   0x2   :  { %15 = vst [vmem:[#allocation3] sm:$0x1] %v14_v0 }
   0x3 LB: > { %s7741_s12 = sadd.s32 4294967295, %s9991_s11   ;;  %p7745_p0 = scmp.ge.s32.totalorder %s9991_s11, 1  ;;  %s9991_s11 = sphi %s10047_s11, %s21_s11  }
   0x4   : > { %p299_p1 = scmp.lt.s32.totalorder %s9991_s11, 3 }
   0x6   : > { %p300_p2 = pnand %p7745_p0, %p299_p1 }
   0x8   : > { %303 = sbr.rel (%p300_p2) target bundleno = 1726 (0x6be), region = 56 }
   0xf   : > { %p340_p3 = scmp.lt.s32.totalorder %s7741_s12, 1  ;;  %v9404_v1 = vld [vmem:[%s12648_s3] sm:$0xff]   ;;  %v9405_v2 = vld [vmem:[%s12648_s3 + $0x8] sm:$0xff]   ;;  %v9406_v3 = vld [vmem:[%s12648_s3 + $0x10] sm:$0xff]   ;;  %vm1332_vm0 = vcmask 130048   ;;  %vm2390_vm6 = vcmask 1043456  }
  0x10   : > { %8561 = vmatprep.subr.bf16.mxu0 %v9404_v1  ;;  %v9407_v7 = vld [vmem:[%s12648_s3 + $0x18] sm:$0xff]   ;;  %v9408_v10 = vld [vmem:[%s12648_s3 + $0x20] sm:$0xff]   ;;  %v9409_v17 = vld [vmem:[%s12648_s3 + $0x28] sm:$0xff]   ;;  %vm2571_vm1 = vsmask.f32 3328  ;;  %vm2397_vm8 = vcmask 1040384  }
  0x11   : > { %s12788_s12 = smov (!%p340_p3, %s7741_s12), 1  ;;  %8562 = vmatpush3.bf16.msra.mxu0 %v9404_v1  ;;  %v9410_v19 = vld [vmem:[%s12648_s3 + $0x30] sm:$0xff]   ;;  %v9411_v21 = vld [vmem:[%s12648_s3 + $0x38] sm:$0xff]   ;;  %v10112_v31 = vld [vmem:[%s12647_s2] sm:$0xff]   ;;  %vm2572_vm2 = vsmask.f32 7440 }
  0x12   : > { %s10061_s16 = sshll.u32 %s12788_s12, 8  ;;  %8563 = vmatprep.subr.bf16.mxu0 %v9405_v2  ;;  %vm10716_vm3 = vmor %vm2571_vm1, %vm2572_vm2  ;;  %vm2066_vm4 = vsmask.f32 256  ;;  %vm2067_vm5 = vsmask.f32 4368  ;;  %vm3601_vm12 = vcmask 1042432  }
  0x13   : > { %s10070_s21 = scalar_lea.vmem %s12646_s1, %s10061_s16  ;;  %s10128_s15 = scalar_lea.vmem %s12645_s0, %s10061_s16  ;;  %vm2391_vm7 = vsmask.f32 7938  ;;  %vm10741_vm9 = vmor %vm2066_vm4, %vm2067_vm5  ;;  %vm3602_vm13 = vcmask 1046532  }
  0x14   : > { %v468_v4 = vld [vmem:[%s10070_s21] sm:$0xff]  ;;  %v470_v5 = vld [vmem:[%s10070_s21 + $0x10] sm:$0xff]  ;;  %v469_v6 = vld [vmem:[%s10070_s21 + $0x8] sm:$0xff]  ;;  %s12608_s19 = scalar_lea.vmem %s12654_s9, %s10061_s16 }
  0x15   : > { %500 = vxpose.xlu0.b32.start [1/16] %v468_v4, 128  ;;  %8564 = vmatpush3.bf16.msra.mxu0 %v9405_v2  ;;  %v471_v8 = vld [vmem:[%s10070_s21 + $0x18] sm:$0xff]  ;;  %v472_v9 = vld [vmem:[%s10070_s21 + $0x20] sm:$0xff]  ;;  %v473_v11 = vld [vmem:[%s10070_s21 + $0x28] sm:$0xff] }
  0x16   : > { %8565 = vmatprep.subr.bf16.mxu0 %v9406_v3  ;;  %532 = vxpose.xlu1.b32.start [1/16] %v469_v6, 128  ;;  %v474_v12 = vld [vmem:[%s10070_s21 + $0x30] sm:$0xff]  ;;  %v475_v13 = vld [vmem:[%s10070_s21 + $0x38] sm:$0xff]  ;;  %v476_v14 = vld [vmem:[%s10070_s21 + $0x40] sm:$0xff] }
  0x17   : > { %v477_v15 = vld [vmem:[%s10070_s21 + $0x48] sm:$0xff]  ;;  %v478_v16 = vld [vmem:[%s10070_s21 + $0x50] sm:$0xff]  ;;  %v479_v18 = vld [vmem:[%s10070_s21 + $0x58] sm:$0xff] }
  0x18   : > { %v480_v20 = vld [vmem:[%s10070_s21 + $0x60] sm:$0xff]  ;;  %v482_v22 = vld [vmem:[%s10070_s21 + $0x70] sm:$0xff]  ;;  %v481_v23 = vld [vmem:[%s10070_s21 + $0x68] sm:$0xff] }
  0x19   : > { %501 = vxpose.xlu0.b32.cont [2/16] %v470_v5, 128  ;;  %8566 = vmatpush3.bf16.msra.mxu0 %v9406_v3  ;;  %v484_v24 = vld [vmem:[%s10070_s21 + $0x80] sm:$0xff]  ;;  %v483_v25 = vld [vmem:[%s10070_s21 + $0x78] sm:$0xff]  ;;  %v485_v26 = vld [vmem:[%s10070_s21 + $0x88] sm:$0xff] }
  0x1a   : > { %8567 = vmatprep.subr.bf16.mxu0 %v9407_v7  ;;  %533 = vxpose.xlu1.b32.cont [2/16] %v471_v8, 128  ;;  %v486_v27 = vld [vmem:[%s10070_s21 + $0x90] sm:$0xff]  ;;  %v487_v28 = vld [vmem:[%s10070_s21 + $0x98] sm:$0xff]  ;;  %v488_v29 = vld [vmem:[%s10070_s21 + $0xa0] sm:$0xff] }
  0x1b   : > { %v489_v30 = vld [vmem:[%s10070_s21 + $0xa8] sm:$0xff]  ;;  %v490_v32 = vld [vmem:[%s10070_s21 + $0xb0] sm:$0xff]  ;;  %v491_v33 = vld [vmem:[%s10070_s21 + $0xb8] sm:$0xff] }
  0x1c   : > { %v492_v34 = vld [vmem:[%s10070_s21 + $0xc0] sm:$0xff]  ;;  %v493_v35 = vld [vmem:[%s10070_s21 + $0xc8] sm:$0xff]  ;;  %v494_v36 = vld [vmem:[%s10070_s21 + $0xd0] sm:$0xff] }
  0x1d   : > { %502 = vxpose.xlu0.b32.cont [3/16] %v472_v9, 128  ;;  %8568 = vmatpush3.bf16.msra.mxu0 %v9407_v7  ;;  %v495_v37 = vld [vmem:[%s10070_s21 + $0xd8] sm:$0xff]  ;;  %v496_v38 = vld [vmem:[%s10070_s21 + $0xe0] sm:$0xff]  ;;  %v497_v39 = vld [vmem:[%s10070_s21 + $0xe8] sm:$0xff] }
  0x1e   : > { %8569 = vmatprep.subr.bf16.mxu0 %v9408_v10  ;;  %534 = vxpose.xlu1.b32.cont [3/16] %v473_v11, 128  ;;  %v498_v40 = vld [vmem:[%s10070_s21 + $0xf0] sm:$0xff]  ;;  %v499_v41 = vld [vmem:[%s10070_s21 + $0xf8] sm:$0xff]  ;;  %v356_v42 = vld [vmem:[%s10128_s15] sm:$0xff] }
  0x1f   : > { %v357_v43 = vld [vmem:[%s10128_s15 + $0x8] sm:$0xff]  ;;  %v358_v44 = vld [vmem:[%s10128_s15 + $0x10] sm:$0xff]  ;;  %v359_v45 = vld [vmem:[%s10128_s15 + $0x18] sm:$0xff] }
  0x20   : > { %v360_v46 = vld [vmem:[%s10128_s15 + $0x20] sm:$0xff]  ;;  %v361_v47 = vld [vmem:[%s10128_s15 + $0x28] sm:$0xff]  ;;  %v362_v48 = vld [vmem:[%s10128_s15 + $0x30] sm:$0xff] }
  0x21   : > { %503 = vxpose.xlu0.b32.cont [4/16] %v474_v12, 128  ;;  %8570 = vmatpush3.bf16.msra.mxu0 %v9408_v10  ;;  %v363_v49 = vld [vmem:[%s10128_s15 + $0x38] sm:$0xff]  ;;  %v364_v50 = vld [vmem:[%s10128_s15 + $0x40] sm:$0xff]  ;;  %v365_v51 = vld [vmem:[%s10128_s15 + $0x48] sm:$0xff] }
  0x22   : > { %535 = vxpose.xlu1.b32.cont [4/16] %v475_v13, 128  ;;  %8571 = vmatprep.subr.bf16.mxu0 %v9409_v17  ;;  %v366_v52 = vld [vmem:[%s10128_s15 + $0x50] sm:$0xff]  ;;  %v367_v53 = vld [vmem:[%s10128_s15 + $0x58] sm:$0xff]  ;;  %v368_v54 = vld [vmem:[%s10128_s15 + $0x60] sm:$0xff] }
  0x23   : > { %v369_v55 = vld [vmem:[%s10128_s15 + $0x68] sm:$0xff]  ;;  %v370_v56 = vld [vmem:[%s10128_s15 + $0x70] sm:$0xff]  ;;  %v371_v57 = vld [vmem:[%s10128_s15 + $0x78] sm:$0xff] }
  0x24   : > { %v372_v58 = vld [vmem:[%s10128_s15 + $0x80] sm:$0xff]  ;;  %v373_v59 = vld [vmem:[%s10128_s15 + $0x88] sm:$0xff]  ;;  %v374_v60 = vld [vmem:[%s10128_s15 + $0x90] sm:$0xff] }
  0x25   : > { %504 = vxpose.xlu0.b32.cont [5/16] %v476_v14, 128  ;;  %8572 = vmatpush3.bf16.msra.mxu0 %v9409_v17  ;;  %v375_v61 = vld [vmem:[%s10128_s15 + $0x98] sm:$0xff]  ;;  %v376_v62 = vld [vmem:[%s10128_s15 + $0xa0] sm:$0xff]  ;;  %v377_v63 = vld [vmem:[%s10128_s15 + $0xa8] sm:$0xff] }
  0x26   : > { %536 = vxpose.xlu1.b32.cont [5/16] %v477_v15, 128  ;;  %8573 = vmatprep.subr.bf16.mxu0 %v9410_v19  ;;  %v378_v0 = vld [vmem:[%s10128_s15 + $0xb0] sm:$0xff]  ;;  %v379_v1 = vld [vmem:[%s10128_s15 + $0xb8] sm:$0xff]  ;;  %v380_v2 = vld [vmem:[%s10128_s15 + $0xc0] sm:$0xff] }
  0x27   : > { %v381_v3 = vld [vmem:[%s10128_s15 + $0xc8] sm:$0xff]  ;;  %v382_v4 = vld [vmem:[%s10128_s15 + $0xd0] sm:$0xff]  ;;  %v383_v5 = vld [vmem:[%s10128_s15 + $0xd8] sm:$0xff] }
  0x28   : > { %v384_v6 = vld [vmem:[%s10128_s15 + $0xe0] sm:$0xff]  ;;  %v385_v7 = vld [vmem:[%s10128_s15 + $0xe8] sm:$0xff]  ;;  %v386_v8 = vld [vmem:[%s10128_s15 + $0xf0] sm:$0xff] }
  0x29   : > { %505 = vxpose.xlu0.b32.cont [6/16] %v478_v16, 128  ;;  %8574 = vmatpush3.bf16.msra.mxu0 %v9410_v19  ;;  %v387_v9 = vld [vmem:[%s10128_s15 + $0xf8] sm:$0xff]  ;;  %v9413_v19 = vld [vmem:[%s12647_s2 + $0x8] sm:$0xff]   ;;  %vm10745_vm10 = vmand %vm2390_vm6, %vm2391_vm7 }
  0x2a   : > { %537 = vxpose.xlu1.b32.cont [6/16] %v479_v18, 128  ;;  %8575 = vmatprep.subr.bf16.mxu0 %v9411_v21  ;;  %vm10750_vm11 = vmand %vm2397_vm8, %vm2066_vm4 }
  0x2b   : > { %vm11306_vm14 = vmor %vm3601_vm12, %vm3602_vm13 }
  0x2d   : > { %506 = vxpose.xlu0.b32.cont [7/16] %v480_v20, 128  ;;  %8576 = vmatpush3.bf16.msra.mxu0 %v9411_v21 }
  0x2e   : > { %538 = vxpose.xlu1.b32.cont [7/16] %v481_v23, 128  ;;  %8609 = vmatprep.subr.bf16.mxu0 %v10112_v31 }
  0x31   : > { %507 = vxpose.xlu0.b32.cont [8/16] %v482_v22, 128  ;;  %v9414_v22 = vld [vmem:[%s12647_s2 + $0x10] sm:$0xff]  }
  0x32   : > { %539 = vxpose.xlu1.b32.cont [8/16] %v483_v25, 128 }
  0x35   : > { %508 = vxpose.xlu0.b32.cont [9/16] %v484_v24, 128 }
  0x36   : > { %540 = vxpose.xlu1.b32.cont [9/16] %v485_v26, 128  ;;  %v9415_v26 = vld [vmem:[%s12647_s2 + $0x18] sm:$0xff]  }
  0x39   : > { %509 = vxpose.xlu0.b32.cont [10/16] %v486_v27, 128 }
  0x3a   : > { %541 = vxpose.xlu1.b32.cont [10/16] %v487_v28, 128 }
  0x3d   : > { %510 = vxpose.xlu0.b32.cont [11/16] %v488_v29, 128  ;;  %v9416_v29 = vld [vmem:[%s12647_s2 + $0x20] sm:$0xff]  }
  0x3e   : > { %542 = vxpose.xlu1.b32.cont [11/16] %v489_v30, 128 }
  0x41   : > { %511 = vxpose.xlu0.b32.cont [12/16] %v490_v32, 128 }
  0x42   : > { %543 = vxpose.xlu1.b32.cont [12/16] %v491_v33, 128  ;;  %v9417_v33 = vld [vmem:[%s12647_s2 + $0x28] sm:$0xff]  }
  0x45   : > { %512 = vxpose.xlu0.b32.cont [13/16] %v492_v34, 128 }
  0x46   : > { %544 = vxpose.xlu1.b32.cont [13/16] %v493_v35, 128 }
  0x49   : > { %513 = vxpose.xlu0.b32.cont [14/16] %v494_v36, 128  ;;  %v9418_v36 = vld [vmem:[%s12647_s2 + $0x30] sm:$0xff]  }
  0x4a   : > { %545 = vxpose.xlu1.b32.cont [14/16] %v495_v37, 128 }
  0x4d   : > { %514 = vxpose.xlu0.b32.cont [15/16] %v496_v38, 128 }
  0x4e   : > { %546 = vxpose.xlu1.b32.cont [15/16] %v497_v39, 128 }
  0x51   : > { %515 = vxpose.xlu0.b32.end [16/16] %v498_v40, 128  ;;  %v9419_v40 = vld [vmem:[%s12647_s2 + $0x38] sm:$0xff]  }
  0x52   : > { %547 = vxpose.xlu1.b32.end [16/16] %v499_v41, 128 }
  0x55   : > { %388 = vxpose.xlu0.b32.start [1/16] %v356_v42, 128 }
  0x56   : > { %420 = vxpose.xlu1.b32.start [1/16] %v357_v43, 128 }
  0x59   : > { %389 = vxpose.xlu0.b32.cont [2/16] %v358_v44, 128 }
  0x5a   : > { %421 = vxpose.xlu1.b32.cont [2/16] %v359_v45, 128 }
  0x5d   : > { %390 = vxpose.xlu0.b32.cont [3/16] %v360_v46, 128 }
  0x5e   : > { %422 = vxpose.xlu1.b32.cont [3/16] %v361_v47, 128 }
  0x61   : > { %391 = vxpose.xlu0.b32.cont [4/16] %v362_v48, 128 }
  0x62   : > { %423 = vxpose.xlu1.b32.cont [4/16] %v363_v49, 128 }
  0x65   : > { %392 = vxpose.xlu0.b32.cont [5/16] %v364_v50, 128 }
  0x66   : > { %424 = vxpose.xlu1.b32.cont [5/16] %v365_v51, 128 }
  0x69   : > { %393 = vxpose.xlu0.b32.cont [6/16] %v366_v52, 128 }
  0x6a   : > { %425 = vxpose.xlu1.b32.cont [6/16] %v367_v53, 128 }
  0x6d   : > { %394 = vxpose.xlu0.b32.cont [7/16] %v368_v54, 128 }
  0x6e   : > { %426 = vxpose.xlu1.b32.cont [7/16] %v369_v55, 128 }
  0x71   : > { %395 = vxpose.xlu0.b32.cont [8/16] %v370_v56, 128 }
  0x72   : > { %427 = vxpose.xlu1.b32.cont [8/16] %v371_v57, 128 }
  0x75   : > { %396 = vxpose.xlu0.b32.cont [9/16] %v372_v58, 128 }
  0x76   : > { %428 = vxpose.xlu1.b32.cont [9/16] %v373_v59, 128 }
  0x79   : > { %397 = vxpose.xlu0.b32.cont [10/16] %v374_v60, 128 }
  0x7a   : > { %429 = vxpose.xlu1.b32.cont [10/16] %v375_v61, 128 }
  0x7d   : > { %398 = vxpose.xlu0.b32.cont [11/16] %v376_v62, 128 }
  0x7e   : > { %430 = vxpose.xlu1.b32.cont [11/16] %v377_v63, 128 }
  0x81   : > { %399 = vxpose.xlu0.b32.cont [12/16] %v378_v0, 128 }
  0x82   : > { %431 = vxpose.xlu1.b32.cont [12/16] %v379_v1, 128 }
  0x85   : > { %400 = vxpose.xlu0.b32.cont [13/16] %v380_v2, 128 }
  0x86   : > { %432 = vxpose.xlu1.b32.cont [13/16] %v381_v3, 128 }
  0x89   : > { %401 = vxpose.xlu0.b32.cont [14/16] %v382_v4, 128 }
  0x8a   : > { %433 = vxpose.xlu1.b32.cont [14/16] %v383_v5, 128 }
  0x8d   : > { %402 = vxpose.xlu0.b32.cont [15/16] %v384_v6, 128 }
  0x8e   : > { %434 = vxpose.xlu1.b32.cont [15/16] %v385_v7, 128 }
  0x91   : > { %403 = vxpose.xlu0.b32.end [16/16] %v386_v8, 128 }
  0x92   : > { %435 = vxpose.xlu1.b32.end [16/16] %v387_v9, 128 }
  0x95   : > { %v516_v10 = vpop.trf.xlu0 }
  0x96   : > { %v10163_v11 = vpop.trf.xlu1 }
  0x99   : > { %v517_v12 = vpop.trf.xlu0 }
  0x9a   : > { %v10165_v13 = vpack.c.bf16 %v517_v12, %v516_v10  ;;  %v10167_v14 = vpop.trf.xlu1 }
  0x9b   : > { %v10218_v56 = vpack.c.bf16 %v10167_v14, %v10163_v11 }
  0x9c   : > { %8577 = vmatprep.mubr.bf16.mxu0 %v10165_v13 }
  0x9d   : > { %v518_v15 = vpop.trf.xlu0 }
  0x9e   : > { %v10170_v16 = vpop.trf.xlu1 }
  0xa1   : > { %v519_v17 = vpop.trf.xlu0 }
  0xa2   : > { %v10172_v18 = vpack.c.bf16 %v519_v17, %v518_v15  ;;  %v10177_v20 = vpop.trf.xlu1 }
  0xa3   : > { %v10224_v61 = vpack.c.bf16 %v10177_v20, %v10170_v16 }
  0xa4   : > { %8578 = vmatmul.mubr.bf16.vlgmr.msra.gmra.mrb[0].mxu0 %v10172_v18 }
  0xa5   : > { %v520_v21 = vpop.trf.xlu0  ;;  %8610 = vmatpush3.bf16.msra.mxu0 %v10112_v31 }
  0xa6   : > { %8611 = vmatprep.subr.bf16.mxu0 %v9413_v19  ;;  %v552_v23 = vpop.trf.xlu1 }
  0xa9   : > { %v521_v24 = vpop.trf.xlu0  ;;  %8612 = vmatpush3.bf16.msra.mxu0 %v9413_v19 }
  0xaa   : > { %v10184_v25 = vpack.c.bf16 %v521_v24, %v520_v21  ;;  %8613 = vmatprep.subr.bf16.mxu0 %v9414_v22  ;;  %v553_v27 = vpop.trf.xlu1 }
  0xab   : > { %v10226_v62 = vpack.c.bf16 %v553_v27, %v552_v23 }
  0xac   : > { %12689 = vst [vmem:[#allocation4_spill] sm:$0xff] %v10184_v25  ;;  %8581 = vmatprep.mubr.bf16.mxu0 %v10184_v25 }
  0xad   : > { %v522_v28 = vpop.trf.xlu0  ;;  %8614 = vmatpush3.bf16.msra.mxu0 %v9414_v22 }
  0xae   : > { %8615 = vmatprep.subr.bf16.mxu0 %v9415_v26  ;;  %v554_v30 = vpop.trf.xlu1 }
  0xb1   : > { %v523_v31 = vpop.trf.xlu0  ;;  %8616 = vmatpush3.bf16.msra.mxu0 %v9415_v26 }
  0xb2   : > { %v10193_v32 = vpack.c.bf16 %v523_v31, %v522_v28  ;;  %8617 = vmatprep.subr.bf16.mxu0 %v9416_v29  ;;  %v555_v34 = vpop.trf.xlu1 }
  0xb3   : > { %v10230_v3 = vpack.c.bf16 %v555_v34, %v554_v30 }
  0xb4   : > { %12690 = vst [vmem:[#allocation5_spill] sm:$0xff] %v10193_v32  ;;  %8582 = vmatmul.mubr.bf16.gmra.mrb[4].mxu0 %v10193_v32 }
  0xb5   : > { %v524_v35 = vpop.trf.xlu0  ;;  %8618 = vmatpush3.bf16.msra.mxu0 %v9416_v29 }
  0xb6   : > { %8619 = vmatprep.subr.bf16.mxu0 %v9417_v33  ;;  %v556_v37 = vpop.trf.xlu1 }
  0xb9   : > { %v525_v38 = vpop.trf.xlu0  ;;  %8620 = vmatpush3.bf16.msra.mxu0 %v9417_v33 }
  0xba   : > { %v10202_v39 = vpack.c.bf16 %v525_v38, %v524_v35  ;;  %8621 = vmatprep.subr.bf16.mxu0 %v9418_v36  ;;  %v557_v41 = vpop.trf.xlu1 }
  0xbb   : > { %v10232_v4 = vpack.c.bf16 %v557_v41, %v556_v37 }
  0xbc   : > { %12691 = vst [vmem:[#allocation6_spill] sm:$0xff] %v10202_v39  ;;  %8585 = vmatprep.mubr.bf16.mxu0 %v10202_v39 }
  0xbd   : > { %v526_v42 = vpop.trf.xlu0  ;;  %8622 = vmatpush3.bf16.msra.mxu0 %v9418_v36 }
  0xbe   : > { %8623 = vmatprep.subr.bf16.mxu0 %v9419_v40  ;;  %v558_v43 = vpop.trf.xlu1 }
  0xc1   : > { %v527_v44 = vpop.trf.xlu0  ;;  %8624 = vmatpush3.bf16.msra.mxu0 %v9419_v40 }
  0xc2   : > { %v10208_v45 = vpack.c.bf16 %v527_v44, %v526_v42  ;;  %v559_v46 = vpop.trf.xlu1 }
  0xc3   : > { %v10236_v8 = vpack.c.bf16 %v559_v46, %v558_v43 }
  0xc4   : > { %12692 = vst [vmem:[#allocation7_spill] sm:$0xff] %v10208_v45  ;;  %8586 = vmatmul.mubr.bf16.gmra.mrb[8].mxu0 %v10208_v45 }
  0xc5   : > { %v528_v47 = vpop.trf.xlu0 }
  0xc6   : > { %v560_v48 = vpop.trf.xlu1 }
  0xc9   : > { %v529_v49 = vpop.trf.xlu0 }
  0xca   : > { %v10211_v50 = vpack.c.bf16 %v529_v49, %v528_v47  ;;  %v561_v51 = vpop.trf.xlu1 }
  0xcb   : > { %v10238_v9 = vpack.c.bf16 %v561_v51, %v560_v48 }
  0xcc   : > { %12693 = vst [vmem:[#allocation8_spill] sm:$0xff] %v10211_v50  ;;  %8589 = vmatprep.mubr.bf16.mxu0 %v10211_v50 }
  0xcd   : > { %v530_v52 = vpop.trf.xlu0  ;;  %12695 = vst [vmem:[#allocation10_spill] sm:$0xff] %v10238_v9 }
  0xce   : > { %v562_v53 = vpop.trf.xlu1 }
  0xd1   : > { %v531_v54 = vpop.trf.xlu0 }
  0xd2   : > { %v10214_v55 = vpack.c.bf16 %v531_v54, %v530_v52  ;;  %v563_v57 = vpop.trf.xlu1 }
  0xd3   : > { %v10242_v15 = vpack.c.bf16 %v563_v57, %v562_v53 }
  0xd4   : > { %12694 = vst [vmem:[#allocation9_spill] sm:$0xff] %v10214_v55  ;;  %8590 = vmatmul.mubr.bf16.gmra.mrb[12].mxu0 %v10214_v55 }
  0xd5   : > { %8593 = vmatprep.mubr.bf16.mxu0 %v10218_v56  ;;  %v404_v58 = vpop.trf.xlu0 }
  0xd6   : > { %v436_v59 = vpop.trf.xlu1 }
  0xd9   : > { %v405_v60 = vpop.trf.xlu0 }
  0xda   : > { %v437_v63 = vpop.trf.xlu1  ;;  %v10244_v16 = vpack.c.bf16 %v405_v60, %v404_v58  ;;  %v10296_v58 = vld [vmem:[%s12649_s4] ss:$0 sm:$0xff] }
  0xdb   : > { %v10268_v41 = vpack.c.bf16 %v437_v63, %v436_v59 }
  0xdc   : > { %8594 = vmatmul.mubr.bf16.gmra.mrb[16].mxu0 %v10224_v61 }
  0xdd   : > { %8597 = vmatprep.mubr.bf16.mxu0 %v10226_v62  ;;  %v406_v0 = vpop.trf.xlu0 }
  0xde   : > { %v438_v1 = vpop.trf.xlu1 }
  0xe1   : > { %v407_v2 = vpop.trf.xlu0 }
  0xe2   : > { %v439_v6 = vpop.trf.xlu1  ;;  %v10248_v21 = vpack.c.bf16 %v407_v2, %v406_v0 }
  0xe3   : > { %v10272_v43 = vpack.c.bf16 %v439_v6, %v438_v1 }
  0xe4   : > { %8598 = vmatmul.mubr.bf16.gmra.mrb[20].mxu0 %v10230_v3 }
  0xe5   : > { %8601 = vmatprep.mubr.bf16.mxu0 %v10232_v4  ;;  %v408_v5 = vpop.trf.xlu0 }
  0xe6   : > { %v440_v10 = vpop.trf.xlu1 }
  0xe9   : > { %v409_v7 = vpop.trf.xlu0 }
  0xea   : > { %v441_v14 = vpop.trf.xlu1  ;;  %v10250_v22 = vpack.c.bf16 %v409_v7, %v408_v5 }
  0xeb   : > { %v10274_v44 = vpack.c.bf16 %v441_v14, %v440_v10 }
  0xec   : > { %8602 = vmatmul.mubr.bf16.gmra.mrb[24].mxu0 %v10236_v8  ;;  %12696 = vst [vmem:[#allocation11_spill] sm:$0xff] %v10250_v22 }
  0xed   : > { %8605 = vmatprep.mubr.bf16.mxu0 %v10238_v9  ;;  %v410_v11 = vpop.trf.xlu0 }
  0xee   : > { %v442_v19 = vpop.trf.xlu1 }
  0xf1   : > { %v411_v12 = vpop.trf.xlu0 }
  0xf2   : > { %v443_v24 = vpop.trf.xlu1  ;;  %v10254_v27 = vpack.c.bf16 %v411_v12, %v410_v11 }
  0xf3   : > { %v10278_v48 = vpack.c.bf16 %v443_v24, %v442_v19 }
  0xf4   : > { %8606 = vmatmul.mubr.bf16.gmra.mrb[28].mxu0 %v10242_v15  ;;  %12697 = vst [vmem:[#allocation12_spill] sm:$0xff] %v10254_v27 }
  0xf5   : > { %8625 = vmatprep.mubr.bf16.mxu0 %v10244_v16  ;;  %v412_v17 = vpop.trf.xlu0 }
  0xf6   : > { %v444_v29 = vpop.trf.xlu1 }
  0xf9   : > { %v413_v20 = vpop.trf.xlu0 }
  0xfa   : > { %v10256_v28 = vpack.c.bf16 %v413_v20, %v412_v17  ;;  %v445_v33 = vpop.trf.xlu1 }
  0xfb   : > { %v10280_v49 = vpack.c.bf16 %v445_v33, %v444_v29 }
  0xfc   : > { %8626 = vmatmul.mubr.bf16.vlgmr.msra.gmra.mrb[0].mxu0 %v10248_v21  ;;  %12698 = vst [vmem:[#allocation13_spill] sm:$0xff] %v10256_v28 }
  0xfd   : > { %8629 = vmatprep.mubr.bf16.mxu0 %v10250_v22  ;;  %v414_v23 = vpop.trf.xlu0 }
  0xfe   : > { %v446_v37 = vpop.trf.xlu1 }
 0x101   : > { %v415_v26 = vpop.trf.xlu0 }
 0x102   : > { %v10260_v34 = vpack.c.bf16 %v415_v26, %v414_v23  ;;  %v447_v42 = vpop.trf.xlu1 }
 0x103   : > { %v10286_v53 = vpack.c.bf16 %v447_v42, %v446_v37 }
 0x104   : > { %8630 = vmatmul.mubr.bf16.gmra.mrb[4].mxu0 %v10254_v27  ;;  %12699 = vst [vmem:[#allocation14_spill] sm:$0xff] %v10260_v34 }
 0x105   : > { %8633 = vmatprep.mubr.bf16.mxu0 %v10256_v28  ;;  %v416_v30 = vpop.trf.xlu0 }
 0x106   : > { %v448_v46 = vpop.trf.xlu1 }
 0x109   : > { %v417_v31 = vpop.trf.xlu0 }
 0x10a   : > { %v10262_v35 = vpack.c.bf16 %v417_v31, %v416_v30  ;;  %v449_v47 = vpop.trf.xlu1 }
 0x10b   : > { %v10284_v52 = vpack.c.bf16 %v449_v47, %v448_v46 }
 0x10c   : > { %12700 = vst [vmem:[#allocation15_spill] sm:$0xff] %v10262_v35  ;;  %8634 = vmatmul.mubr.bf16.gmra.mrb[8].mxu0 %v10260_v34 }
 0x10d   : > { %8637 = vmatprep.mubr.bf16.mxu0 %v10262_v35  ;;  %v418_v36 = vpop.trf.xlu0 }
 0x10e   : > { %v450_v51 = vpop.trf.xlu1 }
 0x111   : > { %v419_v38 = vpop.trf.xlu0 }
 0x112   : > { %v10266_v40 = vpack.c.bf16 %v419_v38, %v418_v36  ;;  %v451_v54 = vpop.trf.xlu1 }
 0x113   : > { %v10290_v57 = vpack.c.bf16 %v451_v54, %v450_v51 }
 0x114   : > { %12701 = vst [vmem:[#allocation16_spill] sm:$0xff] %v10266_v40  ;;  %8638 = vmatmul.mubr.bf16.gmra.mrb[12].mxu0 %v10266_v40 }
 0x115   : > { %8641 = vmatprep.mubr.bf16.mxu0 %v10268_v41  ;;  %12702 = vst [vmem:[#allocation17_spill] sm:$0xff] %v10290_v57 }
 0x11c   : > { %8642 = vmatmul.mubr.bf16.gmra.mrb[16].mxu0 %v10272_v43 }
 0x11d   : > { %8645 = vmatprep.mubr.bf16.mxu0 %v10274_v44 }
 0x124   : > { %8646 = vmatmul.mubr.bf16.gmra.mrb[20].mxu0 %v10278_v48 }
 0x125   : > { %8649 = vmatprep.mubr.bf16.mxu0 %v10280_v49 }
 0x12c   : > { %8650 = vmatmul.mubr.bf16.gmra.mrb[24].mxu0 %v10286_v53 }
 0x12d   : > { %8653 = vmatprep.mubr.bf16.mxu0 %v10284_v52 }
 0x134   : > { %8654 = vmatmul.mubr.bf16.gmra.mrb[28].mxu0 %v10290_v57 }
 0x1cf   : > { %v8627_v59 = vpop.f32.mrb[0].mxu0 }
 0x1d0   : > { %v10299_v60 = vadd.f32 %v8627_v59, %v10296_v58  ;;  %v903_v63 = vpop.f32.mrb[1].mxu0 }
 0x1d1   : > { %v10302_v0 = vadd.f32 %v10296_v58, %v903_v63  ;;  %v8628_v1 = vpop.f32.mrb[2].mxu0 }
 0x1d2   : > { %v7771_v2 = vmul.f32 -1.442695, %v10299_v60  ;;  %v10306_v5 = vadd.f32 %v8628_v1, %v10296_v58  ;;  %v906_v6 = vpop.f32.mrb[3].mxu0 }
 0x1d3   : > { %v7769_v7 = vmul.f32 -1.442695, %v10302_v0  ;;  %v10310_v10 = vadd.f32 %v10296_v58, %v906_v6 }
 0x1d4   : > { %9540 = vpow2.f32 %v7771_v2  ;;  %v7772_v11 = vmul.f32 -1.442695, %v10306_v5 }
 0x1d5   : > { %9542 = vpow2.f32 %v7769_v7  ;;  %v7770_v12 = vmul.f32 -1.442695, %v10310_v10 }
 0x1d6   : > { %9544 = vpow2.f32 %v7772_v11 }
 0x1d7   : > { %9546 = vpow2.f32 %v7770_v12  ;;  %v8631_v14 = vpop.f32.mrb[4].mxu0 }
 0x1d8   : > { %v10315_v17 = vadd.f32 %v8631_v14, %v10296_v58  ;;  %v919_v19 = vpop.f32.mrb[5].mxu0 }
 0x1d9   : > { %v10318_v20 = vadd.f32 %v10296_v58, %v919_v19  ;;  %v8632_v23 = vpop.f32.mrb[6].mxu0 }
 0x1da   : > { %v7775_v24 = vmul.f32 -1.442695, %v10315_v17  ;;  %v10322_v26 = vadd.f32 %v8632_v23, %v10296_v58  ;;  %v10324_v29 = vpop.f32.mrb[7].mxu0 }
 0x1db   : > { %v7773_v30 = vmul.f32 -1.442695, %v10318_v20 }
 0x1dc   : > { %9548 = vpow2.f32 %v7775_v24  ;;  %v7776_v31 = vmul.f32 -1.442695, %v10322_v26 }
 0x1dd   : > { %9550 = vpow2.f32 %v7773_v30 }
 0x1de   : > { %v9541_v33 = vpop.eup %9540  ;;  %9552 = vpow2.f32 %v7776_v31 }
 0x1df   : > { %v9543_v36 = vpop.eup %9542  ;;  %v1167_v37 = vadd.f32 1.0, %v9541_v33  ;;  %v8635_v38 = vpop.f32.mrb[8].mxu0 }
 0x1e0   : > { %v9545_v42 = vpop.eup %9544  ;;  %v1165_v46 = vadd.f32 1.0, %v9543_v36  ;;  %v10329_v47 = vadd.f32 %v8635_v38, %v10296_v58  ;;  %v935_v51 = vpop.f32.mrb[9].mxu0 }
 0x1e1   : > { %v9547_v54 = vpop.eup %9546  ;;  %9554 = vrcp.f32 %v1167_v37  ;;  %v1168_v59 = vadd.f32 1.0, %v9545_v42  ;;  %v10332_v63 = vadd.f32 %v10296_v58, %v935_v51  ;;  %v8636_v1 = vpop.f32.mrb[10].mxu0 }
 0x1e2   : > { %9556 = vrcp.f32 %v1165_v46  ;;  %v1166_v2 = vadd.f32 1.0, %v9547_v54  ;;  %v7779_v6 = vmul.f32 -1.442695, %v10329_v47  ;;  %v10336_v7 = vadd.f32 %v8636_v1, %v10296_v58  ;;  %v938_v11 = vpop.f32.mrb[11].mxu0 }
 0x1e3   : > { %9558 = vrcp.f32 %v1168_v59  ;;  %v7777_v12 = vmul.f32 -1.442695, %v10332_v63  ;;  %v10340_v14 = vadd.f32 %v10296_v58, %v938_v11 }
 0x1e4   : > { %9560 = vrcp.f32 %v1166_v2  ;;  %v7780_v19 = vmul.f32 -1.442695, %v10336_v7 }
 0x1e5   : > { %9562 = vpow2.f32 %v7779_v6  ;;  %v7778_v23 = vmul.f32 -1.442695, %v10340_v14 }
 0x1e6   : > { %v9549_v24 = vpop.eup %9548  ;;  %9564 = vpow2.f32 %v7777_v12 }
 0x1e7   : > { %v9551_v30 = vpop.eup %9550  ;;  %v1171_v31 = vadd.f32 1.0, %v9549_v24  ;;  %9566 = vpow2.f32 %v7780_v19  ;;  %v8639_v33 = vpop.f32.mrb[12].mxu0  ;;  %v10361_v19 = vld [vmem:[%s12650_s5] ss:$0 sm:$0xff] }
 0x1e8   : > { %v9553_v36 = vpop.eup %9552  ;;  %v1169_v37 = vadd.f32 1.0, %v9551_v30  ;;  %9568 = vpow2.f32 %v7778_v23  ;;  %v10345_v38 = vadd.f32 %v8639_v33, %v10296_v58  ;;  %v951_v42 = vpop.f32.mrb[13].mxu0 }
 0x1e9   : > { %9570 = vrcp.f32 %v1171_v31  ;;  %v1172_v46 = vadd.f32 1.0, %v9553_v36  ;;  %v10348_v51 = vadd.f32 %v10296_v58, %v951_v42  ;;  %v8640_v54 = vpop.f32.mrb[14].mxu0 }
 0x1ea   : > { %9572 = vrcp.f32 %v1169_v37  ;;  %v7783_v59 = vmul.f32 -1.442695, %v10345_v38  ;;  %v10352_v1 = vadd.f32 %v8640_v54, %v10296_v58  ;;  %v954_v2 = vpop.f32.mrb[15].mxu0 }
 0x1eb   : > { %v9555_v6 = vpop.eup %9554  ;;  %v7781_v11 = vmul.f32 -1.442695, %v10348_v51  ;;  %v10356_v12 = vadd.f32 %v10296_v58, %v954_v2  ;;  %9574 = vrcp.f32 %v1172_v46 }
 0x1ec   : > { %v9557_v23 = vpop.eup %9556  ;;  %v1263_v24 = vmul.f32 %v9555_v6, %v10299_v60  ;;  %v7784_v30 = vmul.f32 -1.442695, %v10352_v1  ;;  %9576 = vpow2.f32 %v7783_v59 }
 0x1ed   : > { %v9559_v31 = vpop.eup %9558  ;;  %v1261_v33 = vmul.f32 %v9557_v23, %v10302_v0  ;;  %v7782_v36 = vmul.f32 -1.442695, %v10356_v12  ;;  %9578 = vpow2.f32 %v7781_v11 }
 0x1ee   : > { %v9561_v37 = vpop.eup %9560  ;;  %v1264_v42 = vmul.f32 %v9559_v31, %v10306_v5  ;;  %v1302_v54 = vmul.f32 %v10361_v19, %v1263_v24  ;;  %9580 = vpow2.f32 %v7784_v30 }
 0x1ef   : > { %v9563_v2 = vpop.eup %9562  ;;  %v1262_v40 = vmul.f32 %v9561_v37, %v10310_v10  ;;  %v8643_v60 = vpop.f32.mrb[16].mxu0  ;;  %v1300_v46 = vmul.f32 %v10361_v19, %v1261_v33  ;;  %9582 = vpow2.f32 %v7782_v36 }
 0x1f0   : > { %v9565_v6 = vpop.eup %9564  ;;  %v1175_v55 = vadd.f32 1.0, %v9563_v2  ;;  %v10372_v0 = vadd.f32 %v8643_v60, %v10296_v58  ;;  %v967_v59 = vpop.f32.mrb[17].mxu0  ;;  %v1339_v23 = vsel %vm1332_vm0, %v1302_v54, 0.0  ;;  %v1303_v30 = vmul.f32 %v10361_v19, %v1264_v42 }
 0x1f1   : > { %v9567_v5 = vpop.eup %9566  ;;  %v1173_v11 = vadd.f32 1.0, %v9565_v6  ;;  %v10376_v24 = vadd.f32 %v10296_v58, %v967_v59  ;;  %1340 = vadd.xlane.f32.xlu0 %v1339_v23  ;;  %v8644_v10 = vpop.f32.mrb[18].mxu0  ;;  %v1333_v31 = vsel %vm1332_vm0, %v1300_v46, 0.0 }
 0x1f2   : > { %v9569_v33 = vpop.eup %9568  ;;  %9584 = vrcp.f32 %v1175_v55  ;;  %v1176_v36 = vadd.f32 1.0, %v9567_v5  ;;  %v7787_v37 = vmul.f32 -1.442695, %v10372_v0  ;;  %v10382_v2 = vadd.f32 %v8644_v10, %v10296_v58  ;;  %v970_v54 = vpop.f32.mrb[19].mxu0 }
 0x1f3   : > { %v9571_v60 = vpop.eup %9570  ;;  %9586 = vrcp.f32 %v1173_v11  ;;  %v1174_v6 = vadd.f32 1.0, %v9569_v33  ;;  %v7785_v59 = vmul.f32 -1.442695, %v10376_v24  ;;  %v10386_v23 = vadd.f32 %v10296_v58, %v970_v54 }
 0x1f4   : > { %v9573_v42 = vpop.eup %9572  ;;  %v1267_v46 = vmul.f32 %v9571_v60, %v10315_v17  ;;  %9588 = vrcp.f32 %v1176_v36  ;;  %v7788_v55 = vmul.f32 -1.442695, %v10382_v2  ;;  %v1342_v5 = vsel %vm1332_vm0, %v1303_v30, 0.0 }
 0x1f5   : > { %v1265_v10 = vmul.f32 %v9573_v42, %v10318_v20  ;;  %9590 = vrcp.f32 %v1174_v6  ;;  %v7786_v35 = vmul.f32 -1.442695, %v10386_v23  ;;  %1343 = vadd.xlane.f32.xlu1 %v1342_v5  ;;  %1334 = vadd.xlane.f32.xlu0 %v1333_v31  ;;  %v1301_v11 = vmul.f32 %v10361_v19, %v1262_v40  ;;  %v9575_v33 = vpop.eup %9574 }
 0x1f6   : > { %9592 = vpow2.f32 %v7787_v37  ;;  %v1306_v54 = vmul.f32 %v10361_v19, %v1267_v46  ;;  %v9577_v50 = vpop.eup %9576  ;;  %v10397_v17 = vadd.f32 %v10296_v58, %v10324_v29  ;;  %v1268_v29 = vmul.f32 %v9575_v33, %v10322_v26 }
 0x1f7   : > { %9594 = vpow2.f32 %v7785_v59  ;;  %v1336_v30 = vsel %vm1332_vm0, %v1301_v11, 0.0  ;;  %v8647_v20 = vpop.f32.mrb[20].mxu0  ;;  %v1304_v36 = vmul.f32 %v10361_v19, %v1265_v10  ;;  %v9579_v60 = vpop.eup %9578  ;;  %v1179_v6 = vadd.f32 1.0, %v9577_v50 }
 0x1f8   : > { %9596 = vpow2.f32 %v7788_v55  ;;  %v10402_v40 = vadd.f32 %v8647_v20, %v10296_v58  ;;  %v983_v31 = vpop.f32.mrb[21].mxu0  ;;  %v10405_v37 = vsel %vm1332_vm0, %v1306_v54, 0.0  ;;  %v9581_v42 = vpop.eup %9580  ;;  %v1177_v46 = vadd.f32 1.0, %v9579_v60 }
 0x1f9   : > { %9598 = vpow2.f32 %v7786_v35  ;;  %1337 = vadd.xlane.f32.xlu1 %v1336_v30  ;;  %v10409_v59 = vadd.f32 %v10296_v58, %v983_v31  ;;  %v8648_v5 = vpop.f32.mrb[22].mxu0  ;;  %v9583_v10 = vpop.eup %9582  ;;  %v1180_v50 = vadd.f32 1.0, %v9581_v42  ;;  %v10421_v60 = vsel %vm1332_vm0, %v1304_v36, 0.0 }
 0x1fa   : > { %9600 = vrcp.f32 %v1179_v6  ;;  %v7791_v55 = vmul.f32 -1.442695, %v10402_v40  ;;  %v10413_v11 = vadd.f32 %v8648_v5, %v10296_v58  ;;  %v986_v54 = vpop.f32.mrb[23].mxu0  ;;  %v1178_v20 = vadd.f32 1.0, %v9583_v10 }
 0x1fb   : > { %9602 = vrcp.f32 %v1177_v46  ;;  %v7789_v26 = vmul.f32 -1.442695, %v10409_v59  ;;  %v10417_v35 = vadd.f32 %v10296_v58, %v986_v54  ;;  %v1307_v46 = vmul.f32 %v10361_v19, %v1268_v29 }
 0x1fc   : > { %v9585_v33 = vpop.eup %9584  ;;  %9604 = vrcp.f32 %v1180_v50  ;;  %v7792_v30 = vmul.f32 -1.442695, %v10413_v11  ;;  %v7774_v10 = vmul.f32 -1.442695, %v10397_v17 }
 0x1fd   : > { %v9587_v6 = vpop.eup %9586  ;;  %v1271_v31 = vmul.f32 %v9585_v33, %v10329_v47  ;;  %9606 = vrcp.f32 %v1178_v20  ;;  %v7790_v42 = vmul.f32 -1.442695, %v10417_v35  ;;  %v10430_v45 = vsel %vm1332_vm0, %v1307_v46, 0.0 }
 0x1fe   : > { %v9589_v5 = vpop.eup %9588  ;;  %v1269_v54 = vmul.f32 %v9587_v6, %v10332_v63  ;;  %9608 = vpow2.f32 %v7791_v55 }
 0x1ff   : > { %v9591_v50 = vpop.eup %9590  ;;  %v1272_v34 = vmul.f32 %v9589_v5, %v10336_v7  ;;  %9610 = vpow2.f32 %v7789_v26  ;;  %v8651_v36 = vpop.f32.mrb[24].mxu0  ;;  %v1310_v47 = vmul.f32 %v10361_v19, %v1271_v31 }
 0x200   : > { %v9593_v20 = vpop.eup %9592  ;;  %v1270_v33 = vmul.f32 %v9591_v50, %v10340_v14  ;;  %9612 = vpow2.f32 %v7792_v30  ;;  %v10435_v29 = vadd.f32 %v8651_v36, %v10296_v58  ;;  %v999_v28 = vpop.f32.mrb[25].mxu0  ;;  %v1308_v63 = vmul.f32 %v10361_v19, %v1269_v54 }
 0x201   : > { %v9595_v55 = vpop.eup %9594  ;;  %v1183_v6 = vadd.f32 1.0, %v9593_v20  ;;  %9614 = vpow2.f32 %v7790_v42  ;;  %v10439_v7 = vadd.f32 %v10296_v58, %v999_v28  ;;  %v8652_v26 = vpop.f32.mrb[26].mxu0  ;;  %v10442_v46 = vsel %vm1332_vm0, %v1310_v47, 0.0 }
 0x202   : > { %v9597_v31 = vpop.eup %9596  ;;  %9616 = vpow2.f32 %v7774_v10  ;;  %v1181_v14 = vadd.f32 1.0, %v9595_v55  ;;  %v10445_v30 = vadd.f32 %v8652_v26, %v10296_v58  ;;  %v1002_v5 = vpop.f32.mrb[27].mxu0  ;;  %v10448_v50 = vsel %vm1332_vm0, %v1308_v63, 0.0 }
 0x203   : > { %v9599_v54 = vpop.eup %9598  ;;  %9618 = vrcp.f32 %v1183_v6  ;;  %v1184_v42 = vadd.f32 1.0, %v9597_v31  ;;  %v7795_v28 = vmul.f32 -1.442695, %v10435_v29  ;;  %v10452_v36 = vadd.f32 %v10296_v58, %v1002_v5 }
 0x204   : > { %v9601_v47 = vpop.eup %9600  ;;  %9620 = vrcp.f32 %v1181_v14  ;;  %v1182_v20 = vadd.f32 1.0, %v9599_v54  ;;  %v7793_v10 = vmul.f32 -1.442695, %v10439_v7  ;;  %v1309_v55 = vmul.f32 %v10361_v19, %v1270_v33 }
 0x205   : > { %v9603_v26 = vpop.eup %9602  ;;  %v1275_v39 = vmul.f32 %v9601_v47, %v10345_v38  ;;  %9622 = vrcp.f32 %v1184_v42  ;;  %v7796_v63 = vmul.f32 -1.442695, %v10445_v30  ;;  %v1311_v6 = vmul.f32 %v10361_v19, %v1272_v34 }
 0x206   : > { %v9605_v31 = vpop.eup %9604  ;;  %v1273_v27 = vmul.f32 %v9603_v26, %v10348_v51  ;;  %9624 = vrcp.f32 %v1182_v20  ;;  %v7794_v5 = vmul.f32 -1.442695, %v10452_v36  ;;  %v10462_v14 = vsel %vm1332_vm0, %v1309_v55, 0.0 }
 0x207   : > { %v9607_v54 = vpop.eup %9606  ;;  %v1276_v33 = vmul.f32 %v9605_v31, %v10352_v1  ;;  %9626 = vpow2.f32 %v7795_v28  ;;  %v8655_v32 = vpop.f32.mrb[28].mxu0  ;;  %v10466_v38 = vsel %vm1332_vm0, %v1311_v6, 0.0  ;;  %v1314_v42 = vmul.f32 %v10361_v19, %v1275_v39 }
 0x208   : > { %v9609_v34 = vpop.eup %9608  ;;  %v1274_v47 = vmul.f32 %v9607_v54, %v10356_v12  ;;  %9628 = vpow2.f32 %v7793_v10  ;;  %v10471_v51 = vadd.f32 %v8655_v32, %v10296_v58  ;;  %v1015_v20 = vpop.f32.mrb[29].mxu0  ;;  %v1312_v55 = vmul.f32 %v10361_v19, %v1273_v27 }
 0x209   : > { %v9611_v26 = vpop.eup %9610  ;;  %v1187_v22 = vadd.f32 1.0, %v9609_v34  ;;  %9630 = vpow2.f32 %v7796_v63  ;;  %v10475_v1 = vadd.f32 %v10296_v58, %v1015_v20  ;;  %v8656_v28 = vpop.f32.mrb[30].mxu0  ;;  %v10478_v6 = vsel %vm1332_vm0, %v1314_v42, 0.0 }
 0x20a   : > { %v9613_v39 = vpop.eup %9612  ;;  %v1185_v31 = vadd.f32 1.0, %v9611_v26  ;;  %9632 = vpow2.f32 %v7794_v5  ;;  %v10481_v12 = vadd.f32 %v8656_v28, %v10296_v58  ;;  %v1018_v32 = vpop.f32.mrb[31].mxu0  ;;  %v7799_v54 = vmul.f32 -1.442695, %v10471_v51 }
 0x20b   : > { %v9615_v10 = vpop.eup %9614  ;;  %9634 = vrcp.f32 %v1187_v22  ;;  %v1188_v27 = vadd.f32 1.0, %v9613_v39  ;;  %v10485_v63 = vadd.f32 %v10296_v58, %v1018_v32  ;;  %v7797_v42 = vmul.f32 -1.442695, %v10475_v1 }
 0x20c   : > { %v9617_v34 = vpop.eup %9616  ;;  %9636 = vrcp.f32 %v1185_v31  ;;  %v1186_v20 = vadd.f32 1.0, %v9615_v10  ;;  %v10489_v26 = vsel %vm1332_vm0, %v1312_v55, 0.0  ;;  %v7800_v28 = vmul.f32 -1.442695, %v10481_v12 }
 0x20d   : > { %v9619_v5 = vpop.eup %9618  ;;  %9638 = vrcp.f32 %v1188_v27  ;;  %v1313_v22 = vmul.f32 %v10361_v19, %v1274_v47  ;;  %v1315_v39 = vmul.f32 %v10361_v19, %v1276_v33  ;;  %v7798_v31 = vmul.f32 -1.442695, %v10485_v63 }
 0x20e   : > { %v9621_v25 = vpop.eup %9620  ;;  %v1279_v58 = vmul.f32 %v9619_v5, %v10372_v0  ;;  %9640 = vrcp.f32 %v1186_v20 }
 0x20f   : > { %v9623_v32 = vpop.eup %9622  ;;  %v1277_v10 = vmul.f32 %v9621_v25, %v10376_v24  ;;  %9642 = vpow2.f32 %v7799_v54  ;;  %v10498_v55 = vsel %vm1332_vm0, %v1313_v22, 0.0  ;;  %v10501_v27 = vsel %vm1332_vm0, %v1315_v39, 0.0 }
 0x210   : > { %v9625_v57 = vpop.eup %9624  ;;  %v1280_v47 = vmul.f32 %v9623_v32, %v10382_v2  ;;  %9644 = vpow2.f32 %v7797_v42  ;;  %v1318_v33 = vmul.f32 %v10361_v19, %v1279_v58 }
 0x211   : > { %v9627_v0 = vpop.eup %9626  ;;  %v1278_v20 = vmul.f32 %v9625_v57, %v10386_v23  ;;  %9646 = vpow2.f32 %v7800_v28  ;;  %v1316_v5 = vmul.f32 %v10361_v19, %v1277_v10  ;;  %v1170_v23 = vadd.f32 1.0, %v9617_v34 }
 0x212   : > { %v9629_v25 = vpop.eup %9628  ;;  %v1191_v24 = vadd.f32 1.0, %v9627_v0  ;;  %9648 = vpow2.f32 %v7798_v31  ;;  %v1387_v54 = vsel %vm1332_vm0, %v1318_v33, 0.0  ;;  %v1319_v22 = vmul.f32 %v10361_v19, %v1280_v47 }
 0x213   : > { %v9631_v39 = vpop.eup %9630  ;;  %v1189_v9 = vadd.f32 1.0, %v9629_v25  ;;  %1388 = vadd.xlane.f32.xlu1 %v1387_v54  ;;  %v1381_v2 = vsel %vm1332_vm0, %v1316_v5, 0.0  ;;  %v1317_v32 = vmul.f32 %v10361_v19, %v1278_v20 }
 0x214   : > { %v9633_v42 = vpop.eup %9632  ;;  %9650 = vrcp.f32 %v1191_v24  ;;  %v1192_v58 = vadd.f32 1.0, %v9631_v39  ;;  %1382 = vadd.xlane.f32.xlu0 %v1381_v2  ;;  %v1390_v47 = vsel %vm1332_vm0, %v1319_v22, 0.0 }
 0x215   : > { %v9635_v57 = vpop.eup %9634  ;;  %9652 = vrcp.f32 %v1189_v9  ;;  %v1190_v28 = vadd.f32 1.0, %v9633_v42  ;;  %v1384_v24 = vsel %vm1332_vm0, %v1317_v32, 0.0 }
 0x216   : > { %v9637_v31 = vpop.eup %9636  ;;  %v1283_v10 = vmul.f32 %v9635_v57, %v10402_v40  ;;  %9654 = vrcp.f32 %v1192_v58 }
 0x217   : > { %v9639_v33 = vpop.eup %9638  ;;  %v1281_v0 = vmul.f32 %v9637_v31, %v10409_v59  ;;  %9656 = vrcp.f32 %v1190_v28  ;;  %1391 = vadd.xlane.f32.xlu1 %v1390_v47 }
 0x218   : > { %v9641_v5 = vpop.eup %9640  ;;  %v1284_v25 = vmul.f32 %v9639_v33, %v10413_v11  ;;  %v1322_v34 = vmul.f32 %v10361_v19, %v1283_v10  ;;  %9658 = vrcp.f32 %v1170_v23 }
 0x219   : > { %v9643_v9 = vpop.eup %9642  ;;  %v1282_v20 = vmul.f32 %v9641_v5, %v10417_v35  ;;  %v1320_v39 = vmul.f32 %v10361_v19, %v1281_v0 }
 0x21a   : > { %v9645_v40 = vpop.eup %9644  ;;  %v1195_v54 = vadd.f32 1.0, %v9643_v9  ;;  %v1399_v22 = vsel %vm1332_vm0, %v1322_v34, 0.0  ;;  %v1323_v59 = vmul.f32 %v10361_v19, %v1284_v25 }
 0x21b   : > { %v9647_v2 = vpop.eup %9646  ;;  %v1193_v42 = vadd.f32 1.0, %v9645_v40  ;;  %1385 = vadd.xlane.f32.xlu1 %v1384_v24  ;;  %1400 = vadd.xlane.f32.xlu0 %v1399_v22  ;;  %v1393_v23 = vsel %vm1332_vm0, %v1320_v39, 0.0  ;;  %v1321_v32 = vmul.f32 %v10361_v19, %v1282_v20 }
 0x21c   : > { %v9649_v11 = vpop.eup %9648  ;;  %9660 = vrcp.f32 %v1195_v54  ;;  %v1196_v58 = vadd.f32 1.0, %v9647_v2  ;;  %v1402_v28 = vsel %vm1332_vm0, %v1323_v59, 0.0  ;;  %v9993_v2 = vmov 0  }
 0x21d   : > { %9662 = vrcp.f32 %v1193_v42  ;;  %v1194_v57 = vadd.f32 1.0, %v9649_v11  ;;  %v1396_v9 = vsel %vm1332_vm0, %v1321_v32, 0.0  ;;  %1932 = vst [vmem:[#allocation2] sm:$0xf] %v9993_v2  ;;  %1933 = vst [vmem:[#allocation2 + $0x4] sm:$0xf] %v9993_v2  ;;  %9403 = vset.pattern.permute.xlu0 %v9993_v2  ;;  %9402 = vset.pattern.permute.xlu1 %v9993_v2 }
 0x21e   : > { %v9651_v35 = vpop.eup %9650  ;;  %9664 = vrcp.f32 %v1196_v58  ;;  %1934 = vst [vmem:[#allocation2 + $0x8] sm:$0x1] %v9993_v2  ;;  %1935 = vst [vmem:[#allocation2 + $0xc] sm:$0xf] %v9993_v2 }
 0x21f   : > { %v9653_v31 = vpop.eup %9652  ;;  %v1287_v10 = vmul.f32 %v9651_v35, %v10435_v29  ;;  %9666 = vrcp.f32 %v1194_v57  ;;  %1394 = vadd.xlane.f32.xlu0 %v1393_v23  ;;  %1403 = vadd.xlane.f32.xlu1 %v1402_v28  ;;  %1936 = vst [vmem:[#allocation2 + $0x10] sm:$0xf] %v9993_v2  ;;  %1937 = vst [vmem:[#allocation2 + $0x14] sm:$0x1] %v9993_v2 }
 0x220   : > { %v9655_v47 = vpop.eup %9654  ;;  %v1285_v33 = vmul.f32 %v9653_v31, %v10439_v7  ;;  %1938 = vst [vmem:[#allocation2 + $0x18] sm:$0xf] %v9993_v2  ;;  %1939 = vst [vmem:[#allocation2 + $0x1c] sm:$0xf] %v9993_v2 }
 0x221   : > { %v9657_v0 = vpop.eup %9656  ;;  %v1288_v5 = vmul.f32 %v9655_v47, %v10445_v30  ;;  %v1326_v25 = vmul.f32 %v10361_v19, %v1287_v10  ;;  %1940 = vst [vmem:[#allocation2 + $0x20] sm:$0x1] %v9993_v2  ;;  %1941 = vst [vmem:[#allocation2 + $0x24] sm:$0xf] %v9993_v2 }
 0x222   : > { %v1286_v34 = vmul.f32 %v9657_v0, %v10452_v36  ;;  %v9659_v24 = vpop.eup %9658  ;;  %v1324_v29 = vmul.f32 %v10361_v19, %v1285_v33  ;;  %1942 = vst [vmem:[#allocation2 + $0x28] sm:$0xf] %v9993_v2  ;;  %1943 = vst [vmem:[#allocation2 + $0x2c] sm:$0x1] %v9993_v2 }
 0x223   : > { %1397 = vadd.xlane.f32.xlu1 %v1396_v9  ;;  %v1411_v20 = vsel %vm1332_vm0, %v1326_v25, 0.0  ;;  %v1327_v40 = vmul.f32 %v10361_v19, %v1288_v5  ;;  %v10534_v7 = vmul.f32 %v9659_v24, %v10397_v17  ;;  %1944 = vst [vmem:[#allocation2 + $0x30] sm:$0xf] %v9993_v2  ;;  %1945 = vst [vmem:[#allocation2 + $0x34] sm:$0xf] %v9993_v2 }
 0x224   : > { %1412 = vadd.xlane.f32.xlu0 %v1411_v20  ;;  %v10538_v22 = vmul.f32 %v10361_v19, %v1286_v34  ;;  %v1405_v59 = vsel %vm1332_vm0, %v1324_v29, 0.0  ;;  %1946 = vst [vmem:[#allocation2 + $0x38] sm:$0x1] %v9993_v2  ;;  %1947 = vst [vmem:[#allocation2 + $0x3c] sm:$0xf] %v9993_v2 }
 0x225   : > { %v1414_v30 = vsel %vm1332_vm0, %v1327_v40, 0.0  ;;  %1948 = vst [vmem:[#allocation2 + $0x40] sm:$0xf] %v9993_v2  ;;  %1949 = vst [vmem:[#allocation2 + $0x44] sm:$0x1] %v9993_v2  ;;  %v1305_v23 = vmul.f32 %v10361_v19, %v10534_v7 }
 0x226   : > { %v9661_v54 = vpop.eup %9660  ;;  %1950 = vst [vmem:[#allocation2 + $0x48] sm:$0xf] %v9993_v2  ;;  %1951 = vst [vmem:[#allocation2 + $0x4c] sm:$0xf] %v9993_v2  ;;  %v1408_v35 = vsel %vm1332_vm0, %v10538_v22, 0.0 }
 0x227   : > { %v9663_v36 = vpop.eup %9662  ;;  %v10541_v39 = vmul.f32 %v9661_v54, %v10471_v51  ;;  %1415 = vadd.xlane.f32.xlu1 %v1414_v30  ;;  %1952 = vst [vmem:[#allocation2 + $0x50] sm:$0x1] %v9993_v2  ;;  %1953 = vst [vmem:[#allocation2 + $0x54] sm:$0xf] %v9993_v2 }
 0x228   : > { %1954 = vst [vmem:[#allocation2 + $0x58] sm:$0xf] %v9993_v2  ;;  %1955 = vst [vmem:[#allocation2 + $0x5c] sm:$0x1] %v9993_v2  ;;  %v9665_v17 = vpop.eup %9664  ;;  %v1289_v51 = vmul.f32 %v9663_v36, %v10475_v1  ;;  %1406 = vadd.xlane.f32.xlu0 %v1405_v59 }
 0x229   : > { %1956 = vst [vmem:[#allocation2 + $0x60] sm:$0xf] %v9993_v2  ;;  %1957 = vst [vmem:[#allocation2 + $0x64] sm:$0xf] %v9993_v2  ;;  %v9667_v42 = vpop.eup %9666  ;;  %v1292_v11 = vmul.f32 %v9665_v17, %v10481_v12  ;;  %v1330_v58 = vmul.f32 %v10361_v19, %v10541_v39 }
 0x22a   : > { %1958 = vst [vmem:[#allocation2 + $0x68] sm:$0x1] %v9993_v2  ;;  %1959 = vst [vmem:[#allocation2 + $0x6c] sm:$0xf] %v9993_v2  ;;  %v1290_v57 = vmul.f32 %v9667_v42, %v10485_v63  ;;  %v1328_v1 = vmul.f32 %v10361_v19, %v1289_v51  ;;  %v1348_v63 = vsel %vm1332_vm0, %v1305_v23, 0.0 }
 0x22b   : > { %1960 = vst [vmem:[#allocation2 + $0x70] sm:$0xf] %v9993_v2  ;;  %1961 = vst [vmem:[#allocation2 + $0x74] sm:$0x1] %v9993_v2  ;;  %1409 = vadd.xlane.f32.xlu1 %v1408_v35  ;;  %v1423_v28 = vsel %vm1332_vm0, %v1330_v58, 0.0  ;;  %v1331_v32 = vmul.f32 %v10361_v19, %v1292_v11 }
 0x22c   : > { %1962 = vst [vmem:[#allocation2 + $0x78] sm:$0xf] %v9993_v2  ;;  %1963 = vst [vmem:[#allocation2 + $0x7c] sm:$0xf] %v9993_v2  ;;  %1424 = vadd.xlane.f32.xlu0 %v1423_v28  ;;  %v1329_v12 = vmul.f32 %v10361_v19, %v1290_v57  ;;  %v1417_v47 = vsel %vm1332_vm0, %v1328_v1, 0.0 }
 0x22d   : > { %1964 = vst [vmem:[#allocation2 + $0x80] sm:$0x1] %v9993_v2  ;;  %1965 = vst [vmem:[#allocation2 + $0x84] sm:$0xf] %v9993_v2  ;;  %v1426_v31 = vsel %vm1332_vm0, %v1331_v32, 0.0 }
 0x22e   : > { %1966 = vst [vmem:[#allocation2 + $0x88] sm:$0xf] %v9993_v2  ;;  %1967 = vst [vmem:[#allocation2 + $0x8c] sm:$0x1] %v9993_v2  ;;  %v1420_v10 = vsel %vm1332_vm0, %v1329_v12, 0.0 }
 0x22f   : > { %1968 = vst [vmem:[#allocation2 + $0x90] sm:$0xf] %v9993_v2  ;;  %1969 = vst [vmem:[#allocation2 + $0x94] sm:$0xf] %v9993_v2  ;;  %1349 = vadd.xlane.f32.xlu1 %v1348_v63 }
 0x230   : > { %1970 = vst [vmem:[#allocation2 + $0x98] sm:$0x1] %v9993_v2  ;;  %1971 = vst [vmem:[#allocation2 + $0x9c] sm:$0xf] %v9993_v2  ;;  %1418 = vadd.xlane.f32.xlu0 %v1417_v47 }
 0x231   : > { %1972 = vst [vmem:[#allocation2 + $0xa0] sm:$0xf] %v9993_v2  ;;  %1973 = vst [vmem:[#allocation2 + $0xa4] sm:$0x1] %v9993_v2 }
 0x232   : > { %1974 = vst [vmem:[#allocation2 + $0xa8] sm:$0xf] %v9993_v2  ;;  %1975 = vst [vmem:[#allocation2 + $0xac] sm:$0xf] %v9993_v2 }
 0x233   : > { %1976 = vst [vmem:[#allocation2 + $0xb0] sm:$0x1] %v9993_v2  ;;  %1977 = vst [vmem:[#allocation2 + $0xb4] sm:$0xf] %v9993_v2  ;;  %1427 = vadd.xlane.f32.xlu1 %v1426_v31 }
 0x234   : > { %1978 = vst [vmem:[#allocation2 + $0xb8] sm:$0xf] %v9993_v2  ;;  %1979 = vst [vmem:[#allocation2 + $0xbc] sm:$0x1] %v9993_v2  ;;  %1346 = vadd.xlane.f32.xlu0 %v10421_v60 }
 0x235   : > { %1980 = vst [vmem:[#allocation2 + $0xc0] sm:$0xf] %v9993_v2  ;;  %1981 = vst [vmem:[#allocation2 + $0xc4] sm:$0xf] %v9993_v2 }
 0x236   : > { %1982 = vst [vmem:[#allocation2 + $0xc8] sm:$0x1] %v9993_v2  ;;  %1983 = vst [vmem:[#allocation2 + $0xcc] sm:$0xf] %v9993_v2 }
 0x237   : > { %1984 = vst [vmem:[#allocation2 + $0xd0] sm:$0xf] %v9993_v2  ;;  %1985 = vst [vmem:[#allocation2 + $0xd4] sm:$0x1] %v9993_v2  ;;  %1421 = vadd.xlane.f32.xlu1 %v1420_v10 }
 0x238   : > { %1352 = vadd.xlane.f32.xlu0 %v10405_v37  ;;  %v10572_v37 = vld [vmem:[#allocation3] ss:$0 sm:$0xff] }
 0x23b   : > { %1355 = vadd.xlane.f32.xlu1 %v10430_v45 }
 0x23c   : > { %1358 = vadd.xlane.f32.xlu0 %v10448_v50 }
 0x23f   : > { %1361 = vadd.xlane.f32.xlu1 %v10462_v14 }
 0x240   : > { %1364 = vadd.xlane.f32.xlu0 %v10442_v46 }
 0x243   : > { %1367 = vadd.xlane.f32.xlu1 %v10466_v38 }
 0x244   : > { %1370 = vadd.xlane.f32.xlu0 %v10489_v26 }
 0x247   : > { %1373 = vadd.xlane.f32.xlu1 %v10498_v55 }
 0x248   : > { %1376 = vadd.xlane.f32.xlu0 %v10478_v6 }
 0x24b   : > { %1379 = vadd.xlane.f32.xlu1 %v10501_v27 }
 0x27e   : > { %v1341_v19 = vpop.xlane.xlu0 %1340 }
 0x27f   : > { %v1438_v27 = vadd.f32 %v10572_v37, %v1341_v19 }
 0x281   : > { %v7805_v25 = vmul.f32 -1.442695, %v1438_v27 }
 0x282   : > { %v1344_v45 = vpop.xlane.xlu1 %1343  ;;  %v1335_v60 = vpop.xlane.xlu0 %1334 }
 0x283   : > { %v1436_v50 = vadd.f32 %v10572_v37, %v1335_v60  ;;  %v1439_v5 = vadd.f32 %v10572_v37, %v1344_v45 }
 0x285   : > { %v7803_v14 = vmul.f32 -1.442695, %v1436_v50  ;;  %v7806_v34 = vmul.f32 -1.442695, %v1439_v5 }
 0x286   : > { %v1338_v33 = vpop.xlane.xlu1 %1337 }
 0x287   : > { %v1437_v46 = vadd.f32 %v10572_v37, %v1338_v33  ;;  %9668 = vpow2.f32 %v7803_v14 }
 0x289   : > { %v7804_v38 = vmul.f32 -1.442695, %v1437_v46 }
 0x28b   : > { %9670 = vpow2.f32 %v7804_v38 }
 0x291   : > { %v9669_v26 = vpop.eup %9668 }
 0x292   : > { %v1564_v55 = vadd.f32 1.0, %v9669_v26 }
 0x294   : > { %9672 = vrcp.f32 %v1564_v55 }
 0x295   : > { %v9671_v0 = vpop.eup %9670 }
 0x296   : > { %v1565_v6 = vadd.f32 1.0, %v9671_v0 }
 0x298   : > { %9674 = vrcp.f32 %v1565_v6 }
 0x299   : > { %9676 = vpow2.f32 %v7805_v25 }
 0x29a   : > { %9678 = vpow2.f32 %v7806_v34 }
 0x29e   : > { %v10578_v24 = vpop.eup %9672 }
 0x2a0   : > { %v1389_v9 = vpop.xlane.xlu1 %1388 }
 0x2a1   : > { %v1454_v20 = vadd.f32 %v10572_v37, %v1389_v9  ;;  %v1383_v29 = vpop.xlane.xlu0 %1382 }
 0x2a2   : > { %v10581_v40 = vpop.eup %9674  ;;  %v1452_v54 = vadd.f32 %v10572_v37, %v1383_v29 }
 0x2a3   : > { %v7821_v7 = vmul.f32 -1.442695, %v1454_v20  ;;  %v1660_v30 = vpack.c.bf16 %v10581_v40, %v10578_v24  ;;  %v9677_v51 = vpop.eup %9676 }
 0x2a4   : > { %v7819_v22 = vmul.f32 -1.442695, %v1452_v54  ;;  %v1392_v36 = vpop.xlane.xlu1 %1391  ;;  %v9679_v58 = vpop.eup %9678  ;;  %v1566_v23 = vadd.f32 1.0, %v9677_v51 }
 0x2a5   : > { %9680 = vpow2.f32 %v7821_v7  ;;  %v1455_v39 = vadd.f32 %v10572_v37, %v1392_v36  ;;  %1678 = vperm.xlu1 %9402, %v1660_v30   ;;  %v1567_v31 = vadd.f32 1.0, %v9679_v58 }
 0x2a6   : > { %9682 = vpow2.f32 %v7819_v22 }
 0x2a7   : > { %v7822_v59 = vmul.f32 -1.442695, %v1455_v39 }
 0x2a8   : > { %v1386_v2 = vpop.xlane.xlu1 %1385  ;;  %v1401_v17 = vpop.xlane.xlu0 %1400 }
 0x2a9   : > { %9684 = vpow2.f32 %v7822_v59  ;;  %v1453_v42 = vadd.f32 %v10572_v37, %v1386_v2  ;;  %v1458_v11 = vadd.f32 %v10572_v37, %v1401_v17 }
 0x2ab   : > { %v7820_v57 = vmul.f32 -1.442695, %v1453_v42  ;;  %v7825_v35 = vmul.f32 -1.442695, %v1458_v11 }
 0x2ac   : > { %v1404_v28 = vpop.xlane.xlu1 %1403  ;;  %v1395_v1 = vpop.xlane.xlu0 %1394 }
 0x2ad   : > { %9686 = vpow2.f32 %v7820_v57  ;;  %v1459_v32 = vadd.f32 %v10572_v37, %v1404_v28  ;;  %v1456_v12 = vadd.f32 %v10572_v37, %v1395_v1 }
 0x2ae   : > { %9688 = vpow2.f32 %v7825_v35 }
 0x2af   : > { %v9681_v63 = vpop.eup %9680  ;;  %v7826_v10 = vmul.f32 -1.442695, %v1459_v32  ;;  %9690 = vrcp.f32 %v1566_v23  ;;  %v7823_v19 = vmul.f32 -1.442695, %v1456_v12 }
 0x2b0   : > { %v1582_v47 = vadd.f32 1.0, %v9681_v63  ;;  %v1398_v45 = vpop.xlane.xlu1 %1397  ;;  %v9683_v60 = vpop.eup %9682 }
 0x2b1   : > { %9692 = vpow2.f32 %v7826_v10  ;;  %v1457_v50 = vadd.f32 %v10572_v37, %v1398_v45  ;;  %v1413_v14 = vpop.xlane.xlu0 %1412  ;;  %v1580_v26 = vadd.f32 1.0, %v9683_v60 }
 0x2b2   : > { %9694 = vrcp.f32 %v1567_v31  ;;  %v1462_v33 = vadd.f32 %v10572_v37, %v1413_v14 }
 0x2b3   : > { %v9685_v46 = vpop.eup %9684  ;;  %9696 = vrcp.f32 %v1582_v47  ;;  %v7824_v38 = vmul.f32 -1.442695, %v1457_v50 }
 0x2b4   : > { %v1583_v55 = vadd.f32 1.0, %v9685_v46  ;;  %9698 = vpow2.f32 %v7823_v19  ;;  %v7829_v0 = vmul.f32 -1.442695, %v1462_v33  ;;  %v1416_v6 = vpop.xlane.xlu1 %1415 }
 0x2b5   : > { %9700 = vpow2.f32 %v7824_v38  ;;  %v1463_v27 = vadd.f32 %v10572_v37, %v1416_v6  ;;  %v1407_v5 = vpop.xlane.xlu0 %1406  ;;  %v1773_v38 = vsub.f32 1.0, %v10581_v40 }
 0x2b6   : > { %9702 = vrcp.f32 %v1583_v55  ;;  %v1460_v25 = vadd.f32 %v10572_v37, %v1407_v5 }
 0x2b7   : > { %v9687_v34 = vpop.eup %9686  ;;  %9704 = vpow2.f32 %v7829_v0  ;;  %v7830_v9 = vmul.f32 -1.442695, %v1463_v27 }
 0x2b8   : > { %9706 = vrcp.f32 %v1580_v26  ;;  %v1581_v20 = vadd.f32 1.0, %v9687_v34  ;;  %v7827_v29 = vmul.f32 -1.442695, %v1460_v25  ;;  %v1410_v54 = vpop.xlane.xlu1 %1409  ;;  %v9689_v7 = vpop.eup %9688 }
 0x2b9   : > { %9708 = vpow2.f32 %v7830_v9  ;;  %v1461_v30 = vadd.f32 %v10572_v37, %v1410_v54  ;;  %v1425_v22 = vpop.xlane.xlu0 %1424  ;;  %v10596_v36 = vpop.eup %9690  ;;  %v1586_v51 = vadd.f32 1.0, %v9689_v7  ;;  %v1772_v54 = vsub.f32 1.0, %v10578_v24 }
 0x2ba   : > { %9710 = vrcp.f32 %v1581_v20  ;;  %v1466_v39 = vadd.f32 %v10572_v37, %v1425_v22 }
 0x2bb   : > { %v9693_v59 = vpop.eup %9692  ;;  %v7828_v2 = vmul.f32 -1.442695, %v1461_v30  ;;  %9712 = vpow2.f32 %v7827_v29 }
 0x2bc   : > { %v10599_v17 = vpop.eup %9694  ;;  %v1350_v42 = vpop.xlane.xlu1 %1349  ;;  %v7833_v58 = vmul.f32 -1.442695, %v1466_v39  ;;  %v1587_v23 = vadd.f32 1.0, %v9693_v59  ;;  %v9420_v39 = vld [vmem:[%s12652_s7 + $0xc0] sm:$0xff]  }
 0x2bd   : > { %v9697_v11 = vpop.eup %9696  ;;  %9714 = vpow2.f32 %v7828_v2  ;;  %v1419_v57 = vpop.xlane.xlu0 %1418  ;;  %v1661_v46 = vpack.c.bf16 %v10599_v17, %v10596_v36  ;;  %v1441_v30 = vadd.f32 %v10572_v37, %v1350_v42  ;;  %9089 = vmatprep.subr.bf16.mxu1 %v9420_v39 }
 0x2be   : > { %v9699_v35 = vpop.eup %9698  ;;  %v1464_v28 = vadd.f32 %v10572_v37, %v1419_v57  ;;  %9716 = vrcp.f32 %v1586_v51  ;;  %v1790_v29 = vsub.f32 1.0, %v9697_v11  ;;  %9097 = vmatpush3.bf16.msra.mxu1 %v9420_v39 }
 0x2bf   : > { %v9701_v1 = vpop.eup %9700  ;;  %9718 = vpow2.f32 %v7833_v58  ;;  %v1584_v55 = vadd.f32 1.0, %v9699_v35  ;;  %v1804_v58 = vpack.c.bf16 %v1773_v38, %v1772_v54 }
 0x2c0   : > { %v9703_v32 = vpop.eup %9702  ;;  %v1585_v12 = vadd.f32 1.0, %v9701_v1  ;;  %v1428_v31 = vpop.xlane.xlu1 %1427  ;;  %v7831_v10 = vmul.f32 -1.442695, %v1464_v28  ;;  %9720 = vrcp.f32 %v1587_v23  ;;  %v7808_v28 = vmul.f32 -1.442695, %v1441_v30  ;;  %v9423_v30 = vld [vmem:[%s12652_s7 + $0x48] sm:$0xff]  }
 0x2c1   : > { %v9705_v63 = vpop.eup %9704  ;;  %v1467_v47 = vadd.f32 %v10572_v37, %v1428_v31  ;;  %v1347_v19 = vpop.xlane.xlu0 %1346  ;;  %v1669_v45 = vpack.c.bf16 %v9703_v32, %v9697_v11  ;;  %v1791_v27 = vsub.f32 1.0, %v9703_v32 }
 0x2c2   : > { %v9707_v60 = vpop.eup %9706  ;;  %v1590_v50 = vadd.f32 1.0, %v9705_v63  ;;  %9722 = vrcp.f32 %v1585_v12  ;;  %v1440_v5 = vadd.f32 %v10572_v37, %v1347_v19  ;;  %v9422_v63 = vld [vmem:[%s12652_s7 + $0xc8] sm:$0xff]  }
 0x2c3   : > { %v9709_v14 = vpop.eup %9708  ;;  %v7834_v33 = vmul.f32 -1.442695, %v1467_v47  ;;  %1723 = vperm.xlu1 %9402, %v1669_v45   ;;  %v1813_v51 = vpack.c.bf16 %v1791_v27, %v1790_v29  ;;  %v1788_v32 = vsub.f32 1.0, %v9707_v60  ;;  %9090 = vmatprep.subr.bf16.mxu1 %v9422_v63 }
 0x2c4   : > { %v9711_v26 = vpop.eup %9710  ;;  %9724 = vrcp.f32 %v1590_v50  ;;  %v1591_v0 = vadd.f32 1.0, %v9709_v14  ;;  %v1422_v6 = vpop.xlane.xlu1 %1421  ;;  %v7807_v11 = vmul.f32 -1.442695, %v1440_v5  ;;  %v9421_v14 = vld [vmem:[%s12652_s7 + $0x40] sm:$0xff]   ;;  %9098 = vmatpush3.bf16.msra.mxu1 %v9422_v63  ;;  %v9425_v63 = vld [vmem:[%s12652_s7 + $0x50] sm:$0xff]  }
 0x2c5   : > { %9726 = vpow2.f32 %v7831_v10  ;;  %v1465_v25 = vadd.f32 %v10572_v37, %v1422_v6  ;;  %v1353_v34 = vpop.xlane.xlu0 %1352  ;;  %v1668_v9 = vpack.c.bf16 %v9711_v26, %v9707_v60  ;;  %v9713_v20 = vpop.eup %9712  ;;  %v1789_v35 = vsub.f32 1.0, %v9711_v26  ;;  %8657 = vmatprep.subr.bf16.mxu0 %v9421_v14 }
 0x2c6   : > { %9728 = vrcp.f32 %v1591_v0  ;;  %v1588_v40 = vadd.f32 1.0, %v9713_v20  ;;  %v1442_v1 = vadd.f32 %v10572_v37, %v1353_v34  ;;  %8658 = vmatpush3.bf16.msra.mxu0 %v9421_v14  ;;  %v9424_v20 = vld [vmem:[%s12652_s7 + $0xd0] sm:$0xff]  }
 0x2c7   : > { %v9715_v7 = vpop.eup %9714  ;;  %9730 = vpow2.f32 %v7834_v33  ;;  %v7832_v22 = vmul.f32 -1.442695, %v1465_v25  ;;  %1683 = vperm.xlu1 %9402, %v1661_v46   ;;  %1718 = vperm.xlu0 %9403, %v1668_v9   ;;  %v1812_v50 = vpack.c.bf16 %v1789_v35, %v1788_v32  ;;  %v9426_v32 = vld [vmem:[%s12652_s7 + $0xd8] sm:$0xff]  }
 0x2c8   : > { %9732 = vrcp.f32 %v1584_v55  ;;  %v1589_v59 = vadd.f32 1.0, %v9715_v7  ;;  %v1356_v2 = vpop.xlane.xlu1 %1355  ;;  %v10614_v42 = vpop.eup %9716  ;;  %v7809_v26 = vmul.f32 -1.442695, %v1442_v1  ;;  %9091 = vmatprep.subr.bf16.mxu1 %v9424_v20  ;;  %8659 = vmatprep.subr.bf16.mxu0 %v9423_v30 }
 0x2c9   : > { %9734 = vrcp.f32 %v1588_v40  ;;  %v1443_v24 = vadd.f32 %v10572_v37, %v1356_v2  ;;  %v1359_v57 = vpop.xlane.xlu0 %1358  ;;  %v9719_v23 = vpop.eup %9718  ;;  %9099 = vmatpush3.bf16.msra.mxu1 %v9424_v20 }
 0x2ca   : > { %9736 = vrcp.f32 %v1589_v59  ;;  %v10617_v12 = vpop.eup %9720  ;;  %v1594_v33 = vadd.f32 1.0, %v9719_v23  ;;  %v1444_v46 = vadd.f32 %v10572_v37, %v1359_v57  ;;  %8660 = vmatpush3.bf16.msra.mxu0 %v9423_v30  ;;  %9092 = vmatprep.subr.bf16.mxu1 %v9426_v32 }
 0x2cb   : > { %9738 = vpow2.f32 %v7832_v22  ;;  %1867 = vperm.xlu1 %9402, %v1813_v51   ;;  %1822 = vperm.xlu0 %9403, %v1804_v58   ;;  %v7810_v47 = vmul.f32 -1.442695, %v1443_v24  ;;  %v1671_v27 = vpack.c.bf16 %v10617_v12, %v10614_v42  ;;  %v1795_v57 = vsub.f32 1.0, %v10617_v12 }
 0x2cc   : > { %v1362_v31 = vpop.xlane.xlu1 %1361  ;;  %v10622_v10 = vpop.eup %9722  ;;  %9740 = vpow2.f32 %v7807_v11  ;;  %v7811_v7 = vmul.f32 -1.442695, %v1444_v46  ;;  %v1794_v12 = vsub.f32 1.0, %v10614_v42  ;;  %8661 = vmatprep.subr.bf16.mxu0 %v9425_v63 }
 0x2cd   : > { %v1445_v19 = vadd.f32 %v10572_v37, %v1362_v31  ;;  %v1365_v45 = vpop.xlane.xlu0 %1364  ;;  %9742 = vpow2.f32 %v7808_v28  ;;  %9100 = vmatpush3.bf16.msra.mxu1 %v9426_v32 }
 0x2ce   : > { %v10628_v60 = vpop.eup %9724  ;;  %9744 = vpow2.f32 %v7810_v47  ;;  %v1446_v59 = vadd.f32 %v10572_v37, %v1365_v45  ;;  %v1815_v46 = vpack.c.bf16 %v1795_v57, %v1794_v12  ;;  %8662 = vmatpush3.bf16.msra.mxu0 %v9425_v63  ;;  %v1774_v63 = vsub.f32 1.0, %v10596_v36  ;;  %v9434_v36 = vld [vmem:[%s12652_s7 + $0xf8] sm:$0xff]  }
 0x2cf   : > { %v9727_v38 = vpop.eup %9726  ;;  %1862 = vperm.xlu1 %9402, %v1812_v50   ;;  %v7812_v0 = vmul.f32 -1.442695, %v1445_v19  ;;  %v1798_v34 = vsub.f32 1.0, %v10628_v60  ;;  %9746 = vrcp.f32 %v1594_v33 }
 0x2d0   : > { %v10631_v55 = vpop.eup %9728  ;;  %v1368_v6 = vpop.xlane.xlu1 %1367  ;;  %v1592_v39 = vadd.f32 1.0, %v9727_v38  ;;  %9748 = vpow2.f32 %v7809_v26  ;;  %v7813_v19 = vmul.f32 -1.442695, %v1446_v59 }
 0x2d1   : > { %v9731_v5 = vpop.eup %9730  ;;  %v1447_v25 = vadd.f32 %v10572_v37, %v1368_v6  ;;  %v1799_v9 = vsub.f32 1.0, %v10631_v55  ;;  %v1371_v40 = vpop.xlane.xlu0 %1370  ;;  %9750 = vpow2.f32 %v7812_v0  ;;  %v1793_v0 = vsub.f32 1.0, %v10622_v10  ;;  %v9428_v6 = vld [vmem:[%s12652_s7 + $0xe0] sm:$0xff]  }
 0x2d2   : > { %v10641_v29 = vpop.eup %9732  ;;  %v1595_v54 = vadd.f32 1.0, %v9731_v5  ;;  %v1448_v45 = vadd.f32 %v10572_v37, %v1371_v40  ;;  %v9427_v5 = vld [vmem:[%s12652_s7 + $0x58] sm:$0xff]   ;;  %9093 = vmatprep.subr.bf16.mxu1 %v9428_v6 }
 0x2d3   : > { %v10646_v22 = vpop.eup %9734  ;;  %1733 = vperm.xlu1 %9402, %v1671_v27   ;;  %v1817_v2 = vpack.c.bf16 %v1799_v9, %v1798_v34  ;;  %v7814_v58 = vmul.f32 -1.442695, %v1447_v25  ;;  %v1670_v24 = vpack.c.bf16 %v10622_v10, %v10641_v29  ;;  %v1792_v20 = vsub.f32 1.0, %v10641_v29  ;;  %8663 = vmatprep.subr.bf16.mxu0 %v9427_v5  ;;  %v9429_v29 = vld [vmem:[%s12652_s7 + $0x60] sm:$0xff]  }
 0x2d4   : > { %v10649_v51 = vpop.eup %9736  ;;  %v1374_v11 = vpop.xlane.xlu1 %1373  ;;  %9752 = vrcp.f32 %v1595_v54  ;;  %v1796_v28 = vsub.f32 1.0, %v10646_v22  ;;  %v7815_v34 = vmul.f32 -1.442695, %v1448_v45  ;;  %9101 = vmatpush3.bf16.msra.mxu1 %v9428_v6  ;;  %8664 = vmatpush3.bf16.msra.mxu0 %v9427_v5 }
 0x2d5   : > { %v9739_v35 = vpop.eup %9738  ;;  %v1449_v23 = vadd.f32 %v10572_v37, %v1374_v11  ;;  %1887 = vperm.xlu0 %9403, %v1817_v2   ;;  %v1797_v1 = vsub.f32 1.0, %v10649_v51  ;;  %9754 = vpow2.f32 %v7811_v7  ;;  %v1377_v14 = vpop.xlane.xlu0 %1376  ;;  %v1814_v30 = vpack.c.bf16 %v1793_v0, %v1792_v20  ;;  %8665 = vmatprep.subr.bf16.mxu0 %v9429_v29 }
 0x2d6   : > { %v1593_v31 = vadd.f32 1.0, %v9739_v35  ;;  %v9741_v47 = vpop.eup %9740  ;;  %9756 = vrcp.f32 %v1592_v39  ;;  %v1450_v9 = vadd.f32 %v10572_v37, %v1377_v14  ;;  %v9430_v39 = vld [vmem:[%s12652_s7 + $0xe8] sm:$0xff]   ;;  %v1673_v35 = vpack.c.bf16 %v10631_v55, %v10628_v60 }
 0x2d7   : > { %1728 = vperm.xlu1 %9402, %v1670_v24   ;;  %v1816_v50 = vpack.c.bf16 %v1797_v1, %v1796_v28  ;;  %v9743_v38 = vpop.eup %9742  ;;  %v7816_v42 = vmul.f32 -1.442695, %v1449_v23  ;;  %v1568_v27 = vadd.f32 1.0, %v9741_v47  ;;  %9094 = vmatprep.subr.bf16.mxu1 %v9430_v39  ;;  %v9432_v23 = vld [vmem:[%s12652_s7 + $0xf0] sm:$0xff]   ;;  %v2507_v47 = vld [vmem:[#allocation2] sm:$0xf] }
 0x2d8   : > { %9758 = vrcp.f32 %v1593_v31  ;;  %v1380_v33 = vpop.xlane.xlu1 %1379  ;;  %v9745_v25 = vpop.eup %9744  ;;  %v1569_v54 = vadd.f32 1.0, %v9743_v38  ;;  %9102 = vmatpush3.bf16.msra.mxu1 %v9430_v39  ;;  %8666 = vmatpush3.bf16.msra.mxu0 %v9429_v29  ;;  %v9431_v31 = vld [vmem:[%s12652_s7 + $0x68] sm:$0xff]   ;;  %v2578_v14 = vshll.u32 %v2507_v47, 16  ;;  %v1775_v38 = vsub.f32 1.0, %v10599_v17 }
 0x2d9   : > { %9760 = vpow2.f32 %v7814_v58  ;;  %v1451_v26 = vadd.f32 %v10572_v37, %v1380_v33  ;;  %1882 = vperm.xlu0 %9403, %v1816_v50   ;;  %v10675_v10 = vpop.eup %9746  ;;  %v1571_v37 = vadd.f32 1.0, %v9745_v25  ;;  %v7817_v58 = vmul.f32 -1.442695, %v1450_v9  ;;  %9095 = vmatprep.subr.bf16.mxu1 %v9432_v23  ;;  %v2555_v17 = vld [vmem:[#allocation2 + $0x8] sm:$0x1] }
 0x2da   : > { %9762 = vpow2.f32 %v7813_v19  ;;  %v9749_v7 = vpop.eup %9748  ;;  %v1802_v55 = vsub.f32 1.0, %v10675_v10  ;;  %v2508_v19 = vld [vmem:[#allocation2 + $0x4] sm:$0xf]  ;;  %8667 = vmatprep.subr.bf16.mxu0 %v9431_v31  ;;  %v2575_v50 = vshrl.u32 %v2507_v47, 16 }
 0x2db   : > { %1877 = vperm.xlu1 %9402, %v1815_v46   ;;  %9764 = vpow2.f32 %v7816_v42  ;;  %v7818_v40 = vmul.f32 -1.442695, %v1451_v26  ;;  %v9751_v59 = vpop.eup %9750  ;;  %v1570_v24 = vadd.f32 1.0, %v9749_v7  ;;  %v1672_v46 = vpack.c.bf16 %v10649_v51, %v10646_v22 }
 0x2dc   : > { %9766 = vrcp.f32 %v1568_v27  ;;  %v1573_v1 = vadd.f32 1.0, %v9751_v59  ;;  %9103 = vmatpush3.bf16.msra.mxu1 %v9432_v23  ;;  %8668 = vmatpush3.bf16.msra.mxu0 %v9431_v31  ;;  %v2584_v42 = vshll.u32 %v2508_v19, 16  ;;  %v2588_v26 = vshrl.u32 %v2508_v19, 16  ;;  %v9433_v27 = vld [vmem:[%s12652_s7 + $0x70] sm:$0xff]  }
 0x2dd   : > { %9768 = vpow2.f32 %v7815_v34  ;;  %v2577_v5 = vrot.slane %v2575_v50, 4  ;;  %9096 = vmatprep.subr.bf16.mxu1 %v9434_v36  ;;  %v2580_v51 = vrot.slane %v2578_v14, 5  ;;  %8669 = vmatprep.subr.bf16.mxu0 %v9433_v27  ;;  %v2594_v7 = vshll.u32 %v2555_v17, 16 }
 0x2de   : > { %v10683_v2 = vpop.eup %9752  ;;  %9770 = vrcp.f32 %v1569_v54  ;;  %v2586_v34 = vrot.slane %v2584_v42, 5  ;;  %v2590_v9 = vrot.slane %v2588_v26, 4 }
 0x2df   : > { %1872 = vperm.xlu1 %9402, %v1814_v30   ;;  %v9755_v11 = vpop.eup %9754  ;;  %9772 = vpow2.f32 %v7818_v40  ;;  %v1803_v32 = vsub.f32 1.0, %v10683_v2  ;;  %v1805_v30 = vpack.c.bf16 %v1775_v38, %v1774_v63  ;;  %v2581_v59 = vor.u32 %v2580_v51, %v2577_v5 }
 0x2e0   : > { %v10685_v57 = vpop.eup %9756  ;;  %9774 = vrcp.f32 %v1571_v37  ;;  %v1572_v45 = vadd.f32 1.0, %v9755_v11  ;;  %9104 = vmatpush3.bf16.msra.mxu1 %v9434_v36  ;;  %8670 = vmatpush3.bf16.msra.mxu0 %v9433_v27  ;;  %v2591_v37 = vor.u32 %v2590_v9, %v2586_v34  ;;  %v9436_v11 = vld [vmem:[%s12652_s7 + $0x78] sm:$0xff]  }
 0x2e1   : > { %9776 = vpow2.f32 %v7817_v58  ;;  %v1819_v6 = vpack.c.bf16 %v1803_v32, %v1802_v55  ;;  %v1800_v39 = vsub.f32 1.0, %v10685_v57  ;;  %8671 = vmatprep.subr.bf16.mxu0 %v9436_v11  ;;  %v1675_v55 = vpack.c.bf16 %v10683_v2, %v10675_v10 }
 0x2e2   : > { %v10692_v28 = vpop.eup %9758  ;;  %9778 = vrcp.f32 %v1570_v24 }
 0x2e3   : > { %v9761_v12 = vpop.eup %9760  ;;  %1743 = vperm.xlu1 %9402, %v1673_v35   ;;  %v1674_v60 = vpack.c.bf16 %v10692_v28, %v10685_v57  ;;  %9780 = vrcp.f32 %v1573_v1  ;;  %v1801_v22 = vsub.f32 1.0, %v10692_v28  ;;  %v12703_v28 = vmov 0 }
 0x2e4   : > { %v9763_v33 = vpop.eup %9762  ;;  %v1575_v0 = vadd.f32 1.0, %v9761_v12  ;;  %9782 = vrcp.f32 %v1572_v45  ;;  %v12704_v28 = vsel %vm10716_vm3, 4294967295, %v12703_v28  ;;  %v2582_v57 = vrot.slane %v2581_v59, 4  ;;  %8672 = vmatpush3.bf16.msra.mxu0 %v9436_v11 }
 0x2e5   : > { %1748 = vperm.xlu0 %9403, %v1674_v60   ;;  %v9765_v25 = vpop.eup %9764  ;;  %v1574_v54 = vadd.f32 1.0, %v9763_v33  ;;  %v1818_v35 = vpack.c.bf16 %v1801_v22, %v1800_v39  ;;  %12705 = vst [vmem:[#allocation18_spill] sm:$0xff] %v12704_v28  ;;  %v2592_v1 = vrot.slane %v2591_v37, 4  ;;  %v2596_v12 = vrot.slane %v2594_v7, 5 }
 0x2e6   : > { %v9767_v20 = vpop.eup %9766  ;;  %9784 = vrcp.f32 %v1575_v0  ;;  %v1577_v58 = vadd.f32 1.0, %v9765_v25  ;;  %v2587_v47 = vsel %vm10716_vm3, %v2582_v57, %v2586_v34 }
 0x2e7   : > { %1738 = vperm.xlu1 %9402, %v1672_v46   ;;  %v9769_v40 = vpop.eup %9768  ;;  %v1776_v23 = vsub.f32 1.0, %v9767_v20  ;;  %9786 = vrcp.f32 %v1574_v54  ;;  %v2597_v50 = vsel %vm10716_vm3, %v2592_v1, %v2596_v12 }
 0x2e8   : > { %v9771_v29 = vpop.eup %9770  ;;  %v1576_v31 = vadd.f32 1.0, %v9769_v40  ;;  %9788 = vrcp.f32 %v1577_v58  ;;  %v7883_v46 = vcombine.low %v2587_v47, %v2597_v50 }
 0x2e9   : > { %1897 = vperm.xlu0 %9403, %v1819_v6   ;;  %v9773_v24 = vpop.eup %9772  ;;  %v1777_v63 = vsub.f32 1.0, %v9771_v29  ;;  %v1662_v10 = vpack.c.bf16 %v9771_v29, %v9767_v20 }
 0x2ea   : > { %v9775_v32 = vpop.eup %9774  ;;  %v1579_v45 = vadd.f32 1.0, %v9773_v24  ;;  %9790 = vrcp.f32 %v1576_v31  ;;  %8673 = vmatprep.mubr.bf16.mxu0 %v7883_v46  ;;  %v10729_v24 = vld [vmem:[%s12652_s7 + $0x100] sm:$0xff]  }
 0x2eb   : > { %1827 = vperm.xlu1 %9402, %v1805_v30   ;;  %v9777_v60 = vpop.eup %9776  ;;  %v1806_v14 = vpack.c.bf16 %v1777_v63, %v1776_v23  ;;  %v1779_v33 = vsub.f32 1.0, %v9775_v32  ;;  %8849 = vmatprep.subr.bf16.mxu1 %v10729_v24 }
 0x2ec   : > { %v9779_v19 = vpop.eup %9778  ;;  %v1578_v36 = vadd.f32 1.0, %v9777_v60  ;;  %9792 = vrcp.f32 %v1579_v45 }
 0x2ed   : > { %1892 = vperm.xlu0 %9403, %v1818_v35   ;;  %v9781_v38 = vpop.eup %9780  ;;  %v1778_v2 = vsub.f32 1.0, %v9779_v19  ;;  %v1663_v27 = vpack.c.bf16 %v9775_v32, %v9779_v19 }
 0x2ee   : > { %v9783_v42 = vpop.eup %9782  ;;  %v1781_v0 = vsub.f32 1.0, %v9781_v38  ;;  %9794 = vrcp.f32 %v1578_v36 }
 0x2ef   : > { %1753 = vperm.xlu1 %9402, %v1675_v55   ;;  %v1807_v26 = vpack.c.bf16 %v1779_v33, %v1778_v2  ;;  %v1780_v5 = vsub.f32 1.0, %v9783_v42  ;;  %v1664_v34 = vpack.c.bf16 %v9781_v38, %v9783_v42 }
 0x2f0   : > { %v9785_v6 = vpop.eup %9784 }
 0x2f1   : > { %1832 = vperm.xlu0 %9403, %v1806_v14   ;;  %v9787_v25 = vpop.eup %9786  ;;  %v1808_v22 = vpack.c.bf16 %v1781_v0, %v1780_v5  ;;  %v1783_v17 = vsub.f32 1.0, %v9785_v6 }
 0x2f2   : > { %v9789_v51 = vpop.eup %9788  ;;  %v1782_v9 = vsub.f32 1.0, %v9787_v25  ;;  %v1665_v30 = vpack.c.bf16 %v9785_v6, %v9787_v25 }
 0x2f3   : > { %1688 = vperm.xlu1 %9402, %v1662_v10   ;;  %v1785_v7 = vsub.f32 1.0, %v9789_v51 }
 0x2f4   : > { %v9791_v20 = vpop.eup %9790  ;;  %v1809_v54 = vpack.c.bf16 %v1783_v17, %v1782_v9  ;;  %v2462_v17 = vld [vmem:[#allocation2 + $0x80] sm:$0x1] }
 0x2f5   : > { %1837 = vperm.xlu0 %9403, %v1807_v26   ;;  %v1784_v39 = vsub.f32 1.0, %v9791_v20  ;;  %v1666_v58 = vpack.c.bf16 %v9789_v51, %v9791_v20 }
 0x2f6   : > { %v9793_v40 = vpop.eup %9792 }
 0x2f7   : > { %1693 = vperm.xlu1 %9402, %v1663_v27   ;;  %v1810_v37 = vpack.c.bf16 %v1785_v7, %v1784_v39  ;;  %v1787_v29 = vsub.f32 1.0, %v9793_v40  ;;  %v2458_v27 = vld [vmem:[#allocation2 + $0x78] sm:$0xf]  ;;  %v2393_v39 = vld [vmem:[#allocation2 + $0xc] sm:$0xf] }
 0x2f8   : > { %v9795_v59 = vpop.eup %9794 }
 0x2f9   : > { %1842 = vperm.xlu0 %9403, %v1808_v22   ;;  %v1786_v11 = vsub.f32 1.0, %v9795_v59  ;;  %v1667_v23 = vpack.c.bf16 %v9793_v40, %v9795_v59  ;;  %v2399_v59 = vld [vmem:[#allocation2 + $0x14] sm:$0x1] }
 0x2fb   : > { %1698 = vperm.xlu1 %9402, %v1664_v34   ;;  %v1811_v35 = vpack.c.bf16 %v1787_v29, %v1786_v11 }
 0x2fd   : > { %1847 = vperm.xlu0 %9403, %v1809_v54  }
 0x2ff   : > { %1703 = vperm.xlu1 %9402, %v1665_v30  }
 0x301   : > { %1852 = vperm.xlu0 %9403, %v1810_v37  }
 0x303   : > { %1708 = vperm.xlu1 %9402, %v1666_v58  }
 0x305   : > { %1857 = vperm.xlu0 %9403, %v1811_v35  }
 0x307   : > { %1713 = vperm.xlu1 %9402, %v1667_v23  }
 0x324   : > { %v1679_v57 = vpop.permute.xlu1 %1678 }
 0x325   : > { %v1756_v55 = vmul.bf16 %v1679_v57, %v10244_v16 }
 0x342   : > { %v1724_v1 = vpop.permute.xlu1 %1723 }
 0x343   : > { %v1765_v63 = vmul.bf16 %v1724_v1, %v10272_v43 }
 0x346   : > { %v10732_v32 = vpop.permute.xlu1 %1683  ;;  %v1719_v31 = vpop.permute.xlu0 %1718 }
 0x347   : > { %v1764_v16 = vmul.bf16 %v1719_v31, %v10268_v41 }
 0x34a   : > { %v1868_v12 = vpop.permute.xlu1 %1867  ;;  %v1823_v60 = vpop.permute.xlu0 %1822 }
 0x34b   : > { %v1909_v47 = vmul.bf16 %v1868_v12, %v10224_v61  ;;  %v1900_v19 = vmul.bf16 %v1823_v60, %v10165_v13 }
 0x34d   : > { %v1925_v45 = vadd.bf16 %v1909_v47, %v1765_v63  ;;  %v1916_v50 = vadd.bf16 %v1900_v19, %v1756_v55 }
 0x34e   : > { %v1863_v14 = vpop.permute.xlu1 %1862 }
 0x34f   : > { %v7853_v33 = vcombine.low %v1925_v45, %v1925_v45  ;;  %v7854_v46 = vcombine.high %v1925_v45, %v1925_v45  ;;  %v7835_v38 = vcombine.low %v1916_v50, %v1916_v50  ;;  %v7836_v36 = vcombine.high %v1916_v50, %v1916_v50 }
 0x350   : > { %v1908_v10 = vmul.bf16 %v1863_v14, %v10218_v56 }
 0x351   : > { %v2223_v43 = vshrl.u32 %v7853_v33, 16  ;;  %v2231_v61 = vshrl.u32 %v7854_v46, 16  ;;  %v2226_v2 = vshll.u32 %v7853_v33, 16  ;;  %v2070_v42 = vshrl.u32 %v7835_v38, 16 }
 0x352   : > { %v2078_v26 = vshrl.u32 %v7836_v36, 16  ;;  %v1734_v0 = vpop.permute.xlu1 %1733  ;;  %v2234_v41 = vshll.u32 %v7854_v46, 16  ;;  %v1924_v25 = vadd.bf16 %v1908_v10, %v1764_v16  ;;  %v2073_v34 = vshll.u32 %v7835_v38, 16 }
 0x353   : > { %v2225_v56 = vrot.slane %v2223_v43, 7  ;;  %v2233_v5 = vrot.slane %v2231_v61, 7  ;;  %v2072_v51 = vrot.slane %v2070_v42, 7  ;;  %v2081_v20 = vshll.u32 %v7836_v36, 16  ;;  %v2451_v36 = vld [vmem:[#allocation2 + $0x6c] sm:$0xf] }
 0x354   : > { %v2080_v9 = vrot.slane %v2078_v26, 7  ;;  %v7851_v31 = vcombine.low %v1924_v25, %v1924_v25  ;;  %v10760_v12 = vpop.permute.xlu0 %1887  ;;  %v7852_v47 = vcombine.high %v1924_v25, %v1924_v25  ;;  %v1767_v46 = vmul.bf16 %v1734_v0, %v10278_v48  ;;  %v2455_v43 = vld [vmem:[#allocation2 + $0x74] sm:$0x1] }
 0x355   : > { %v2228_v54 = vor.u32 %v2226_v2, %v2225_v56  ;;  %v2229_v7 = vrot.slane %v2225_v56, 4  ;;  %v2236_v40 = vor.u32 %v2234_v41, %v2233_v5  ;;  %v2238_v30 = vrot.slane %v2233_v5, 4 }
 0x356   : > { %v2075_v37 = vor.u32 %v2073_v34, %v2072_v51  ;;  %v2076_v29 = vrot.slane %v2072_v51, 4  ;;  %v2083_v58 = vor.u32 %v2081_v20, %v2080_v9  ;;  %v2085_v11 = vrot.slane %v2080_v9, 4  ;;  %v1729_v35 = vpop.permute.xlu1 %1728 }
 0x357   : > { %v2237_v23 = vsel %vm10741_vm9, %v2229_v7, %v2236_v40  ;;  %v2459_v57 = vsel %vm10745_vm10, %v2228_v54, %v2458_v27  ;;  %v2463_v1 = vsel %vm10750_vm11, %v2238_v30, %v2462_v17  ;;  %v2206_v19 = vshrl.u32 %v7851_v31, 16 }
 0x358   : > { %2460 = vst [vmem:[#allocation2 + $0x78] sm:$0xf] %v2459_v57  ;;  %2461 = vst [vmem:[#allocation2 + $0x7c] sm:$0xf] %v2237_v23  ;;  %v2084_v60 = vsel %vm10741_vm9, %v2076_v29, %v2083_v58  ;;  %v2394_v55 = vsel %vm10745_vm10, %v2075_v37, %v2393_v39  ;;  %v2400_v63 = vsel %vm10750_vm11, %v2085_v11, %v2399_v59  ;;  %v2214_v45 = vshrl.u32 %v7852_v47, 16  ;;  %v10770_v42 = vpop.permute.xlu0 %1882 }
 0x359   : > { %2464 = vst [vmem:[#allocation2 + $0x80] sm:$0x1] %v2463_v1  ;;  %2395 = vst [vmem:[#allocation2 + $0xc] sm:$0xf] %v2394_v55  ;;  %v2208_v14 = vrot.slane %v2206_v19, 7  ;;  %v2209_v33 = vshll.u32 %v7851_v31, 16  ;;  %v1757_v27 = vmul.bf16 %v10732_v32, %v10248_v21  ;;  %v1913_v41 = vmul.bf16 %v10760_v12, %v10236_v8 }
 0x35a   : > { %2396 = vst [vmem:[#allocation2 + $0x10] sm:$0xf] %v2084_v60  ;;  %2401 = vst [vmem:[#allocation2 + $0x14] sm:$0x1] %v2400_v63  ;;  %v1878_v50 = vpop.permute.xlu1 %1877  ;;  %v2216_v10 = vrot.slane %v2214_v45, 7  ;;  %v2217_v16 = vshll.u32 %v7852_v47, 16  ;;  %v1766_v9 = vmul.bf16 %v1729_v35, %v10274_v44  ;;  %v1912_v8 = vmul.bf16 %v10770_v42, %v10232_v4 }
 0x35b   : > { %v1911_v38 = vmul.bf16 %v1878_v50, %v10230_v3  ;;  %v2211_v61 = vor.u32 %v2209_v33, %v2208_v14  ;;  %v2212_v2 = vrot.slane %v2208_v14, 4  ;;  %v2472_v57 = vld [vmem:[#allocation2 + $0x90] sm:$0xf]  ;;  %v2476_v1 = vld [vmem:[#allocation2 + $0x98] sm:$0x1] }
 0x35c   : > { %v2219_v56 = vor.u32 %v2217_v16, %v2216_v10  ;;  %v2221_v5 = vrot.slane %v2216_v10, 4  ;;  %v2490_v4 = vld [vmem:[#allocation2 + $0xb0] sm:$0x1] }
 0x35d   : > { %v1927_v26 = vadd.bf16 %v1911_v38, %v1767_v46  ;;  %v2452_v3 = vsel %vm10745_vm10, %v2211_v61, %v2451_v36 }
 0x35e   : > { %v1873_v48 = vpop.permute.xlu1 %1872  ;;  %v2220_v51 = vsel %vm10741_vm9, %v2212_v2, %v2219_v56  ;;  %2453 = vst [vmem:[#allocation2 + $0x6c] sm:$0xf] %v2452_v3  ;;  %v2456_v34 = vsel %vm10750_vm11, %v2221_v5, %v2455_v43  ;;  %v2465_v43 = vld [vmem:[#allocation2 + $0x84] sm:$0xf] }
 0x35f   : > { %v7857_v0 = vcombine.low %v1927_v26, %v1927_v26  ;;  %v7858_v25 = vcombine.high %v1927_v26, %v1927_v26  ;;  %v1910_v17 = vmul.bf16 %v1873_v48, %v10226_v62  ;;  %2454 = vst [vmem:[#allocation2 + $0x70] sm:$0xf] %v2220_v51  ;;  %2457 = vst [vmem:[#allocation2 + $0x74] sm:$0x1] %v2456_v34 }
 0x360   : > { %v2509_v20 = vld [vmem:[#allocation2 + $0xc] sm:$0xf] }
 0x361   : > { %v10786_v54 = vld [vmem:[#allocation2 + $0x10] sm:$0xf]  ;;  %v2257_v7 = vshrl.u32 %v7857_v0, 16  ;;  %v2260_v40 = vshll.u32 %v7857_v0, 16  ;;  %v2265_v62 = vshrl.u32 %v7858_v25, 16  ;;  %v2268_v30 = vshll.u32 %v7858_v25, 16 }
 0x362   : > { %v1926_v39 = vadd.bf16 %v1910_v17, %v1766_v9  ;;  %v1744_v59 = vpop.permute.xlu1 %1743  ;;  %v2599_v37 = vshrl.u32 %v2509_v20, 16  ;;  %v2602_v29 = vshll.u32 %v2509_v20, 16  ;;  %v2608_v58 = vshll.u32 %v10786_v54, 16  ;;  %v2469_v0 = vld [vmem:[#allocation2 + $0x8c] sm:$0x1] }
 0x363   : > { %v2259_v11 = vrot.slane %v2257_v7, 7  ;;  %v2267_v44 = vrot.slane %v2265_v62, 7  ;;  %v1769_v35 = vmul.bf16 %v1744_v59, %v10286_v53  ;;  %v2612_v23 = vshrl.u32 %v10786_v54, 16  ;;  %v9439_v9 = vld [vmem:[%s12652_s7 + $0x108] sm:$0xff]  }
 0x364   : > { %v7855_v31 = vcombine.low %v1926_v39, %v1926_v39  ;;  %v7856_v12 = vcombine.high %v1926_v39, %v1926_v39  ;;  %v10791_v60 = vpop.permute.xlu0 %1748  ;;  %v10793_v55 = vrot.slane %v2599_v37, 4  ;;  %v2604_v63 = vrot.slane %v2602_v29, 5  ;;  %v9441_v29 = vld [vmem:[%s12652_s7 + $0x110] sm:$0xff]  }
 0x365   : > { %v2262_v47 = vor.u32 %v2260_v40, %v2259_v11  ;;  %v2263_v19 = vrot.slane %v2259_v11, 4  ;;  %v2270_v45 = vor.u32 %v2268_v30, %v2267_v44  ;;  %v2272_v50 = vrot.slane %v2267_v44, 4 }
 0x366   : > { %v2240_v14 = vshrl.u32 %v7855_v31, 16  ;;  %v2243_v33 = vshll.u32 %v7855_v31, 16  ;;  %v2248_v46 = vshrl.u32 %v7856_v12, 16  ;;  %v2251_v38 = vshll.u32 %v7856_v12, 16  ;;  %v1739_v53 = vpop.permute.xlu1 %1738  ;;  %v9435_v48 = vld [vmem:[#allocation2 + $0x6c] sm:$0xff]   ;;  %v10828_v12 = vld [vmem:[%s12652_s7] sm:$0xff]  }
 0x367   : > { %v2271_v36 = vsel %vm10741_vm9, %v2263_v19, %v2270_v45  ;;  %v2473_v10 = vsel %vm10745_vm10, %v2262_v47, %v2472_v57  ;;  %v2477_v16 = vsel %vm10750_vm11, %v2272_v50, %v2476_v1  ;;  %v1929_v61 = vadd.bf16 %v1913_v41, %v1769_v35  ;;  %v9437_v41 = vld [vmem:[#allocation2 + $0x78] sm:$0xff]   ;;  %8833 = vmatprep.mubr.bf16.mxu1 %v9435_v48  ;;  %v2486_v57 = vld [vmem:[#allocation2 + $0xa8] sm:$0xf] }
 0x368   : > { %2474 = vst [vmem:[#allocation2 + $0x90] sm:$0xf] %v2473_v10  ;;  %2475 = vst [vmem:[#allocation2 + $0x94] sm:$0xf] %v2271_v36  ;;  %v2242_v2 = vrot.slane %v2240_v14, 7  ;;  %v2250_v26 = vrot.slane %v2248_v46, 7  ;;  %v1770_v56 = vmul.bf16 %v10791_v60, %v10284_v52  ;;  %v1768_v5 = vmul.bf16 %v1739_v53, %v10280_v49  ;;  %v10804_v3 = vpop.permute.xlu0 %1897  ;;  %8834 = vmatmul.mubr.bf16.vlgmr.msra.gmra.mrb[0].mxu1 %v9437_v41 }
 0x369   : > { %2478 = vst [vmem:[#allocation2 + $0x98] sm:$0x1] %v2477_v16  ;;  %v7861_v25 = vcombine.low %v1929_v61, %v1929_v61  ;;  %v7862_v17 = vcombine.high %v1929_v61, %v1929_v61  ;;  %v1915_v51 = vmul.bf16 %v10804_v3, %v10242_v15  ;;  %v2605_v34 = vor.u32 %v2604_v63, %v10793_v55  ;;  %v12712_v19 = vld [vmem:[#allocation10_spill] sm:$0xff]  ;;  %v9443_v48 = vld [vmem:[%s12652_s7 + $0x118] sm:$0xff]   ;;  %v2483_v41 = vld [vmem:[#allocation2 + $0xa4] sm:$0x1] }
 0x36a   : > { %v2245_v20 = vor.u32 %v2243_v33, %v2242_v2  ;;  %v2246_v7 = vrot.slane %v2242_v2, 4  ;;  %v2253_v40 = vor.u32 %v2251_v38, %v2250_v26  ;;  %v2255_v49 = vrot.slane %v2250_v26, 4  ;;  %v1828_v62 = vpop.permute.xlu1 %1827  ;;  %8850 = vmatpush3.bf16.msra.mxu1 %v10729_v24  ;;  %8705 = vmatprep.subr.bf16.mxu0 %v10828_v12  ;;  %v12714_v15 = vld [vmem:[#allocation4_spill] sm:$0xff] }
 0x36b   : > { %v2291_v30 = vshrl.u32 %v7861_v25, 16  ;;  %v2294_v39 = vshll.u32 %v7861_v25, 16  ;;  %v2299_v59 = vshrl.u32 %v7862_v17, 16  ;;  %v2302_v37 = vshll.u32 %v7862_v17, 16  ;;  %8851 = vmatprep.subr.bf16.mxu1 %v9439_v9 }
 0x36c   : > { %v2254_v11 = vsel %vm10741_vm9, %v2246_v7, %v2253_v40  ;;  %v2466_v44 = vsel %vm10745_vm10, %v2245_v20, %v2465_v43  ;;  %v2470_v35 = vsel %vm10750_vm11, %v2255_v49, %v2469_v0  ;;  %v1928_v1 = vadd.bf16 %v1912_v8, %v1768_v5  ;;  %v1893_v31 = vpop.permute.xlu0 %1892  ;;  %v2556_v43 = vld [vmem:[#allocation2 + $0x14] sm:$0x1] }
 0x36d   : > { %2467 = vst [vmem:[#allocation2 + $0x84] sm:$0xf] %v2466_v44  ;;  %2468 = vst [vmem:[#allocation2 + $0x88] sm:$0xf] %v2254_v11  ;;  %v2293_v55 = vrot.slane %v2291_v30, 7  ;;  %v2301_v63 = vrot.slane %v2299_v59, 7  ;;  %v1901_v47 = vmul.bf16 %v1828_v62, %v10172_v18  ;;  %v1914_v45 = vmul.bf16 %v1893_v31, %v12712_v19 }
 0x36e   : > { %2471 = vst [vmem:[#allocation2 + $0x8c] sm:$0x1] %v2470_v35  ;;  %v7859_v42 = vcombine.low %v1928_v1, %v1928_v1  ;;  %v7860_v8 = vcombine.high %v1928_v1, %v1928_v1  ;;  %v10832_v50 = vrot.slane %v2605_v34, 4  ;;  %v10836_v24 = vrot.slane %v2608_v58, 5  ;;  %v10838_v14 = vpop.permute.xlu1 %1753  ;;  %8852 = vmatpush3.bf16.msra.mxu1 %v9439_v9  ;;  %v2402_v44 = vld [vmem:[#allocation2 + $0x18] sm:$0xf] }
 0x36f   : > { %v2296_v33 = vor.u32 %v2294_v39, %v2293_v55  ;;  %v2297_v46 = vrot.slane %v2293_v55, 4  ;;  %v2304_v38 = vor.u32 %v2302_v37, %v2301_v63  ;;  %v2306_v18 = vrot.slane %v2301_v63, 4  ;;  %8853 = vmatprep.subr.bf16.mxu1 %v9441_v29  ;;  %v9445_v1 = vld [vmem:[%s12652_s7 + $0x120] sm:$0xff]  }
 0x370   : > { %v2274_v53 = vshrl.u32 %v7859_v42, 16  ;;  %v2277_v36 = vshll.u32 %v7859_v42, 16  ;;  %v2282_v10 = vshrl.u32 %v7860_v8, 16  ;;  %v2285_v16 = vshll.u32 %v7860_v8, 16  ;;  %v10841_v61 = vpop.permute.xlu0 %1832  ;;  %v2406_v19 = vld [vmem:[#allocation2 + $0x20] sm:$0x1] }
 0x371   : > { %v2305_v58 = vsel %vm10741_vm9, %v2297_v46, %v2304_v38  ;;  %v2487_v2 = vsel %vm10745_vm10, %v2296_v33, %v2486_v57  ;;  %v2491_v26 = vsel %vm10750_vm11, %v2306_v18, %v2490_v4  ;;  %v1917_v5 = vadd.bf16 %v1901_v47, %v1757_v27  ;;  %v2479_v27 = vld [vmem:[#allocation2 + $0x9c] sm:$0xf]  ;;  %v12713_v8 = vld [vmem:[#allocation17_spill] sm:$0xff] }
 0x372   : > { %2488 = vst [vmem:[#allocation2 + $0xa8] sm:$0xf] %v2487_v2  ;;  %2489 = vst [vmem:[#allocation2 + $0xac] sm:$0xf] %v2305_v58  ;;  %v2276_v0 = vrot.slane %v2274_v53, 7  ;;  %v2284_v25 = vrot.slane %v2282_v10, 7  ;;  %v1930_v17 = vadd.bf16 %v1914_v45, %v1770_v56  ;;  %v2611_v21 = vsel %vm10716_vm3, %v10832_v50, %v10836_v24  ;;  %v10862_v32 = vpop.permute.xlu1 %1688  ;;  %8854 = vmatpush3.bf16.msra.mxu1 %v9441_v29 }
 0x373   : > { %2492 = vst [vmem:[#allocation2 + $0xb0] sm:$0x1] %v2491_v26  ;;  %v7837_v34 = vcombine.low %v1917_v5, %v1917_v5  ;;  %v7838_v9 = vcombine.high %v1917_v5, %v1917_v5  ;;  %v2614_v20 = vrot.slane %v2612_v23, 4  ;;  %v2618_v7 = vshll.u32 %v2556_v43, 16  ;;  %8855 = vmatprep.subr.bf16.mxu1 %v9443_v48  ;;  %v9442_v29 = vld [vmem:[#allocation2 + $0x90] sm:$0xff]   ;;  %v9448_v26 = vld [vmem:[%s12652_s7 + $0x128] sm:$0xff]  }
 0x374   : > { %v2279_v40 = vor.u32 %v2277_v36, %v2276_v0  ;;  %v2280_v49 = vrot.slane %v2276_v0, 4  ;;  %v2287_v62 = vor.u32 %v2285_v16, %v2284_v25  ;;  %v2289_v52 = vrot.slane %v2284_v25, 4  ;;  %v10866_v60 = vpop.permute.xlu0 %1837  ;;  %v9440_v37 = vld [vmem:[#allocation2 + $0x84] sm:$0xff]   ;;  %v2493_v0 = vld [vmem:[#allocation2 + $0xb4] sm:$0xf] }
 0x375   : > { %v2087_v56 = vshrl.u32 %v7837_v34, 16  ;;  %v2090_v30 = vshll.u32 %v7837_v34, 16  ;;  %v2095_v39 = vshrl.u32 %v7838_v9, 16  ;;  %v2098_v59 = vshll.u32 %v7838_v9, 16  ;;  %8837 = vmatprep.mubr.bf16.mxu1 %v9440_v37  ;;  %v2497_v9 = vld [vmem:[#allocation2 + $0xbc] sm:$0x1] }
 0x376   : > { %v2288_v11 = vsel %vm10741_vm9, %v2280_v49, %v2287_v62  ;;  %v2480_v54 = vsel %vm10745_vm10, %v2279_v40, %v2479_v27  ;;  %v2484_v23 = vsel %vm10750_vm11, %v2289_v52, %v2483_v41  ;;  %v7863_v35 = vcombine.low %v1930_v17, %v1930_v17  ;;  %v10874_v57 = vpop.permute.xlu1 %1693  ;;  %8838 = vmatmul.mubr.bf16.gmra.mrb[4].mxu1 %v9442_v29  ;;  %v9449_v49 = vld [vmem:[%s12652_s7 + $0x130] sm:$0xff]  }
 0x377   : > { %2481 = vst [vmem:[#allocation2 + $0x9c] sm:$0xf] %v2480_v54  ;;  %2482 = vst [vmem:[#allocation2 + $0xa0] sm:$0xf] %v2288_v11  ;;  %v2089_v31 = vrot.slane %v2087_v56, 7  ;;  %v2097_v55 = vrot.slane %v2095_v39, 7  ;;  %v7864_v63 = vcombine.high %v1930_v17, %v1930_v17  ;;  %v2615_v47 = vor.u32 %v2614_v20, %v10836_v24  ;;  %8856 = vmatpush3.bf16.msra.mxu1 %v9443_v48 }
 0x378   : > { %2485 = vst [vmem:[#allocation2 + $0xa4] sm:$0x1] %v2484_v23  ;;  %v2308_v45 = vshrl.u32 %v7863_v35, 16  ;;  %v2311_v4 = vshll.u32 %v7863_v35, 16  ;;  %v2620_v42 = vrot.slane %v2618_v7, 5  ;;  %v1771_v33 = vmul.bf16 %v10838_v14, %v12713_v8  ;;  %v10882_v46 = vpop.permute.xlu0 %1842  ;;  %8857 = vmatprep.subr.bf16.mxu1 %v9445_v1  ;;  %v9458_v54 = vld [vmem:[%s12652_s7 + $0x8] sm:$0xff]  }
 0x379   : > { %v2092_v38 = vor.u32 %v2090_v30, %v2089_v31  ;;  %v2093_v18 = vrot.slane %v2089_v31, 4  ;;  %v2100_v53 = vor.u32 %v2098_v59, %v2097_v55  ;;  %v2102_v36 = vrot.slane %v2097_v55, 4  ;;  %v12715_v30 = vld [vmem:[#allocation11_spill] sm:$0xff]  ;;  %v9446_v11 = vld [vmem:[#allocation2 + $0xa8] sm:$0xff]   ;;  %v12717_v55 = vld [vmem:[#allocation12_spill] sm:$0xff] }
 0x37a   : > { %v2310_v10 = vrot.slane %v2308_v45, 7  ;;  %v2316_v16 = vshrl.u32 %v7864_v63, 16  ;;  %v2319_v43 = vshll.u32 %v7864_v63, 16  ;;  %v2616_v58 = vrot.slane %v2615_v47, 4  ;;  %v10884_v2 = vpop.permute.xlu1 %1698  ;;  %v12716_v35 = vld [vmem:[#allocation5_spill] sm:$0xff]  ;;  %v12718_v47 = vld [vmem:[#allocation6_spill] sm:$0xff] }
 0x37b   : > { %v2101_v14 = vsel %vm10741_vm9, %v2093_v18, %v2100_v53  ;;  %v2403_v5 = vsel %vm10745_vm10, %v2092_v38, %v2402_v44  ;;  %v2407_v48 = vsel %vm10750_vm11, %v2102_v36, %v2406_v19  ;;  %v1931_v25 = vadd.bf16 %v1915_v51, %v1771_v33  ;;  %8858 = vmatpush3.bf16.msra.mxu1 %v9445_v1  ;;  %v2500_v45 = vld [vmem:[#allocation2 + $0xc0] sm:$0xf]  ;;  %v12720_v38 = vld [vmem:[#allocation7_spill] sm:$0xff] }
 0x37c   : > { %2404 = vst [vmem:[#allocation2 + $0x18] sm:$0xf] %v2403_v5  ;;  %2405 = vst [vmem:[#allocation2 + $0x1c] sm:$0xf] %v2101_v14  ;;  %v2313_v17 = vor.u32 %v2311_v4, %v2310_v10  ;;  %v2314_v27 = vrot.slane %v2310_v10, 4  ;;  %v2318_v41 = vrot.slane %v2316_v16, 7  ;;  %v2621_v34 = vsel %vm10716_vm3, %v2616_v58, %v2620_v42  ;;  %v10907_v51 = vpop.permute.xlu0 %1847  ;;  %8859 = vmatprep.subr.bf16.mxu1 %v9448_v26 }
 0x37d   : > { %2408 = vst [vmem:[#allocation2 + $0x20] sm:$0x1] %v2407_v48  ;;  %v7884_v20 = vcombine.low %v2611_v21, %v2621_v34  ;;  %v7865_v7 = vcombine.low %v1931_v25, %v1931_v25  ;;  %v7866_v40 = vcombine.high %v1931_v25, %v1931_v25  ;;  %v1902_v3 = vmul.bf16 %v10841_v61, %v12714_v15  ;;  %v2504_v4 = vld [vmem:[#allocation2 + $0xc8] sm:$0x1]  ;;  %v9451_v16 = vld [vmem:[%s12652_s7 + $0x138] sm:$0xff]   ;;  %v12721_v34 = vld [vmem:[#allocation14_spill] sm:$0xff] }
 0x37e   : > { %v2321_v62 = vor.u32 %v2319_v43, %v2318_v41  ;;  %v2323_v52 = vrot.slane %v2318_v41, 4  ;;  %v2494_v56 = vsel %vm10745_vm10, %v2313_v17, %v2493_v0  ;;  %v1758_v50 = vmul.bf16 %v10862_v32, %v12715_v30  ;;  %v10916_v24 = vpop.permute.xlu1 %1703  ;;  %v9444_v21 = vld [vmem:[#allocation2 + $0x9c] sm:$0xff]  }
 0x37f   : > { %2495 = vst [vmem:[#allocation2 + $0xb4] sm:$0xf] %v2494_v56  ;;  %8674 = vmatmul.mubr.bf16.vlgmr.msra.gmra.mrb[32].mxu0 %v7884_v20  ;;  %v2325_v61 = vshrl.u32 %v7865_v7, 16  ;;  %v2328_v39 = vshll.u32 %v7865_v7, 16  ;;  %v2333_v59 = vshrl.u32 %v7866_v40, 16  ;;  %v2336_v37 = vshll.u32 %v7866_v40, 16  ;;  %8841 = vmatprep.mubr.bf16.mxu1 %v9444_v21 }
 0x380   : > { %v2322_v23 = vsel %vm10741_vm9, %v2314_v27, %v2321_v62  ;;  %v2498_v32 = vsel %vm10750_vm11, %v2323_v52, %v2497_v9  ;;  %v1918_v44 = vadd.bf16 %v1902_v3, %v1758_v50  ;;  %v1903_v29 = vmul.bf16 %v10866_v60, %v12716_v35  ;;  %8842 = vmatmul.mubr.bf16.gmra.mrb[8].mxu1 %v9446_v11  ;;  %v12719_v33 = vld [vmem:[#allocation13_spill] sm:$0xff]  ;;  %v2413_v7 = vld [vmem:[#allocation2 + $0x2c] sm:$0x1]  ;;  %v12722_v3 = vld [vmem:[#allocation8_spill] sm:$0xff] }
 0x381   : > { %2496 = vst [vmem:[#allocation2 + $0xb8] sm:$0xf] %v2322_v23  ;;  %2499 = vst [vmem:[#allocation2 + $0xbc] sm:$0x1] %v2498_v32  ;;  %v2327_v1 = vrot.slane %v2325_v61, 7  ;;  %v2335_v31 = vrot.slane %v2333_v59, 7  ;;  %v1759_v63 = vmul.bf16 %v10874_v57, %v12717_v55  ;;  %v1904_v19 = vmul.bf16 %v10882_v46, %v12718_v47  ;;  %8706 = vmatpush3.bf16.msra.mxu0 %v10828_v12  ;;  %v1853_v12 = vpop.permute.xlu0 %1852 }
 0x382   : > { %v7839_v42 = vcombine.low %v1918_v44, %v1918_v44  ;;  %v7840_v8 = vcombine.high %v1918_v44, %v1918_v44  ;;  %v1760_v60 = vmul.bf16 %v10884_v2, %v12719_v33  ;;  %v1905_v18 = vmul.bf16 %v10907_v51, %v12720_v38  ;;  %8860 = vmatpush3.bf16.msra.mxu1 %v9448_v26  ;;  %v9459_v57 = vld [vmem:[%s12652_s7 + $0x10] sm:$0xff]   ;;  %v1709_v26 = vpop.permute.xlu1 %1708  ;;  %v2409_v20 = vld [vmem:[#allocation2 + $0x24] sm:$0xf]  ;;  %v9461_v30 = vld [vmem:[%s12652_s7 + $0x18] sm:$0xff]  }
 0x383   : > { %v2330_v53 = vor.u32 %v2328_v39, %v2327_v1  ;;  %v2331_v46 = vrot.slane %v2327_v1, 4  ;;  %v2338_v36 = vor.u32 %v2336_v37, %v2335_v31  ;;  %v2340_v10 = vrot.slane %v2335_v31, 4  ;;  %8861 = vmatprep.subr.bf16.mxu1 %v9449_v49  ;;  %8707 = vmatprep.subr.bf16.mxu0 %v9458_v54  ;;  %v12723_v52 = vld [vmem:[#allocation15_spill] sm:$0xff] }
 0x384   : > { %v2104_v43 = vshrl.u32 %v7839_v42, 16  ;;  %v2107_v58 = vshll.u32 %v7839_v42, 16  ;;  %v2112_v2 = vshrl.u32 %v7840_v8, 16  ;;  %v2115_v14 = vshll.u32 %v7840_v8, 16  ;;  %v2420_v31 = vld [vmem:[#allocation2 + $0x38] sm:$0x1] }
 0x385   : > { %v2339_v5 = vsel %vm10741_vm9, %v2331_v46, %v2338_v36  ;;  %v2501_v48 = vsel %vm10745_vm10, %v2330_v53, %v2500_v45  ;;  %v2505_v0 = vsel %vm10750_vm11, %v2340_v10, %v2504_v4  ;;  %v1919_v25 = vadd.bf16 %v1903_v29, %v1759_v63  ;;  %8708 = vmatpush3.bf16.msra.mxu0 %v9458_v54  ;;  %v10960_v23 = vpop.permute.xlu0 %1857  ;;  %v2416_v29 = vld [vmem:[#allocation2 + $0x30] sm:$0xf]  ;;  %v12724_v8 = vld [vmem:[#allocation9_spill] sm:$0xff]  ;;  %v2423_v36 = vld [vmem:[#allocation2 + $0x3c] sm:$0xf] }
 0x386   : > { %2502 = vst [vmem:[#allocation2 + $0xc0] sm:$0xf] %v2501_v48  ;;  %2503 = vst [vmem:[#allocation2 + $0xc4] sm:$0xf] %v2339_v5  ;;  %v2106_v17 = vrot.slane %v2104_v43, 7  ;;  %v2114_v27 = vrot.slane %v2112_v2, 7  ;;  %v1920_v41 = vadd.bf16 %v1904_v19, %v1760_v60  ;;  %v1761_v9 = vmul.bf16 %v10916_v24, %v12721_v34  ;;  %8862 = vmatpush3.bf16.msra.mxu1 %v9449_v49 }
 0x387   : > { %2506 = vst [vmem:[#allocation2 + $0xc8] sm:$0x1] %v2505_v0  ;;  %8709 = vmatprep.subr.bf16.mxu0 %v9459_v57  ;;  %v7841_v40 = vcombine.low %v1919_v25, %v1919_v25  ;;  %v7842_v15 = vcombine.high %v1919_v25, %v1919_v25  ;;  %v1906_v62 = vmul.bf16 %v1853_v12, %v12722_v3  ;;  %v10958_v49 = vld [vmem:[%s12652_s7 + $0x140] sm:$0xff]  }
 0x388   : > { %v1762_v56 = vmul.bf16 %v1709_v26, %v12723_v52  ;;  %8863 = vmatprep.subr.bf16.mxu1 %v9451_v16  ;;  %v2109_v50 = vor.u32 %v2107_v58, %v2106_v17  ;;  %v2110_v21 = vrot.slane %v2106_v17, 4  ;;  %v2117_v61 = vor.u32 %v2115_v14, %v2114_v27  ;;  %v9447_v24 = vld [vmem:[#allocation2 + $0xb4] sm:$0xff]   ;;  %v2427_v25 = vld [vmem:[#allocation2 + $0x44] sm:$0x1] }
 0x389   : > { %v2119_v39 = vrot.slane %v2114_v27, 4  ;;  %v2121_v59 = vshrl.u32 %v7841_v40, 16  ;;  %v2124_v37 = vshll.u32 %v7841_v40, 16  ;;  %v2129_v11 = vshrl.u32 %v7842_v15, 16  ;;  %8710 = vmatpush3.bf16.msra.mxu0 %v9459_v57  ;;  %8845 = vmatprep.mubr.bf16.mxu1 %v9447_v24  ;;  %v2434_v24 = vld [vmem:[#allocation2 + $0x50] sm:$0x1] }
 0x38a   : > { %v2132_v54 = vshll.u32 %v7842_v15, 16  ;;  %v2118_v32 = vsel %vm10741_vm9, %v2110_v21, %v2117_v61  ;;  %v2410_v44 = vsel %vm10745_vm10, %v2109_v50, %v2409_v20  ;;  %v7843_v1 = vcombine.low %v1920_v41, %v1920_v41  ;;  %8864 = vmatpush3.bf16.msra.mxu1 %v9451_v16  ;;  %8711 = vmatprep.subr.bf16.mxu0 %v9461_v30  ;;  %v9462_v16 = vld [vmem:[%s12652_s7 + $0x20] sm:$0xff]   ;;  %v2430_v15 = vld [vmem:[#allocation2 + $0x48] sm:$0xf]  ;;  %v1714_v50 = vpop.permute.xlu1 %1713  ;;  %v4424_v21 = vld [vmem:[#allocation2 + $0xc] sm:$0xf] }
 0x38b   : > { %v2414_v35 = vsel %vm10750_vm11, %v2119_v39, %v2413_v7  ;;  %2411 = vst [vmem:[#allocation2 + $0x24] sm:$0xf] %v2410_v44  ;;  %2412 = vst [vmem:[#allocation2 + $0x28] sm:$0xf] %v2118_v32  ;;  %v2123_v55 = vrot.slane %v2121_v59, 7  ;;  %v2131_v63 = vrot.slane %v2129_v11, 7  ;;  %v7844_v47 = vcombine.high %v1920_v41, %v1920_v41  ;;  %8897 = vmatprep.subr.bf16.mxu1 %v10958_v49 }
 0x38c   : > { %2415 = vst [vmem:[#allocation2 + $0x2c] sm:$0x1] %v2414_v35  ;;  %v1921_v19 = vadd.bf16 %v1905_v18, %v1761_v9  ;;  %v2138_v45 = vshrl.u32 %v7843_v1, 16  ;;  %v2141_v4 = vshll.u32 %v7843_v1, 16  ;;  %v1922_v42 = vadd.bf16 %v1906_v62, %v1762_v56  ;;  %v9464_v9 = vld [vmem:[%s12652_s7 + $0x28] sm:$0xff]  }
 0x38d   : > { %v1907_v33 = vmul.bf16 %v10960_v23, %v12724_v8  ;;  %v2126_v60 = vor.u32 %v2124_v37, %v2123_v55  ;;  %v2127_v57 = vrot.slane %v2123_v55, 4  ;;  %v2134_v53 = vor.u32 %v2132_v54, %v2131_v63  ;;  %8712 = vmatpush3.bf16.msra.mxu0 %v9461_v30  ;;  %v9450_v18 = vld [vmem:[#allocation2 + $0xc0] sm:$0xff]   ;;  %v2437_v32 = vld [vmem:[#allocation2 + $0x54] sm:$0xf]  ;;  %v2512_v8 = vld [vmem:[#allocation2 + $0x1c] sm:$0xf] }
 0x38e   : > { %v2136_v46 = vrot.slane %v2131_v63, 4  ;;  %v2140_v10 = vrot.slane %v2138_v45, 7  ;;  %v2146_v12 = vshrl.u32 %v7844_v47, 16  ;;  %v2149_v51 = vshll.u32 %v7844_v47, 16  ;;  %8846 = vmatmul.mubr.bf16.gmra.mrb[12].mxu1 %v9450_v18  ;;  %8713 = vmatprep.subr.bf16.mxu0 %v9462_v16  ;;  %v4425_v63 = vld [vmem:[#allocation2 + $0x10] sm:$0xf] }
 0x38f   : > { %v7845_v38 = vcombine.low %v1921_v19, %v1921_v19  ;;  %v2135_v43 = vsel %vm10741_vm9, %v2127_v57, %v2134_v53  ;;  %v2417_v58 = vsel %vm10745_vm10, %v2126_v60, %v2416_v29  ;;  %v7846_v14 = vcombine.high %v1921_v19, %v1921_v19  ;;  %v4426_v47 = vld [vmem:[#allocation2 + $0x14] sm:$0x1] }
 0x390   : > { %v2421_v2 = vsel %vm10750_vm11, %v2136_v46, %v2420_v31  ;;  %2418 = vst [vmem:[#allocation2 + $0x30] sm:$0xf] %v2417_v58  ;;  %2419 = vst [vmem:[#allocation2 + $0x34] sm:$0xf] %v2135_v43  ;;  %v2143_v26 = vor.u32 %v2141_v4, %v2140_v10  ;;  %v2144_v5 = vrot.slane %v2140_v10, 4  ;;  %v2148_v48 = vrot.slane %v2146_v12, 7 }
 0x391   : > { %2422 = vst [vmem:[#allocation2 + $0x38] sm:$0x1] %v2421_v2  ;;  %v2155_v0 = vshrl.u32 %v7845_v38, 16  ;;  %v2158_v17 = vshll.u32 %v7845_v38, 16  ;;  %v2163_v27 = vshrl.u32 %v7846_v14, 16  ;;  %v2166_v41 = vshll.u32 %v7846_v14, 16  ;;  %8714 = vmatpush3.bf16.msra.mxu0 %v9462_v16 }
 0x392   : > { %v7847_v34 = vcombine.low %v1922_v42, %v1922_v42  ;;  %v2151_v20 = vor.u32 %v2149_v51, %v2148_v48  ;;  %v2153_v7 = vrot.slane %v2148_v48, 4  ;;  %v2424_v40 = vsel %vm10745_vm10, %v2143_v26, %v2423_v36  ;;  %8715 = vmatprep.subr.bf16.mxu0 %v9464_v9  ;;  %v12725_v31 = vld [vmem:[#allocation16_spill] sm:$0xff] }
 0x393   : > { %v2157_v3 = vrot.slane %v2155_v0, 7  ;;  %2425 = vst [vmem:[#allocation2 + $0x3c] sm:$0xf] %v2424_v40  ;;  %v2165_v62 = vrot.slane %v2163_v27, 7  ;;  %v7848_v52 = vcombine.high %v1922_v42, %v1922_v42  ;;  %v1763_v55 = vmul.bf16 %v1714_v50, %v12725_v31  ;;  %v2441_v10 = vld [vmem:[#allocation2 + $0x5c] sm:$0x1] }
 0x394   : > { %v2172_v56 = vshrl.u32 %v7847_v34, 16  ;;  %v2175_v30 = vshll.u32 %v7847_v34, 16  ;;  %v2152_v61 = vsel %vm10741_vm9, %v2144_v5, %v2151_v20  ;;  %v2428_v39 = vsel %vm10750_vm11, %v2153_v7, %v2427_v25  ;;  %v2511_v14 = vld [vmem:[#allocation2 + $0x18] sm:$0xf]  ;;  %v2444_v20 = vld [vmem:[#allocation2 + $0x60] sm:$0xf] }
 0x395   : > { %v2160_v59 = vor.u32 %v2158_v17, %v2157_v3  ;;  %v2161_v37 = vrot.slane %v2157_v3, 4  ;;  %2426 = vst [vmem:[#allocation2 + $0x40] sm:$0xf] %v2152_v61  ;;  %2429 = vst [vmem:[#allocation2 + $0x44] sm:$0x1] %v2428_v39  ;;  %v2168_v11 = vor.u32 %v2166_v41, %v2165_v62  ;;  %v2170_v54 = vrot.slane %v2165_v62, 4  ;;  %8716 = vmatpush3.bf16.msra.mxu0 %v9464_v9 }
 0x396   : > { %v2174_v44 = vrot.slane %v2172_v56, 7  ;;  %v2180_v35 = vshrl.u32 %v7848_v52, 16  ;;  %v2183_v1 = vshll.u32 %v7848_v52, 16  ;;  %v4473_v19 = vshrl.u32 %v4424_v21, 16  ;;  %v2448_v62 = vld [vmem:[#allocation2 + $0x68] sm:$0x1] }
 0x397   : > { %v2431_v29 = vsel %vm10745_vm10, %v2160_v59, %v2430_v15  ;;  %v2169_v45 = vsel %vm10741_vm9, %v2161_v37, %v2168_v11  ;;  %v2435_v4 = vsel %vm10750_vm11, %v2170_v54, %v2434_v24  ;;  %v1923_v53 = vadd.bf16 %v1907_v33, %v1763_v55  ;;  %v2557_v39 = vld [vmem:[#allocation2 + $0x20] sm:$0x1]  ;;  %v9465_v37 = vld [vmem:[%s12652_s7 + $0x30] sm:$0xff]  }
 0x398   : > { %2432 = vst [vmem:[#allocation2 + $0x48] sm:$0xf] %v2431_v29  ;;  %v2177_v42 = vor.u32 %v2175_v30, %v2174_v44  ;;  %v2178_v60 = vrot.slane %v2174_v44, 4  ;;  %2433 = vst [vmem:[#allocation2 + $0x4c] sm:$0xf] %v2169_v45  ;;  %v2182_v57 = vrot.slane %v2180_v35, 7  ;;  %8717 = vmatprep.subr.bf16.mxu0 %v9465_v37 }
 0x399   : > { %2436 = vst [vmem:[#allocation2 + $0x50] sm:$0x1] %v2435_v4  ;;  %v4475_v46 = vrot.slane %v4473_v19, 4  ;;  %v4476_v36 = vshll.u32 %v4424_v21, 16  ;;  %v4482_v51 = vshll.u32 %v4425_v63, 16  ;;  %v4486_v38 = vshrl.u32 %v4425_v63, 16  ;;  %8718 = vmatpush3.bf16.msra.mxu0 %v9465_v37 }
 0x39a   : > { %v2438_v12 = vsel %vm10745_vm10, %v2177_v42, %v2437_v32  ;;  %v4492_v18 = vshll.u32 %v4426_v47, 16  ;;  %v2185_v16 = vor.u32 %v2183_v1, %v2182_v57  ;;  %v2187_v43 = vrot.slane %v2182_v57, 4  ;;  %v4427_v35 = vld [vmem:[#allocation2 + $0x18] sm:$0xf]  ;;  %v4428_v29 = vld [vmem:[#allocation2 + $0x1c] sm:$0xf] }
 0x39b   : > { %2439 = vst [vmem:[#allocation2 + $0x54] sm:$0xf] %v2438_v12  ;;  %v7849_v58 = vcombine.low %v1923_v53, %v1923_v53  ;;  %v7850_v2 = vcombine.high %v1923_v53, %v1923_v53  ;;  %v4478_v26 = vrot.slane %v4476_v36, 5  ;;  %v4484_v5 = vrot.slane %v4482_v51, 5  ;;  %v4429_v47 = vld [vmem:[#allocation2 + $0x20] sm:$0x1] }
 0x39c   : > { %v4488_v48 = vrot.slane %v4486_v38, 4  ;;  %v4494_v23 = vrot.slane %v4492_v18, 5  ;;  %v2186_v33 = vsel %vm10741_vm9, %v2178_v60, %v2185_v16  ;;  %v2442_v0 = vsel %vm10750_vm11, %v2187_v43, %v2441_v10  ;;  %v9467_v19 = vld [vmem:[%s12652_s7 + $0x38] sm:$0xff]   ;;  %v2513_v36 = vld [vmem:[#allocation2 + $0x24] sm:$0xf] }
 0x39d   : > { %v2189_v25 = vshrl.u32 %v7849_v58, 16  ;;  %v2192_v17 = vshll.u32 %v7849_v58, 16  ;;  %2440 = vst [vmem:[#allocation2 + $0x58] sm:$0xf] %v2186_v33  ;;  %2443 = vst [vmem:[#allocation2 + $0x5c] sm:$0x1] %v2442_v0  ;;  %v4479_v34 = vor.u32 %v4478_v26, %v4475_v46  ;;  %8719 = vmatprep.subr.bf16.mxu0 %v9467_v19 }
 0x39e   : > { %v2197_v27 = vshrl.u32 %v7850_v2, 16  ;;  %v2200_v41 = vshll.u32 %v7850_v2, 16  ;;  %v4489_v9 = vor.u32 %v4488_v48, %v4484_v5  ;;  %v2623_v40 = vshrl.u32 %v2511_v14, 16  ;;  %v2514_v38 = vld [vmem:[#allocation2 + $0x28] sm:$0xf]  ;;  %8720 = vmatpush3.bf16.msra.mxu0 %v9467_v19 }
 0x39f   : > { %v2191_v7 = vrot.slane %v2189_v25, 7  ;;  %v2626_v15 = vshll.u32 %v2511_v14, 16  ;;  %v2632_v3 = vshll.u32 %v2512_v8, 16  ;;  %v4480_v56 = vrot.slane %v4479_v34, 4  ;;  %v2558_v58 = vld [vmem:[#allocation2 + $0x2c] sm:$0x1] }
 0x3a0   : > { %v2199_v52 = vrot.slane %v2197_v27, 7  ;;  %v4490_v30 = vrot.slane %v4489_v9, 4  ;;  %v2636_v50 = vshrl.u32 %v2512_v8, 16  ;;  %v2625_v24 = vrot.slane %v2623_v40, 4  ;;  %v4430_v0 = vld [vmem:[#allocation2 + $0x24] sm:$0xf] }
 0x3a1   : > { %v2194_v21 = vor.u32 %v2192_v17, %v2191_v7  ;;  %v2195_v61 = vrot.slane %v2191_v7, 4  ;;  %v2628_v59 = vrot.slane %v2626_v15, 5  ;;  %v4485_v32 = vsel %vm10716_vm3, %v4480_v56, %v4484_v5  ;;  %v4431_v34 = vld [vmem:[#allocation2 + $0x28] sm:$0xf]  ;;  %v9942_v28 = vld [vmem:[#allocation2 + $0x44] sm:$0x1] }
 0x3a2   : > { %v2202_v11 = vor.u32 %v2200_v41, %v2199_v52  ;;  %v2204_v54 = vrot.slane %v2199_v52, 4  ;;  %v4495_v44 = vsel %vm10716_vm3, %v4490_v30, %v4494_v23  ;;  %v2634_v63 = vrot.slane %v2632_v3, 5 }
 0x3a3   : > { %v2445_v1 = vsel %vm10745_vm10, %v2194_v21, %v2444_v20  ;;  %v8043_v31 = vcombine.low %v4485_v32, %v4495_v44  ;;  %v2629_v55 = vor.u32 %v2628_v59, %v2625_v24  ;;  %v2638_v42 = vrot.slane %v2636_v50, 4  ;;  %v4432_v50 = vld [vmem:[#allocation2 + $0x2c] sm:$0x1] }
 0x3a4   : > { %v2203_v45 = vsel %vm10741_vm9, %v2195_v61, %v2202_v11  ;;  %2446 = vst [vmem:[#allocation2 + $0x60] sm:$0xf] %v2445_v1  ;;  %v2449_v4 = vsel %vm10750_vm11, %v2204_v54, %v2448_v62  ;;  %v2642_v60 = vshll.u32 %v2557_v39, 16  ;;  %v4497_v57 = vshrl.u32 %v4427_v35, 16  ;;  %v2515_v39 = vld [vmem:[#allocation2 + $0x30] sm:$0xf] }
 0x3a5   : > { %2447 = vst [vmem:[#allocation2 + $0x64] sm:$0xf] %v2203_v45  ;;  %2450 = vst [vmem:[#allocation2 + $0x68] sm:$0x1] %v2449_v4  ;;  %8865 = vmatprep.mubr.bf16.mxu1 %v8043_v31  ;;  %v2630_v6 = vrot.slane %v2629_v55, 4  ;;  %v4500_v53 = vshll.u32 %v4427_v35, 16  ;;  %v2639_v10 = vor.u32 %v2638_v42, %v2634_v63 }
 0x3a6   : > { %v4506_v46 = vshll.u32 %v4428_v29, 16  ;;  %v2644_v12 = vrot.slane %v2642_v60, 5  ;;  %v4510_v13 = vshrl.u32 %v4428_v29, 16  ;;  %v4516_v51 = vshll.u32 %v4429_v47, 16  ;;  %v2516_v54 = vld [vmem:[#allocation2 + $0x34] sm:$0xf] }
 0x3a7   : > { %v2635_v22 = vsel %vm10716_vm3, %v2630_v6, %v2634_v63  ;;  %v4499_v18 = vrot.slane %v4497_v57, 4  ;;  %v4502_v16 = vrot.slane %v4500_v53, 5  ;;  %v2640_v2 = vrot.slane %v2639_v10, 4  ;;  %v9453_v1 = vld [vmem:[%s12652_s7 + $0x148] sm:$0xff]   ;;  %v2559_v4 = vld [vmem:[#allocation2 + $0x38] sm:$0x1] }
 0x3a8   : > { %v4508_v43 = vrot.slane %v4506_v46, 5  ;;  %v4512_v14 = vrot.slane %v4510_v13, 4  ;;  %v4518_v26 = vrot.slane %v4516_v51, 5  ;;  %v2647_v5 = vshrl.u32 %v2513_v36, 16  ;;  %v4433_v6 = vld [vmem:[#allocation2 + $0x30] sm:$0xf] }
 0x3a9   : > { %v4503_v48 = vor.u32 %v4502_v16, %v4499_v18  ;;  %v2650_v23 = vshll.u32 %v2513_v36, 16  ;;  %v2656_v8 = vshll.u32 %v2514_v38, 16  ;;  %v2660_v33 = vshrl.u32 %v2514_v38, 16  ;;  %v4434_v10 = vld [vmem:[#allocation2 + $0x34] sm:$0xf] }
 0x3aa   : > { %v2645_v25 = vsel %vm10716_vm3, %v2640_v2, %v2644_v12  ;;  %v4513_v17 = vor.u32 %v4512_v14, %v4508_v43  ;;  %v2649_v27 = vrot.slane %v2647_v5, 4  ;;  %v2666_v41 = vshll.u32 %v2558_v58, 16  ;;  %v4435_v14 = vld [vmem:[#allocation2 + $0x38] sm:$0x1] }
 0x3ab   : > { %v7885_v9 = vcombine.low %v2635_v22, %v2645_v25  ;;  %v4504_v20 = vrot.slane %v4503_v48, 4  ;;  %v2652_v7 = vrot.slane %v2650_v23, 5  ;;  %v2658_v40 = vrot.slane %v2656_v8, 5  ;;  %v9454_v22 = vld [vmem:[%s12652_s7 + $0x150] sm:$0xff]   ;;  %v2517_v48 = vld [vmem:[#allocation2 + $0x3c] sm:$0xf] }
 0x3ac   : > { %v4514_v15 = vrot.slane %v4513_v17, 4  ;;  %v2662_v3 = vrot.slane %v2660_v33, 4  ;;  %v2668_v62 = vrot.slane %v2666_v41, 5  ;;  %v4521_v52 = vshrl.u32 %v4430_v0, 16  ;;  %v2518_v25 = vld [vmem:[#allocation2 + $0x40] sm:$0xf] }
 0x3ad   : > { %8677 = vmatprep.mubr.bf16.mxu0 %v7885_v9  ;;  %v4509_v56 = vsel %vm10716_vm3, %v4504_v20, %v4508_v43  ;;  %v2653_v30 = vor.u32 %v2652_v7, %v2649_v27  ;;  %v4524_v21 = vshll.u32 %v4430_v0, 16  ;;  %v4530_v61 = vshll.u32 %v4431_v34, 16  ;;  %v2560_v9 = vld [vmem:[#allocation2 + $0x44] sm:$0x1]  ;;  %v9455_v20 = vld [vmem:[%s12652_s7 + $0x158] sm:$0xff]  }
 0x3ae   : > { %v4519_v24 = vsel %vm10716_vm3, %v4514_v15, %v4518_v26  ;;  %v2663_v59 = vor.u32 %v2662_v3, %v2658_v40  ;;  %v4523_v37 = vrot.slane %v4521_v52, 4  ;;  %v4534_v11 = vshrl.u32 %v4431_v34, 16 }
 0x3af   : > { %v8044_v32 = vcombine.low %v4509_v56, %v4519_v24  ;;  %v2654_v44 = vrot.slane %v2653_v30, 4  ;;  %v4526_v35 = vrot.slane %v4524_v21, 5  ;;  %v4532_v29 = vrot.slane %v4530_v61, 5  ;;  %v9457_v21 = vld [vmem:[%s12652_s7 + $0x160] sm:$0xff]  }
 0x3b0   : > { %v2664_v31 = vrot.slane %v2663_v59, 4  ;;  %v4536_v55 = vrot.slane %v4534_v11, 4  ;;  %v4540_v63 = vshll.u32 %v4432_v50, 16  ;;  %v2671_v47 = vshrl.u32 %v2515_v39, 16 }
 0x3b1   : > { %8866 = vmatmul.mubr.bf16.vlgmr.msra.gmra.mrb[16].mxu1 %v8044_v32  ;;  %v2659_v19 = vsel %vm10716_vm3, %v2654_v44, %v2658_v40  ;;  %v4527_v45 = vor.u32 %v4526_v35, %v4523_v37  ;;  %v2674_v42 = vshll.u32 %v2515_v39, 16  ;;  %v2680_v60 = vshll.u32 %v2516_v54, 16  ;;  %v4437_v37 = vld [vmem:[#allocation2 + $0x40] sm:$0xf]  ;;  %v4438_v35 = vld [vmem:[#allocation2 + $0x44] sm:$0x1] }
 0x3b2   : > { %8898 = vmatpush3.bf16.msra.mxu1 %v10958_v49  ;;  %v2669_v57 = vsel %vm10716_vm3, %v2664_v31, %v2668_v62  ;;  %v4537_v53 = vor.u32 %v4536_v55, %v4532_v29  ;;  %v4542_v46 = vrot.slane %v4540_v63, 5  ;;  %v2673_v36 = vrot.slane %v2671_v47, 4  ;;  %v4436_v62 = vld [vmem:[#allocation2 + $0x3c] sm:$0xf]  ;;  %v2519_v63 = vld [vmem:[#allocation2 + $0x48] sm:$0xf] }
 0x3b3   : > { %v7886_v12 = vcombine.low %v2659_v19, %v2669_v57  ;;  %v4528_v13 = vrot.slane %v4527_v45, 4  ;;  %8899 = vmatprep.subr.bf16.mxu1 %v9453_v1  ;;  %v2676_v51 = vrot.slane %v2674_v42, 5  ;;  %v2682_v38 = vrot.slane %v2680_v60, 5 }
 0x3b4   : > { %v4538_v18 = vrot.slane %v4537_v53, 4  ;;  %v2684_v16 = vshrl.u32 %v2516_v54, 16  ;;  %v2690_v43 = vshll.u32 %v2559_v4, 16  ;;  %v4545_v49 = vshrl.u32 %v4433_v6, 16  ;;  %v2520_v53 = vld [vmem:[#allocation2 + $0x4c] sm:$0xf] }
 0x3b5   : > { %8678 = vmatmul.mubr.bf16.gmra.mrb[36].mxu0 %v7886_v12  ;;  %v4533_v58 = vsel %vm10716_vm3, %v4528_v13, %v4532_v29  ;;  %v2677_v2 = vor.u32 %v2676_v51, %v2673_v36  ;;  %v4548_v26 = vshll.u32 %v4433_v6, 16  ;;  %v4554_v5 = vshll.u32 %v4434_v10, 16  ;;  %v2561_v13 = vld [vmem:[#allocation2 + $0x50] sm:$0x1]  ;;  %v9460_v51 = vld [vmem:[%s12652_s7 + $0x168] sm:$0xff]  }
 0x3b6   : > { %v4543_v23 = vsel %vm10716_vm3, %v4538_v18, %v4542_v46  ;;  %v2686_v8 = vrot.slane %v2684_v16, 4  ;;  %v2692_v33 = vrot.slane %v2690_v43, 5  ;;  %v4547_v0 = vrot.slane %v4545_v49, 4  ;;  %8900 = vmatpush3.bf16.msra.mxu1 %v9453_v1  ;;  %v4439_v43 = vld [vmem:[#allocation2 + $0x48] sm:$0xf] }
 0x3b7   : > { %v8045_v17 = vcombine.low %v4533_v58, %v4543_v23  ;;  %v2678_v27 = vrot.slane %v2677_v2, 4  ;;  %v4550_v41 = vrot.slane %v4548_v26, 5  ;;  %v4556_v34 = vrot.slane %v4554_v5, 5  ;;  %8901 = vmatprep.subr.bf16.mxu1 %v9454_v22 }
 0x3b8   : > { %v2687_v7 = vor.u32 %v2686_v8, %v2682_v38  ;;  %v4558_v40 = vshrl.u32 %v4434_v10, 16  ;;  %v4564_v15 = vshll.u32 %v4435_v14, 16  ;;  %v2695_v3 = vshrl.u32 %v2517_v48, 16 }
 0x3b9   : > { %8869 = vmatprep.mubr.bf16.mxu1 %v8045_v17  ;;  %v2683_v52 = vsel %vm10716_vm3, %v2678_v27, %v2682_v38  ;;  %v4551_v56 = vor.u32 %v4550_v41, %v4547_v0  ;;  %v2698_v30 = vshll.u32 %v2517_v48, 16  ;;  %v2704_v50 = vshll.u32 %v2518_v25, 16  ;;  %v4440_v17 = vld [vmem:[#allocation2 + $0x4c] sm:$0xf]  ;;  %v9463_v27 = vld [vmem:[%s12652_s7 + $0x170] sm:$0xff]  }
 0x3ba   : > { %v2688_v61 = vrot.slane %v2687_v7, 4  ;;  %v4560_v39 = vrot.slane %v4558_v40, 4  ;;  %v4566_v24 = vrot.slane %v4564_v15, 5  ;;  %v2697_v59 = vrot.slane %v2695_v3, 4  ;;  %8902 = vmatpush3.bf16.msra.mxu1 %v9454_v22  ;;  %v4441_v7 = vld [vmem:[#allocation2 + $0x50] sm:$0x1] }
 0x3bb   : > { %v4552_v11 = vrot.slane %v4551_v56, 4  ;;  %v2700_v54 = vrot.slane %v2698_v30, 5  ;;  %v2706_v32 = vrot.slane %v2704_v50, 5  ;;  %v2708_v44 = vshrl.u32 %v2518_v25, 16  ;;  %8903 = vmatprep.subr.bf16.mxu1 %v9455_v20 }
 0x3bc   : > { %v2693_v29 = vsel %vm10716_vm3, %v2688_v61, %v2692_v33  ;;  %v4561_v1 = vor.u32 %v4560_v39, %v4556_v34  ;;  %v2714_v31 = vshll.u32 %v2560_v9, 16  ;;  %v4569_v55 = vshrl.u32 %v4436_v62, 16 }
 0x3bd   : > { %v7887_v47 = vcombine.low %v2683_v52, %v2693_v29  ;;  %v4557_v19 = vsel %vm10716_vm3, %v4552_v11, %v4556_v34  ;;  %v2701_v45 = vor.u32 %v2700_v54, %v2697_v59  ;;  %v2710_v4 = vrot.slane %v2708_v44, 4  ;;  %v2521_v59 = vld [vmem:[#allocation2 + $0x54] sm:$0xf]  ;;  %v11079_v11 = vld [vmem:[%s12652_s7 + $0x80] sm:$0xff]   ;;  %v2522_v29 = vld [vmem:[#allocation2 + $0x58] sm:$0xf] }
 0x3be   : > { %v4562_v42 = vrot.slane %v4561_v1, 4  ;;  %v2716_v60 = vrot.slane %v2714_v31, 5  ;;  %v4571_v6 = vrot.slane %v4569_v55, 4  ;;  %v4572_v57 = vshll.u32 %v4436_v62, 16  ;;  %8904 = vmatpush3.bf16.msra.mxu1 %v9455_v20  ;;  %8753 = vmatprep.subr.bf16.mxu0 %v11079_v11 }
 0x3bf   : > { %8681 = vmatprep.mubr.bf16.mxu0 %v7887_v47  ;;  %v2702_v46 = vrot.slane %v2701_v45, 4  ;;  %v2711_v36 = vor.u32 %v2710_v4, %v2706_v32  ;;  %v4578_v10 = vshll.u32 %v4437_v37, 16  ;;  %v4582_v12 = vshrl.u32 %v4437_v37, 16  ;;  %8905 = vmatprep.subr.bf16.mxu1 %v9457_v21  ;;  %v9466_v37 = vld [vmem:[%s12652_s7 + $0x178] sm:$0xff]  }
 0x3c0   : > { %v4567_v38 = vsel %vm10716_vm3, %v4562_v42, %v4566_v24  ;;  %v4574_v22 = vrot.slane %v4572_v57, 5  ;;  %v4588_v18 = vshll.u32 %v4438_v35, 16  ;;  %v2719_v16 = vshrl.u32 %v2519_v63, 16  ;;  %v2562_v47 = vld [vmem:[#allocation2 + $0x5c] sm:$0x1] }
 0x3c1   : > { %v8046_v49 = vcombine.low %v4557_v19, %v4567_v38  ;;  %v2707_v58 = vsel %vm10716_vm3, %v2702_v46, %v2706_v32  ;;  %v2712_v2 = vrot.slane %v2711_v36, 4  ;;  %v4580_v14 = vrot.slane %v4578_v10, 5  ;;  %v4442_v19 = vld [vmem:[#allocation2 + $0x54] sm:$0xf]  ;;  %v11093_v10 = vld [vmem:[%s12652_s7 + $0x180] sm:$0xff]  }
 0x3c2   : > { %v4575_v26 = vor.u32 %v4574_v22, %v4571_v6  ;;  %v4584_v5 = vrot.slane %v4582_v12, 4  ;;  %v4590_v48 = vrot.slane %v4588_v18, 5  ;;  %v2721_v23 = vrot.slane %v2719_v16, 4  ;;  %8906 = vmatpush3.bf16.msra.mxu1 %v9457_v21  ;;  %v11084_v6 = vld [vmem:[#allocation2 + $0x58] sm:$0xf] }
 0x3c3   : > { %8870 = vmatmul.mubr.bf16.gmra.mrb[20].mxu1 %v8046_v49  ;;  %v2717_v8 = vsel %vm10716_vm3, %v2712_v2, %v2716_v60  ;;  %v2722_v33 = vshll.u32 %v2519_v63, 16  ;;  %v2728_v0 = vshll.u32 %v2520_v53, 16  ;;  %v2732_v25 = vshrl.u32 %v2520_v53, 16  ;;  %8907 = vmatprep.subr.bf16.mxu1 %v9460_v51  ;;  %v11095_v49 = vld [vmem:[#allocation2 + $0x5c] sm:$0x1] }
 0x3c4   : > { %v7888_v41 = vcombine.low %v2707_v58, %v2717_v8  ;;  %v4576_v34 = vrot.slane %v4575_v26, 4  ;;  %v4585_v9 = vor.u32 %v4584_v5, %v4580_v14  ;;  %v2738_v20 = vshll.u32 %v2561_v13, 16 }
 0x3c5   : > { %v2724_v40 = vrot.slane %v2722_v33, 5  ;;  %v2730_v15 = vrot.slane %v2728_v0, 5  ;;  %v2734_v3 = vrot.slane %v2732_v25, 4  ;;  %v4593_v62 = vshrl.u32 %v4439_v43, 16  ;;  %v2523_v33 = vld [vmem:[#allocation2 + $0x60] sm:$0xf] }
 0x3c6   : > { %8682 = vmatmul.mubr.bf16.gmra.mrb[40].mxu0 %v7888_v41  ;;  %v4581_v52 = vsel %vm10716_vm3, %v4576_v34, %v4580_v14  ;;  %v4586_v56 = vrot.slane %v4585_v9, 4  ;;  %v2740_v30 = vrot.slane %v2738_v20, 5  ;;  %v4596_v50 = vshll.u32 %v4439_v43, 16  ;;  %8908 = vmatpush3.bf16.msra.mxu1 %v9460_v51  ;;  %v2524_v41 = vld [vmem:[#allocation2 + $0x64] sm:$0xf] }
 0x3c7   : > { %v2725_v21 = vor.u32 %v2724_v40, %v2721_v23  ;;  %v2735_v61 = vor.u32 %v2734_v3, %v2730_v15  ;;  %v4595_v39 = vrot.slane %v4593_v62, 4  ;;  %v4602_v24 = vshll.u32 %v4440_v17, 16  ;;  %8909 = vmatprep.subr.bf16.mxu1 %v9463_v27  ;;  %v2563_v40 = vld [vmem:[#allocation2 + $0x68] sm:$0x1] }
 0x3c8   : > { %v4591_v54 = vsel %vm10716_vm3, %v4586_v56, %v4590_v48  ;;  %v4598_v32 = vrot.slane %v4596_v50, 5  ;;  %v4606_v44 = vshrl.u32 %v4440_v17, 16  ;;  %v4612_v35 = vshll.u32 %v4441_v7, 16  ;;  %v4445_v56 = vld [vmem:[#allocation2 + $0x60] sm:$0xf] }
 0x3c9   : > { %v8047_v1 = vcombine.low %v4581_v52, %v4591_v54  ;;  %v2726_v31 = vrot.slane %v2725_v21, 4  ;;  %v2736_v55 = vrot.slane %v2735_v61, 4  ;;  %v4604_v63 = vrot.slane %v4602_v24, 5 }
 0x3ca   : > { %v4599_v45 = vor.u32 %v4598_v32, %v4595_v39  ;;  %v4608_v4 = vrot.slane %v4606_v44, 4  ;;  %v4614_v42 = vrot.slane %v4612_v35, 5  ;;  %v2743_v60 = vshrl.u32 %v2521_v59, 16  ;;  %8910 = vmatpush3.bf16.msra.mxu1 %v9463_v27  ;;  %v11107_v39 = vld [vmem:[#allocation2 + $0x64] sm:$0xf] }
 0x3cb   : > { %8873 = vmatprep.mubr.bf16.mxu1 %v8047_v1  ;;  %v2731_v57 = vsel %vm10716_vm3, %v2726_v31, %v2730_v15  ;;  %v2741_v53 = vsel %vm10716_vm3, %v2736_v55, %v2740_v30  ;;  %v2746_v46 = vshll.u32 %v2521_v59, 16  ;;  %v2752_v36 = vshll.u32 %v2522_v29, 16  ;;  %8911 = vmatprep.subr.bf16.mxu1 %v9466_v37 }
 0x3cc   : > { %v7889_v12 = vcombine.low %v2731_v57, %v2741_v53  ;;  %v4600_v13 = vrot.slane %v4599_v45, 4  ;;  %v4609_v51 = vor.u32 %v4608_v4, %v4604_v63  ;;  %v2745_v38 = vrot.slane %v2743_v60, 4  ;;  %v11113_v45 = vld [vmem:[#allocation2 + $0x68] sm:$0x1] }
 0x3cd   : > { %v2748_v22 = vrot.slane %v2746_v46, 5  ;;  %v2754_v18 = vrot.slane %v2752_v36, 5  ;;  %v2756_v16 = vshrl.u32 %v2522_v29, 16  ;;  %v2762_v43 = vshll.u32 %v2562_v47, 16  ;;  %v4448_v36 = vld [vmem:[#allocation2 + $0x6c] sm:$0xf] }
 0x3ce   : > { %8685 = vmatprep.mubr.bf16.mxu0 %v7889_v12  ;;  %v4605_v58 = vsel %vm10716_vm3, %v4600_v13, %v4604_v63  ;;  %v4610_v2 = vrot.slane %v4609_v51, 4  ;;  %v4617_v14 = vshrl.u32 %v4442_v19, 16  ;;  %v4620_v26 = vshll.u32 %v4442_v19, 16  ;;  %8912 = vmatpush3.bf16.msra.mxu1 %v9466_v37 }
 0x3cf   : > { %v2749_v5 = vor.u32 %v2748_v22, %v2745_v38  ;;  %v2758_v48 = vrot.slane %v2756_v16, 4  ;;  %v2764_v23 = vrot.slane %v2762_v43, 5  ;;  %v4626_v8 = vshll.u32 %v11084_v6, 16  ;;  %8945 = vmatprep.subr.bf16.mxu1 %v11093_v10  ;;  %v11119_v22 = vld [vmem:[#allocation2 + $0x70] sm:$0xf] }
 0x3d0   : > { %v4615_v0 = vsel %vm10716_vm3, %v4610_v2, %v4614_v42  ;;  %v4619_v25 = vrot.slane %v4617_v14, 4  ;;  %v4622_v17 = vrot.slane %v4620_v26, 5  ;;  %v4630_v27 = vshrl.u32 %v11084_v6, 16 }
 0x3d1   : > { %v8048_v34 = vcombine.low %v4605_v58, %v4615_v0  ;;  %v2750_v9 = vrot.slane %v2749_v5, 4  ;;  %v2759_v20 = vor.u32 %v2758_v48, %v2754_v18  ;;  %v4628_v7 = vrot.slane %v4626_v8, 5 }
 0x3d2   : > { %v4623_v15 = vor.u32 %v4622_v17, %v4619_v25  ;;  %v4632_v3 = vrot.slane %v4630_v27, 4  ;;  %v4636_v62 = vshll.u32 %v11095_v49, 16  ;;  %v2767_v52 = vshrl.u32 %v2523_v33, 16  ;;  %v11127_v25 = vld [vmem:[#allocation2 + $0x6c] sm:$0xf] }
 0x3d3   : > { %8874 = vmatmul.mubr.bf16.gmra.mrb[24].mxu1 %v8048_v34  ;;  %v2755_v30 = vsel %vm10716_vm3, %v2750_v9, %v2754_v18  ;;  %v2760_v50 = vrot.slane %v2759_v20, 4  ;;  %v2770_v21 = vshll.u32 %v2523_v33, 16  ;;  %v2776_v61 = vshll.u32 %v2524_v41, 16  ;;  %v11124_v33 = vld [vmem:[#allocation2 + $0x74] sm:$0x1] }
 0x3d4   : > { %v4624_v24 = vrot.slane %v4623_v15, 4  ;;  %v4633_v59 = vor.u32 %v4632_v3, %v4628_v7  ;;  %v4638_v37 = vrot.slane %v4636_v62, 5  ;;  %v2769_v54 = vrot.slane %v2767_v52, 4  ;;  %v11132_v9 = vld [vmem:[#allocation2 + $0x70] sm:$0xf] }
 0x3d5   : > { %v2765_v32 = vsel %vm10716_vm3, %v2760_v50, %v2764_v23  ;;  %v2772_v44 = vrot.slane %v2770_v21, 5  ;;  %v2778_v35 = vrot.slane %v2776_v61, 5  ;;  %v2780_v29 = vshrl.u32 %v2524_v41, 16  ;;  %v2564_v21 = vld [vmem:[#allocation2 + $0x74] sm:$0x1] }
 0x3d6   : > { %v7890_v1 = vcombine.low %v2755_v30, %v2765_v32  ;;  %v4629_v31 = vsel %vm10716_vm3, %v4624_v24, %v4628_v7  ;;  %v4634_v55 = vrot.slane %v4633_v59, 4  ;;  %v2786_v63 = vshll.u32 %v2563_v40, 16  ;;  %v11142_v59 = vld [vmem:[#allocation2 + $0x78] sm:$0xf] }
 0x3d7   : > { %v2773_v47 = vor.u32 %v2772_v44, %v2769_v54  ;;  %v2782_v19 = vrot.slane %v2780_v29, 4  ;;  %v4641_v4 = vshrl.u32 %v4445_v56, 16  ;;  %v4644_v42 = vshll.u32 %v4445_v56, 16 }
 0x3d8   : > { %8686 = vmatmul.mubr.bf16.gmra.mrb[44].mxu0 %v7890_v1  ;;  %v4639_v60 = vsel %vm10716_vm3, %v4634_v55, %v4638_v37  ;;  %v2788_v57 = vrot.slane %v2786_v63, 5  ;;  %v4650_v53 = vshll.u32 %v11107_v39, 16  ;;  %v4654_v46 = vshrl.u32 %v11107_v39, 16 }
 0x3d9   : > { %v8049_v12 = vcombine.low %v4629_v31, %v4639_v60  ;;  %v2774_v13 = vrot.slane %v2773_v47, 4  ;;  %v2783_v51 = vor.u32 %v2782_v19, %v2778_v35  ;;  %v4643_v38 = vrot.slane %v4641_v4, 4  ;;  %v2565_v4 = vld [vmem:[#allocation2 + $0x80] sm:$0x1] }
 0x3da   : > { %v4646_v18 = vrot.slane %v4644_v42, 5  ;;  %v4652_v16 = vrot.slane %v4650_v53, 5  ;;  %v4656_v43 = vrot.slane %v4654_v46, 4  ;;  %v4660_v58 = vshll.u32 %v11113_v45, 16 }
 0x3db   : > { %8877 = vmatprep.mubr.bf16.mxu1 %v8049_v12  ;;  %v2779_v2 = vsel %vm10716_vm3, %v2774_v13, %v2778_v35  ;;  %v2784_v14 = vrot.slane %v2783_v51, 4  ;;  %v4665_v26 = vshrl.u32 %v4448_v36, 16  ;;  %v4668_v5 = vshll.u32 %v4448_v36, 16  ;;  %v11144_v35 = vld [vmem:[#allocation2 + $0x7c] sm:$0xf] }
 0x3dc   : > { %v4647_v48 = vor.u32 %v4646_v18, %v4643_v38  ;;  %v4657_v23 = vor.u32 %v4656_v43, %v4652_v16  ;;  %v4662_v8 = vrot.slane %v4660_v58, 5  ;;  %v4674_v0 = vshll.u32 %v11119_v22, 16  ;;  %v4451_v36 = vld [vmem:[#allocation2 + $0x78] sm:$0xf] }
 0x3dd   : > { %v2789_v17 = vsel %vm10716_vm3, %v2784_v14, %v2788_v57  ;;  %v4667_v27 = vrot.slane %v4665_v26, 4  ;;  %v4670_v41 = vrot.slane %v4668_v5, 5  ;;  %v4678_v34 = vshrl.u32 %v11119_v22, 16 }
 0x3de   : > { %v7891_v20 = vcombine.low %v2779_v2, %v2789_v17  ;;  %v4648_v7 = vrot.slane %v4647_v48, 4  ;;  %v4658_v40 = vrot.slane %v4657_v23, 4  ;;  %v4676_v15 = vrot.slane %v4674_v0, 5  ;;  %v11155_v2 = vld [vmem:[#allocation2 + $0x7c] sm:$0xf] }
 0x3df   : > { %v4671_v3 = vor.u32 %v4670_v41, %v4667_v27  ;;  %v4680_v62 = vrot.slane %v4678_v34, 4  ;;  %v4684_v52 = vshll.u32 %v11124_v33, 16  ;;  %v2791_v56 = vshrl.u32 %v11127_v25, 16  ;;  %v11159_v17 = vld [vmem:[#allocation2 + $0x80] sm:$0x1] }
 0x3e0   : > { %8689 = vmatprep.mubr.bf16.mxu0 %v7891_v20  ;;  %v4653_v30 = vsel %vm10716_vm3, %v4648_v7, %v4652_v16  ;;  %v4663_v50 = vsel %vm10716_vm3, %v4658_v40, %v4662_v8  ;;  %v2794_v61 = vshll.u32 %v11127_v25, 16  ;;  %v2800_v24 = vshll.u32 %v11132_v9, 16  ;;  %v4454_v40 = vld [vmem:[#allocation2 + $0x84] sm:$0xf] }
 0x3e1   : > { %v8050_v37 = vcombine.low %v4653_v30, %v4663_v50  ;;  %v4672_v54 = vrot.slane %v4671_v3, 4  ;;  %v4681_v32 = vor.u32 %v4680_v62, %v4676_v15  ;;  %v4686_v44 = vrot.slane %v4684_v52, 5 }
 0x3e2   : > { %v2793_v29 = vrot.slane %v2791_v56, 4  ;;  %v2796_v1 = vrot.slane %v2794_v61, 5  ;;  %v2802_v31 = vrot.slane %v2800_v24, 5  ;;  %v2804_v55 = vshrl.u32 %v11132_v9, 16  ;;  %v11165_v56 = vld [vmem:[#allocation2 + $0x88] sm:$0xf] }
 0x3e3   : > { %8878 = vmatmul.mubr.bf16.gmra.mrb[28].mxu1 %v8050_v37  ;;  %v4677_v63 = vsel %vm10716_vm3, %v4672_v54, %v4676_v15  ;;  %v4682_v47 = vrot.slane %v4681_v32, 4  ;;  %v2810_v19 = vshll.u32 %v2564_v21, 16  ;;  %v2815_v42 = vshrl.u32 %v11142_v59, 16  ;;  %v11170_v32 = vld [vmem:[#allocation2 + $0x8c] sm:$0x1] }
 0x3e4   : > { %v2797_v60 = vor.u32 %v2796_v1, %v2793_v29  ;;  %v2806_v57 = vrot.slane %v2804_v55, 4  ;;  %v2818_v53 = vshll.u32 %v11142_v59, 16  ;;  %v2824_v46 = vshll.u32 %v11144_v35, 16 }
 0x3e5   : > { %v4687_v12 = vsel %vm10716_vm3, %v4682_v47, %v4686_v44  ;;  %v2812_v13 = vrot.slane %v2810_v19, 5  ;;  %v2817_v51 = vrot.slane %v2815_v42, 4  ;;  %v2828_v38 = vshrl.u32 %v11144_v35, 16 }
 0x3e6   : > { %v8051_v18 = vcombine.low %v4677_v63, %v4687_v12  ;;  %v2798_v16 = vrot.slane %v2797_v60, 4  ;;  %v2807_v43 = vor.u32 %v2806_v57, %v2802_v31  ;;  %v2820_v58 = vrot.slane %v2818_v53, 5  ;;  %v11175_v63 = vld [vmem:[#allocation2 + $0x84] sm:$0xf]  ;;  %v11177_v60 = vld [vmem:[#allocation2 + $0x88] sm:$0xf] }
 0x3e7   : > { %v2826_v14 = vrot.slane %v2824_v46, 5  ;;  %v2830_v26 = vrot.slane %v2828_v38, 4  ;;  %v2834_v5 = vshll.u32 %v2565_v4, 16  ;;  %v4689_v48 = vshrl.u32 %v4451_v36, 16 }
 0x3e8   : > { %8881 = vmatprep.mubr.bf16.mxu1 %v8051_v18  ;;  %v2803_v23 = vsel %vm10716_vm3, %v2798_v16, %v2802_v31  ;;  %v2808_v8 = vrot.slane %v2807_v43, 4  ;;  %v2821_v0 = vor.u32 %v2820_v58, %v2817_v51  ;;  %v4692_v27 = vshll.u32 %v4451_v36, 16  ;;  %v2566_v51 = vld [vmem:[#allocation2 + $0x8c] sm:$0x1] }
 0x3e9   : > { %v2831_v41 = vor.u32 %v2830_v26, %v2826_v14  ;;  %v2836_v34 = vrot.slane %v2834_v5, 5  ;;  %v4691_v20 = vrot.slane %v4689_v48, 4  ;;  %v4698_v7 = vshll.u32 %v11155_v2, 16  ;;  %v11186_v26 = vld [vmem:[#allocation2 + $0x90] sm:$0xf] }
 0x3ea   : > { %v2813_v15 = vsel %vm10716_vm3, %v2808_v8, %v2812_v13  ;;  %v2822_v3 = vrot.slane %v2821_v0, 4  ;;  %v4694_v62 = vrot.slane %v4692_v27, 5  ;;  %v4702_v52 = vshrl.u32 %v11155_v2, 16  ;;  %v11191_v0 = vld [vmem:[#allocation2 + $0x94] sm:$0xf] }
 0x3eb   : > { %v7892_v30 = vcombine.low %v2803_v23, %v2813_v15  ;;  %v2832_v50 = vrot.slane %v2831_v41, 4  ;;  %v4700_v21 = vrot.slane %v4698_v7, 5  ;;  %v4708_v61 = vshll.u32 %v11159_v17, 16 }
 0x3ec   : > { %v2827_v24 = vsel %vm10716_vm3, %v2822_v3, %v2826_v14  ;;  %v4695_v37 = vor.u32 %v4694_v62, %v4691_v20  ;;  %v4704_v54 = vrot.slane %v4702_v52, 4  ;;  %v4713_v44 = vshrl.u32 %v4454_v40, 16 }
 0x3ed   : > { %8690 = vmatmul.mubr.bf16.gmra.mrb[48].mxu0 %v7892_v30  ;;  %v2837_v29 = vsel %vm10716_vm3, %v2832_v50, %v2836_v34  ;;  %v4710_v1 = vrot.slane %v4708_v61, 5  ;;  %v4716_v31 = vshll.u32 %v4454_v40, 16  ;;  %v4722_v55 = vshll.u32 %v11165_v56, 16  ;;  %v2567_v30 = vld [vmem:[#allocation2 + $0x98] sm:$0x1] }
 0x3ee   : > { %v7893_v47 = vcombine.low %v2827_v24, %v2837_v29  ;;  %v4696_v19 = vrot.slane %v4695_v37, 4  ;;  %v4705_v4 = vor.u32 %v4704_v54, %v4700_v21  ;;  %v4715_v42 = vrot.slane %v4713_v44, 4  ;;  %v4457_v44 = vld [vmem:[#allocation2 + $0x90] sm:$0xf] }
 0x3ef   : > { %v4718_v57 = vrot.slane %v4716_v31, 5  ;;  %v4724_v53 = vrot.slane %v4722_v55, 5  ;;  %v4726_v46 = vshrl.u32 %v11165_v56, 16  ;;  %v4732_v36 = vshll.u32 %v11170_v32, 16 }
 0x3f0   : > { %8693 = vmatprep.mubr.bf16.mxu0 %v7893_v47  ;;  %v4701_v12 = vsel %vm10716_vm3, %v4696_v19, %v4700_v21  ;;  %v4706_v13 = vrot.slane %v4705_v4, 4  ;;  %v2839_v38 = vshrl.u32 %v11175_v63, 16  ;;  %v2842_v18 = vshll.u32 %v11175_v63, 16  ;;  %v11201_v47 = vld [vmem:[#allocation2 + $0x94] sm:$0xf] }
 0x3f1   : > { %v4719_v16 = vor.u32 %v4718_v57, %v4715_v42  ;;  %v4728_v43 = vrot.slane %v4726_v46, 4  ;;  %v4734_v58 = vrot.slane %v4732_v36, 5  ;;  %v2848_v14 = vshll.u32 %v11177_v60, 16  ;;  %v11205_v36 = vld [vmem:[#allocation2 + $0x98] sm:$0x1] }
 0x3f2   : > { %v4711_v5 = vsel %vm10716_vm3, %v4706_v13, %v4710_v1  ;;  %v2841_v48 = vrot.slane %v2839_v38, 4  ;;  %v2844_v23 = vrot.slane %v2842_v18, 5  ;;  %v2852_v8 = vshrl.u32 %v11177_v60, 16 }
 0x3f3   : > { %v8052_v27 = vcombine.low %v4701_v12, %v4711_v5  ;;  %v4720_v41 = vrot.slane %v4719_v16, 4  ;;  %v4729_v34 = vor.u32 %v4728_v43, %v4724_v53  ;;  %v2850_v20 = vrot.slane %v2848_v14, 5  ;;  %v4460_v43 = vld [vmem:[#allocation2 + $0x9c] sm:$0xf] }
 0x3f4   : > { %v2845_v7 = vor.u32 %v2844_v23, %v2841_v48  ;;  %v2854_v40 = vrot.slane %v2852_v8, 4  ;;  %v2858_v15 = vshll.u32 %v2566_v51, 16  ;;  %v2863_v3 = vshrl.u32 %v11186_v26, 16  ;;  %v11211_v23 = vld [vmem:[#allocation2 + $0xa0] sm:$0xf] }
 0x3f5   : > { %8882 = vmatmul.mubr.bf16.gmra.mrb[0].mxu1 %v8052_v27  ;;  %v4725_v62 = vsel %vm10716_vm3, %v4720_v41, %v4724_v53  ;;  %v4730_v52 = vrot.slane %v4729_v34, 4  ;;  %v2866_v50 = vshll.u32 %v11186_v26, 16  ;;  %v2872_v21 = vshll.u32 %v11191_v0, 16 }
 0x3f6   : > { %v2846_v61 = vrot.slane %v2845_v7, 4  ;;  %v2855_v24 = vor.u32 %v2854_v40, %v2850_v20  ;;  %v2860_v37 = vrot.slane %v2858_v15, 5  ;;  %v2865_v54 = vrot.slane %v2863_v3, 4 }
 0x3f7   : > { %v4735_v29 = vsel %vm10716_vm3, %v4730_v52, %v4734_v58  ;;  %v2868_v1 = vrot.slane %v2866_v50, 5  ;;  %v2874_v31 = vrot.slane %v2872_v21, 5  ;;  %v2876_v55 = vshrl.u32 %v11191_v0, 16  ;;  %v11219_v21 = vld [vmem:[#allocation2 + $0x9c] sm:$0xf] }
 0x3f8   : > { %v8053_v19 = vcombine.low %v4725_v62, %v4735_v29  ;;  %v2851_v4 = vsel %vm10716_vm3, %v2846_v61, %v2850_v20  ;;  %v2856_v42 = vrot.slane %v2855_v24, 4  ;;  %v2882_v57 = vshll.u32 %v2567_v30, 16  ;;  %v11216_v30 = vld [vmem:[#allocation2 + $0xa4] sm:$0x1] }
 0x3f9   : > { %v2869_v53 = vor.u32 %v2868_v1, %v2865_v54  ;;  %v2878_v46 = vrot.slane %v2876_v55, 4  ;;  %v4737_v12 = vshrl.u32 %v4457_v44, 16  ;;  %v4740_v13 = vshll.u32 %v4457_v44, 16  ;;  %v11224_v44 = vld [vmem:[#allocation2 + $0xa0] sm:$0xf] }
 0x3fa   : > { %8885 = vmatprep.mubr.bf16.mxu1 %v8053_v19  ;;  %v2861_v51 = vsel %vm10716_vm3, %v2856_v42, %v2860_v37  ;;  %v2884_v38 = vrot.slane %v2882_v57, 5  ;;  %v4746_v18 = vshll.u32 %v11201_v47, 16  ;;  %v4750_v16 = vshrl.u32 %v11201_v47, 16 }
 0x3fb   : > { %v7894_v58 = vcombine.low %v2851_v4, %v2861_v51  ;;  %v2870_v14 = vrot.slane %v2869_v53, 4  ;;  %v2879_v5 = vor.u32 %v2878_v46, %v2874_v31  ;;  %v4739_v48 = vrot.slane %v4737_v12, 4  ;;  %v2568_v12 = vld [vmem:[#allocation2 + $0xa4] sm:$0x1] }
 0x3fc   : > { %v4742_v8 = vrot.slane %v4740_v13, 5  ;;  %v4748_v27 = vrot.slane %v4746_v18, 5  ;;  %v4752_v41 = vrot.slane %v4750_v16, 4  ;;  %v4756_v34 = vshll.u32 %v11205_v36, 16 }
 0x3fd   : > { %8694 = vmatmul.mubr.bf16.gmra.mrb[52].mxu0 %v7894_v58  ;;  %v2875_v20 = vsel %vm10716_vm3, %v2870_v14, %v2874_v31  ;;  %v2880_v7 = vrot.slane %v2879_v5, 4  ;;  %v4761_v40 = vshrl.u32 %v4460_v43, 16  ;;  %v4764_v15 = vshll.u32 %v4460_v43, 16  ;;  %v11236_v14 = vld [vmem:[#allocation2 + $0xac] sm:$0xf] }
 0x3fe   : > { %v4743_v3 = vor.u32 %v4742_v8, %v4739_v48  ;;  %v4753_v62 = vor.u32 %v4752_v41, %v4748_v27  ;;  %v4758_v52 = vrot.slane %v4756_v34, 5  ;;  %v4770_v50 = vshll.u32 %v11211_v23, 16 }
 0x3ff   : > { %v2885_v61 = vsel %vm10716_vm3, %v2880_v7, %v2884_v38  ;;  %v4763_v24 = vrot.slane %v4761_v40, 4  ;;  %v4766_v37 = vrot.slane %v4764_v15, 5  ;;  %v4774_v54 = vshrl.u32 %v11211_v23, 16  ;;  %v11234_v38 = vld [vmem:[#allocation2 + $0xa8] sm:$0xf] }
 0x400   : > { %v7895_v29 = vcombine.low %v2875_v20, %v2885_v61  ;;  %v4744_v1 = vrot.slane %v4743_v3, 4  ;;  %v4754_v31 = vrot.slane %v4753_v62, 4  ;;  %v4772_v55 = vrot.slane %v4770_v50, 5  ;;  %v2569_v7 = vld [vmem:[#allocation2 + $0xb0] sm:$0x1] }
 0x401   : > { %v4767_v19 = vor.u32 %v4766_v37, %v4763_v24  ;;  %v4776_v4 = vrot.slane %v4774_v54, 4  ;;  %v4780_v42 = vshll.u32 %v11216_v30, 16  ;;  %v2887_v57 = vshrl.u32 %v11219_v21, 16  ;;  %v4463_v50 = vld [vmem:[#allocation2 + $0xa8] sm:$0xf] }
 0x402   : > { %8697 = vmatprep.mubr.bf16.mxu0 %v7895_v29  ;;  %v4749_v53 = vsel %vm10716_vm3, %v4744_v1, %v4748_v27  ;;  %v4759_v46 = vsel %vm10716_vm3, %v4754_v31, %v4758_v52  ;;  %v2890_v13 = vshll.u32 %v11219_v21, 16  ;;  %v2896_v51 = vshll.u32 %v11224_v44, 16 }
 0x403   : > { %v8054_v18 = vcombine.low %v4749_v53, %v4759_v46  ;;  %v4768_v16 = vrot.slane %v4767_v19, 4  ;;  %v4777_v43 = vor.u32 %v4776_v4, %v4772_v55  ;;  %v4782_v58 = vrot.slane %v4780_v42, 5  ;;  %v11247_v19 = vld [vmem:[#allocation2 + $0xac] sm:$0xf] }
 0x404   : > { %v2889_v5 = vrot.slane %v2887_v57, 4  ;;  %v2892_v48 = vrot.slane %v2890_v13, 5  ;;  %v2898_v8 = vrot.slane %v2896_v51, 5  ;;  %v2900_v27 = vshrl.u32 %v11224_v44, 16  ;;  %v11251_v51 = vld [vmem:[#allocation2 + $0xb0] sm:$0x1] }
 0x405   : > { %8886 = vmatmul.mubr.bf16.gmra.mrb[4].mxu1 %v8054_v18  ;;  %v4773_v41 = vsel %vm10716_vm3, %v4768_v16, %v4772_v55  ;;  %v4778_v34 = vrot.slane %v4777_v43, 4  ;;  %v2906_v20 = vshll.u32 %v2568_v12, 16  ;;  %v2911_v40 = vshrl.u32 %v11234_v38, 16 }
 0x406   : > { %v2893_v15 = vor.u32 %v2892_v48, %v2889_v5  ;;  %v2902_v3 = vrot.slane %v2900_v27, 4  ;;  %v2914_v62 = vshll.u32 %v11234_v38, 16  ;;  %v2920_v52 = vshll.u32 %v11236_v14, 16  ;;  %v4466_v48 = vld [vmem:[#allocation2 + $0xb4] sm:$0xf] }
 0x407   : > { %v4783_v61 = vsel %vm10716_vm3, %v4778_v34, %v4782_v58  ;;  %v2908_v24 = vrot.slane %v2906_v20, 5  ;;  %v2913_v37 = vrot.slane %v2911_v40, 4  ;;  %v2924_v54 = vshrl.u32 %v11236_v14, 16 }
 0x408   : > { %v8055_v29 = vcombine.low %v4773_v41, %v4783_v61  ;;  %v2894_v1 = vrot.slane %v2893_v15, 4  ;;  %v2903_v31 = vor.u32 %v2902_v3, %v2898_v8  ;;  %v2916_v55 = vrot.slane %v2914_v62, 5  ;;  %v11262_v61 = vld [vmem:[#allocation2 + $0xbc] sm:$0x1] }
 0x409   : > { %v2922_v4 = vrot.slane %v2920_v52, 5  ;;  %v2926_v42 = vrot.slane %v2924_v54, 4  ;;  %v2930_v57 = vshll.u32 %v2569_v7, 16  ;;  %v4785_v53 = vshrl.u32 %v4463_v50, 16  ;;  %v11257_v7 = vld [vmem:[#allocation2 + $0xb8] sm:$0xf] }
 0x40a   : > { %8889 = vmatprep.mubr.bf16.mxu1 %v8055_v29  ;;  %v2899_v46 = vsel %vm10716_vm3, %v2894_v1, %v2898_v8  ;;  %v2904_v12 = vrot.slane %v2903_v31, 4  ;;  %v2917_v13 = vor.u32 %v2916_v55, %v2913_v37  ;;  %v4788_v18 = vshll.u32 %v4463_v50, 16  ;;  %v11267_v31 = vld [vmem:[#allocation2 + $0xb4] sm:$0xf] }
 0x40b   : > { %v2927_v16 = vor.u32 %v2926_v42, %v2922_v4  ;;  %v2932_v43 = vrot.slane %v2930_v57, 5  ;;  %v4787_v58 = vrot.slane %v4785_v53, 4  ;;  %v4794_v5 = vshll.u32 %v11247_v19, 16  ;;  %12726 = vst [vmem:[#allocation10_spill] sm:$0xff] %v11267_v31 }
 0x40c   : > { %v2909_v27 = vsel %vm10716_vm3, %v2904_v12, %v2908_v24  ;;  %v2918_v41 = vrot.slane %v2917_v13, 4  ;;  %v4790_v34 = vrot.slane %v4788_v18, 5  ;;  %v4798_v20 = vshrl.u32 %v11247_v19, 16 }
 0x40d   : > { %v7896_v8 = vcombine.low %v2899_v46, %v2909_v27  ;;  %v2928_v40 = vrot.slane %v2927_v16, 4  ;;  %v4796_v15 = vrot.slane %v4794_v5, 5  ;;  %v4804_v3 = vshll.u32 %v11251_v51, 16 }
 0x40e   : > { %v2923_v62 = vsel %vm10716_vm3, %v2918_v41, %v2922_v4  ;;  %v4791_v52 = vor.u32 %v4790_v34, %v4787_v58  ;;  %v4800_v50 = vrot.slane %v4798_v20, 4  ;;  %v4809_v37 = vshrl.u32 %v4466_v48, 16  ;;  %v11269_v4 = vld [vmem:[#allocation2 + $0xb8] sm:$0xf]  ;;  %v11275_v58 = vld [vmem:[#allocation2 + $0xbc] sm:$0x1] }
 0x40f   : > { %8698 = vmatmul.mubr.bf16.gmra.mrb[56].mxu0 %v7896_v8  ;;  %v2933_v24 = vsel %vm10716_vm3, %v2928_v40, %v2932_v43  ;;  %v4806_v54 = vrot.slane %v4804_v3, 5  ;;  %v4812_v29 = vshll.u32 %v4466_v48, 16  ;;  %v4818_v1 = vshll.u32 %v11257_v7, 16  ;;  %12727 = vst [vmem:[#allocation17_spill] sm:$0xff] %v11275_v58  ;;  %v4469_v8 = vld [vmem:[#allocation2 + $0xc0] sm:$0xf] }
 0x410   : > { %v7897_v55 = vcombine.low %v2923_v62, %v2933_v24  ;;  %v4792_v42 = vrot.slane %v4791_v52, 4  ;;  %v4801_v57 = vor.u32 %v4800_v50, %v4796_v15  ;;  %v4811_v53 = vrot.slane %v4809_v37, 4  ;;  %v11283_v52 = vld [vmem:[#allocation2 + $0xc4] sm:$0xf] }
 0x411   : > { %v4814_v46 = vrot.slane %v4812_v29, 5  ;;  %v4820_v12 = vrot.slane %v4818_v1, 5  ;;  %v4822_v13 = vshrl.u32 %v11257_v7, 16  ;;  %v4828_v18 = vshll.u32 %v11262_v61, 16 }
 0x412   : > { %8701 = vmatprep.mubr.bf16.mxu0 %v7897_v55  ;;  %v4797_v16 = vsel %vm10716_vm3, %v4792_v42, %v4796_v15  ;;  %v4802_v43 = vrot.slane %v4801_v57, 4  ;;  %v2935_v5 = vshrl.u32 %v11267_v31, 16  ;;  %v2938_v48 = vshll.u32 %v11267_v31, 16  ;;  %v11362_v31 = vld [vmem:[#allocation2 + $0x40] sm:$0xf] }
 0x413   : > { %v4815_v27 = vor.u32 %v4814_v46, %v4811_v53  ;;  %v4824_v41 = vrot.slane %v4822_v13, 4  ;;  %v4830_v34 = vrot.slane %v4828_v18, 5  ;;  %v2944_v20 = vshll.u32 %v11269_v4, 16 }
 0x414   : > { %v4807_v40 = vsel %vm10716_vm3, %v4802_v43, %v4806_v54  ;;  %v2937_v3 = vrot.slane %v2935_v5, 4  ;;  %v2940_v62 = vrot.slane %v2938_v48, 5  ;;  %v2948_v15 = vshrl.u32 %v11269_v4, 16  ;;  %v11289_v5 = vld [vmem:[#allocation2 + $0xc8] sm:$0x1] }
 0x415   : > { %v8056_v50 = vcombine.low %v4797_v16, %v4807_v40  ;;  %v4816_v37 = vrot.slane %v4815_v27, 4  ;;  %v4825_v24 = vor.u32 %v4824_v41, %v4820_v12  ;;  %v2946_v29 = vrot.slane %v2944_v20, 5 }
 0x416   : > { %v2941_v1 = vor.u32 %v2940_v62, %v2937_v3  ;;  %v2950_v55 = vrot.slane %v2948_v15, 4  ;;  %v2954_v42 = vshll.u32 %v11275_v58, 16  ;;  %v4833_v57 = vshrl.u32 %v4469_v8, 16  ;;  %v9943_v58 = vld [vmem:[#allocation2 + $0x30] sm:$0xf] }
 0x417   : > { %8890 = vmatmul.mubr.bf16.gmra.mrb[8].mxu1 %v8056_v50  ;;  %v4821_v53 = vsel %vm10716_vm3, %v4816_v37, %v4820_v12  ;;  %v4826_v54 = vrot.slane %v4825_v24, 4  ;;  %v4836_v46 = vshll.u32 %v4469_v8, 16  ;;  %v4842_v13 = vshll.u32 %v11283_v52, 16  ;;  %v5178_v37 = vld [vmem:[#allocation2 + $0xc] sm:$0xe] }
 0x418   : > { %v2942_v18 = vrot.slane %v2941_v1, 4  ;;  %v2951_v43 = vor.u32 %v2950_v55, %v2946_v29  ;;  %v4835_v16 = vrot.slane %v4833_v57, 4  ;;  %v4846_v20 = vshrl.u32 %v11283_v52, 16 }
 0x419   : > { %v4831_v48 = vsel %vm10716_vm3, %v4826_v54, %v4830_v34  ;;  %v4838_v27 = vrot.slane %v4836_v46, 5  ;;  %v4844_v41 = vrot.slane %v4842_v13, 5  ;;  %v2956_v8 = vrot.slane %v2954_v42, 5  ;;  %v9924_v34 = vld [vmem:[#allocation2 + $0x10] sm:$0xf] }
 0x41a   : > { %v8057_v40 = vcombine.low %v4821_v53, %v4831_v48  ;;  %v2947_v12 = vsel %vm10716_vm3, %v2942_v18, %v2946_v29  ;;  %v2952_v3 = vrot.slane %v2951_v43, 4  ;;  %v4848_v15 = vrot.slane %v4846_v20, 4  ;;  %v9925_v46 = vld [vmem:[#allocation2 + $0x14] sm:$0x1]  ;;  %v9926_v13 = vld [vmem:[#allocation2] sm:$0xf] }
 0x41b   : > { %v4839_v62 = vor.u32 %v4838_v27, %v4835_v16  ;;  %v4852_v50 = vshll.u32 %v11289_v5, 16  ;;  %v5244_v1 = vrot.slane %v9924_v34, 5  ;;  %v8067_v54 = vrot.slane %v5178_v37, 9  ;;  %v11299_v18 = vld [vmem:[#allocation2 + $0x4] sm:$0xf] }
 0x41c   : > { %8893 = vmatprep.mubr.bf16.mxu1 %v8057_v40  ;;  %v2957_v24 = vsel %vm10716_vm3, %v2952_v3, %v2956_v8  ;;  %v4849_v53 = vor.u32 %v4848_v15, %v4844_v41  ;;  %v5247_v42 = vrot.slane %v9925_v46, 5  ;;  %v7907_v43 = vcombine.low %v9926_v13, %v11299_v18  ;;  %v5179_v37 = vld [vmem:[#allocation2 + $0x18] sm:$0xe]  ;;  %v9932_v13 = vld [vmem:[#allocation2 + $0x20] sm:$0x1] }
 0x41d   : > { %v7898_v55 = vcombine.low %v2947_v12, %v2957_v24  ;;  %v4840_v57 = vrot.slane %v4839_v62, 4  ;;  %v5246_v29 = vrot.slane %v5244_v1, 4  ;;  %v4854_v27 = vrot.slane %v4852_v50, 5  ;;  %v9928_v12 = vld [vmem:[#allocation2 + $0x1c] sm:$0xf] }
 0x41e   : > { %v4850_v48 = vrot.slane %v4849_v53, 4  ;;  %v5251_v3 = vrot.slane %v9928_v12, 5  ;;  %v9929_v62 = vld [vmem:[#allocation2 + $0x28] sm:$0xf]  ;;  %v5245_v50 = vsel %vm11306_vm14, %v8067_v54, %v5244_v1  ;;  %v9930_v53 = vld [vmem:[#allocation2 + $0xc] sm:$0xf] }
 0x41f   : > { %8702 = vmatmul.mubr.bf16.gmra.mrb[60].mxu0 %v7898_v55  ;;  %v4845_v16 = vsel %vm10716_vm3, %v4840_v57, %v4844_v41  ;;  %v5248_v40 = vsel %vm11306_vm14, %v5246_v29, %v5247_v42  ;;  %v5258_v15 = vrot.slane %v9929_v62, 5  ;;  %v5180_v55 = vld [vmem:[#allocation2 + $0x24] sm:$0xe]  ;;  %v11316_v29 = vld [vmem:[#allocation2 + $0x10] sm:$0xf]  ;;  %v8068_v42 = vrot.slane %v5179_v37, 9 }
 0x420   : > { %8721 = vmatprep.mubr.bf16.mxu0 %v7907_v43  ;;  %v4855_v8 = vsel %vm10716_vm3, %v4850_v48, %v4854_v27  ;;  %v8099_v24 = vcombine.low %v5245_v50, %v5248_v40  ;;  %v5253_v34 = vrot.slane %v5251_v3, 4  ;;  %v7908_v46 = vcombine.low %v9930_v53, %v11316_v29  ;;  %v9933_v1 = vld [vmem:[#allocation2 + $0x18] sm:$0xf]  ;;  %v11322_v54 = vld [vmem:[#allocation2 + $0x1c] sm:$0xf] }
 0x421   : > { %v8058_v41 = vcombine.low %v4845_v16, %v4855_v8  ;;  %v5260_v57 = vrot.slane %v5258_v15, 4  ;;  %v5254_v43 = vrot.slane %v9932_v13, 5  ;;  %v9485_v16 = vld [vmem:[%s12652_s7 + $0x88] sm:$0xff]   ;;  %v7909_v48 = vcombine.low %v9933_v1, %v11322_v54  ;;  %v9936_v62 = vld [vmem:[#allocation2 + $0x34] sm:$0xf] }
 0x422   : > { %v8069_v27 = vrot.slane %v5180_v55, 9  ;;  %v9935_v40 = vld [vmem:[#allocation2 + $0x2c] sm:$0x1]  ;;  %v9937_v50 = vld [vmem:[#allocation2 + $0x40] sm:$0xf]  ;;  %v5252_v53 = vsel %vm11306_vm14, %v8068_v42, %v5251_v3 }
 0x423   : > { %8894 = vmatmul.mubr.bf16.gmra.mrb[12].mxu1 %v8058_v41  ;;  %v5261_v12 = vrot.slane %v9935_v40, 5  ;;  %v5255_v8 = vsel %vm11306_vm14, %v5253_v34, %v5254_v43  ;;  %v5265_v41 = vrot.slane %v9936_v62, 5  ;;  %v5272_v37 = vrot.slane %v9937_v50, 5  ;;  %v9474_v55 = vld [vmem:[%s12652_s7 + $0x188] sm:$0xff]   ;;  %v5181_v13 = vld [vmem:[#allocation2 + $0x30] sm:$0xe] }
 0x424   : > { %8913 = vmatprep.mubr.bf16.mxu1 %v8099_v24  ;;  %v5259_v34 = vsel %vm11306_vm14, %v8069_v27, %v5258_v15  ;;  %v5182_v43 = vld [vmem:[#allocation2 + $0x3c] sm:$0xe]  ;;  %v9938_v40 = vld [vmem:[#allocation2 + $0x4c] sm:$0xf]  ;;  %v9939_v42 = vld [vmem:[#allocation2 + $0x24] sm:$0xf] }
 0x425   : > { %v5262_v24 = vsel %vm11306_vm14, %v5260_v57, %v5261_v12  ;;  %v9487_v57 = vld [vmem:[%s12652_s7 + $0x90] sm:$0xff]   ;;  %v5279_v3 = vrot.slane %v9938_v40, 5  ;;  %v11340_v12 = vld [vmem:[#allocation2 + $0x28] sm:$0xf]  ;;  %v5286_v15 = vrot.slane %v11084_v6, 5  ;;  %v8070_v27 = vrot.slane %v5181_v13, 9 }
 0x426   : > { %v8101_v1 = vcombine.low %v5259_v34, %v5262_v24  ;;  %12730 = vst [vmem:[#allocation4_spill] sm:$0xff] %v11340_v12  ;;  %v5183_v62 = vld [vmem:[#allocation2 + $0x48] sm:$0xe]  ;;  %v5184_v50 = vld [vmem:[#allocation2 + $0x54] sm:$0xe]  ;;  %v8071_v34 = vrot.slane %v5182_v43, 9 }
 0x427   : > { %8722 = vmatmul.mubr.bf16.vlgmr.msra.gmra.mrb[32].mxu0 %v7908_v46  ;;  %v8100_v46 = vcombine.low %v5252_v53, %v5255_v8  ;;  %v7910_v8 = vcombine.low %v9939_v42, %v11340_v12  ;;  %v9941_v24 = vld [vmem:[#allocation2 + $0x38] sm:$0x1]  ;;  %v5275_v40 = vrot.slane %v9942_v28, 5  ;;  %v11348_v42 = vld [vmem:[#allocation2 + $0x34] sm:$0xf]  ;;  %v5281_v13 = vrot.slane %v5279_v3, 4 }
 0x428   : > { %8725 = vmatprep.mubr.bf16.mxu0 %v7909_v48  ;;  %8754 = vmatpush3.bf16.msra.mxu0 %v11079_v11  ;;  %v5267_v11 = vrot.slane %v5265_v41, 4  ;;  %v5274_v48 = vrot.slane %v5272_v37, 4  ;;  %v5268_v53 = vrot.slane %v9941_v24, 5  ;;  %12731 = vst [vmem:[#allocation11_spill] sm:$0xff] %v11348_v42  ;;  %v7911_v12 = vcombine.low %v9943_v58, %v11348_v42  ;;  %v9477_v6 = vld [vmem:[%s12652_s7 + $0x190] sm:$0xff]  }
 0x429   : > { %8755 = vmatprep.subr.bf16.mxu0 %v9485_v16  ;;  %v8073_v43 = vrot.slane %v5184_v50, 9  ;;  %v5189_v58 = vld [vmem:[#allocation2 + $0x90] sm:$0xe]  ;;  %v5266_v24 = vsel %vm11306_vm14, %v8070_v27, %v5265_v41  ;;  %v9945_v42 = vld [vmem:[#allocation2 + $0x3c] sm:$0xf] }
 0x42a   : > { %v5276_v28 = vsel %vm11306_vm14, %v5274_v48, %v5275_v40  ;;  %v9947_v48 = vld [vmem:[#allocation2 + $0x50] sm:$0x1]  ;;  %v9948_v50 = vld [vmem:[#allocation2 + $0x48] sm:$0xf]  ;;  %v11367_v40 = vld [vmem:[#allocation2 + $0x4c] sm:$0xf] }
 0x42b   : > { %8914 = vmatmul.mubr.bf16.vlgmr.msra.gmra.mrb[16].mxu1 %v8100_v46  ;;  %v9490_v46 = vld [vmem:[%s12652_s7 + $0x98] sm:$0xff]   ;;  %12732 = vst [vmem:[#allocation5_spill] sm:$0xff] %v11367_v40  ;;  %v7913_v41 = vcombine.low %v9948_v50, %v11367_v40  ;;  %v5293_v40 = vrot.slane %v11107_v39, 5 }
 0x42c   : > { %8756 = vmatpush3.bf16.msra.mxu0 %v9485_v16  ;;  %8946 = vmatpush3.bf16.msra.mxu1 %v11093_v10  ;;  %v5269_v10 = vsel %vm11306_vm14, %v5267_v11, %v5268_v53  ;;  %v8072_v16 = vrot.slane %v5183_v62, 9  ;;  %v7912_v11 = vcombine.low %v9945_v42, %v11362_v31  ;;  %v5282_v62 = vrot.slane %v9947_v48, 5  ;;  %v11365_v53 = vld [vmem:[#allocation2 + $0x60] sm:$0xe]  ;;  %v5190_v27 = vld [vmem:[#allocation2 + $0x9c] sm:$0xe] }
 0x42d   : > { %8917 = vmatprep.mubr.bf16.mxu1 %v8101_v1  ;;  %8947 = vmatprep.subr.bf16.mxu1 %v9474_v55  ;;  %v5288_v1 = vrot.slane %v5286_v15, 4  ;;  %v5287_v48 = vsel %vm11306_vm14, %v8073_v43, %v5286_v15  ;;  %v9495_v15 = vld [vmem:[%s12652_s7 + $0xa8] sm:$0xff]  }
 0x42e   : > { %8757 = vmatprep.subr.bf16.mxu0 %v9487_v57  ;;  %v5280_v42 = vsel %vm11306_vm14, %v8072_v16, %v5279_v3  ;;  %v5321_v16 = vrot.slane %v11201_v47, 5  ;;  %v5300_v47 = vrot.slane %v11119_v22, 5  ;;  %v5335_v3 = vrot.slane %v11247_v19, 5 }
 0x42f   : > { %8726 = vmatmul.mubr.bf16.gmra.mrb[36].mxu0 %v7910_v8  ;;  %v5273_v8 = vsel %vm11306_vm14, %v8071_v34, %v5272_v37  ;;  %v5289_v37 = vrot.slane %v11095_v49, 5  ;;  %v9492_v34 = vld [vmem:[%s12652_s7 + $0xa0] sm:$0xff]   ;;  %v5328_v49 = vrot.slane %v11211_v23, 5  ;;  %v5295_v19 = vrot.slane %v5293_v40, 4 }
 0x430   : > { %8729 = vmatprep.mubr.bf16.mxu0 %v7911_v12  ;;  %8758 = vmatpush3.bf16.msra.mxu0 %v9487_v57  ;;  %v8102_v12 = vcombine.low %v5266_v24, %v5269_v10  ;;  %v8103_v57 = vcombine.low %v5273_v8, %v5276_v28  ;;  %v5283_v10 = vsel %vm11306_vm14, %v5281_v13, %v5282_v62  ;;  %v11381_v28 = vld [vmem:[#allocation2 + $0x54] sm:$0xf]  ;;  %v11383_v24 = vld [vmem:[#allocation2 + $0x58] sm:$0xf]  ;;  %v8078_v8 = vrot.slane %v5189_v58, 9 }
 0x431   : > { %8948 = vmatpush3.bf16.msra.mxu1 %v9474_v55  ;;  %8759 = vmatprep.subr.bf16.mxu0 %v9490_v46  ;;  %v9480_v55 = vld [vmem:[%s12652_s7 + $0x198] sm:$0xff]   ;;  %v5290_v50 = vsel %vm11306_vm14, %v5288_v1, %v5289_v37  ;;  %v5191_v13 = vld [vmem:[#allocation2 + $0xa8] sm:$0xe]  ;;  %v5192_v62 = vld [vmem:[#allocation2 + $0xb4] sm:$0xe]  ;;  %v8104_v43 = vcombine.low %v5280_v42, %v5283_v10  ;;  %v5324_v1 = vrot.slane %v11205_v36, 5 }
 0x432   : > { %8949 = vmatprep.subr.bf16.mxu1 %v9477_v6  ;;  %v11406_v23 = vsel %vm11306_vm14, %v8078_v8, %v5321_v16  ;;  %v5330_v37 = vrot.slane %v5328_v49, 4  ;;  %v8080_v10 = vrot.slane %v5191_v13, 9  ;;  %v8081_v36 = vrot.slane %v5192_v62, 9  ;;  %v5193_v58 = vld [vmem:[#allocation2 + $0xc0] sm:$0xe] }
 0x433   : > { %8918 = vmatmul.mubr.bf16.gmra.mrb[20].mxu1 %v8102_v12  ;;  %v8079_v12 = vrot.slane %v5190_v27, 9  ;;  %v5331_v27 = vrot.slane %v11216_v30, 5  ;;  %v5345_v13 = vrot.slane %v11262_v61, 5  ;;  %v8082_v62 = vrot.slane %v5193_v58, 9 }
 0x434   : > { %8760 = vmatpush3.bf16.msra.mxu0 %v9490_v46  ;;  %8921 = vmatprep.mubr.bf16.mxu1 %v8103_v57  ;;  %v9484_v46 = vld [vmem:[%s12652_s7 + $0x1a0] sm:$0xff]   ;;  %v8105_v57 = vcombine.low %v5287_v48, %v5290_v50  ;;  %v5338_v48 = vrot.slane %v11251_v51, 5  ;;  %v9497_v50 = vld [vmem:[%s12652_s7 + $0xb0] sm:$0xff]  }
 0x435   : > { %8950 = vmatpush3.bf16.msra.mxu1 %v9477_v6  ;;  %v5323_v6 = vrot.slane %v5321_v16, 4  ;;  %8761 = vmatprep.subr.bf16.mxu0 %v9492_v34  ;;  %v11418_v8 = vsel %vm11306_vm14, %v8079_v12, %v5328_v49  ;;  %v11422_v30 = vsel %vm11306_vm14, %v5330_v37, %v5331_v27  ;;  %v5337_v49 = vrot.slane %v5335_v3, 4  ;;  %v5186_v16 = vld [vmem:[#allocation2 + $0x6c] sm:$0xe]  ;;  %v11462_v27 = vld [vmem:[#allocation2 + $0x64] sm:$0xf] }
 0x436   : > { %8951 = vmatprep.subr.bf16.mxu1 %v9480_v55  ;;  %v5349_v12 = vrot.slane %v11283_v52, 5 }
 0x437   : > { %8730 = vmatmul.mubr.bf16.gmra.mrb[40].mxu0 %v7912_v11  ;;  %v11411_v42 = vsel %vm11306_vm14, %v5323_v6, %v5324_v1  ;;  %v5302_v6 = vrot.slane %v5300_v47, 4  ;;  %v11442_v1 = vsel %vm11306_vm14, %v8080_v10, %v5335_v3  ;;  %v11446_v51 = vsel %vm11306_vm14, %v5337_v49, %v5338_v48  ;;  %v9499_v3 = vld [vmem:[%s12652_s7 + $0xb8] sm:$0xff]  }
 0x438   : > { %8733 = vmatprep.mubr.bf16.mxu0 %v7913_v41  ;;  %8762 = vmatpush3.bf16.msra.mxu0 %v9492_v34  ;;  %v8110_v11 = vcombine.low %v11406_v23, %v11411_v42  ;;  %v5342_v41 = vrot.slane %v11257_v7, 5  ;;  %v8111_v34 = vcombine.low %v11418_v8, %v11422_v30  ;;  %v8112_v61 = vcombine.low %v11442_v1, %v11446_v51  ;;  %v3554_v8 = vld [vmem:[#allocation2 + $0xc] sm:$0xe]  ;;  %v3555_v30 = vld [vmem:[#allocation2 + $0x18] sm:$0xe] }
 0x439   : > { %8952 = vmatpush3.bf16.msra.mxu1 %v9480_v55  ;;  %8763 = vmatprep.subr.bf16.mxu0 %v9495_v15  ;;  %v9489_v55 = vld [vmem:[%s12652_s7 + $0x1a8] sm:$0xff]   ;;  %v5351_v58 = vrot.slane %v5349_v12, 4  ;;  %v5303_v10 = vrot.slane %v11124_v33, 5  ;;  %v12734_v49 = vrot.slane %v11113_v45, 5  ;;  %v5307_v33 = vrot.slane %v11155_v2, 5 }
 0x43a   : > { %8953 = vmatprep.subr.bf16.mxu1 %v9484_v46  ;;  %v5344_v7 = vrot.slane %v5342_v41, 4  ;;  %v11450_v37 = vsel %vm11306_vm14, %v8081_v36, %v5342_v41  ;;  %v9494_v36 = vld [vmem:[%s12652_s7 + $0x1b0] sm:$0xff]   ;;  %v12735_v2 = vrot.slane %v11365_v53, 9  ;;  %v5188_v53 = vld [vmem:[#allocation2 + $0x84] sm:$0xe]  ;;  %v3613_v42 = vrot.slane %v11316_v29, 5 }
 0x43b   : > { %8922 = vmatmul.mubr.bf16.gmra.mrb[24].mxu1 %v8104_v43  ;;  %v9952_v43 = vld [vmem:[#allocation2 + $0x60] sm:$0xf]  ;;  %v5297_v48 = vsel %vm11306_vm14, %v5295_v19, %v12734_v49  ;;  %v7920_v49 = vcombine.low %v11219_v21, %v11224_v44  ;;  %v9956_v1 = vld [vmem:[#allocation2 + $0x14] sm:$0x1] }
 0x43c   : > { %8764 = vmatpush3.bf16.msra.mxu0 %v9495_v15  ;;  %8925 = vmatprep.mubr.bf16.mxu1 %v8105_v57  ;;  %v11456_v52 = vsel %vm11306_vm14, %v5344_v7, %v5345_v13  ;;  %v5352_v15 = vrot.slane %v11289_v5, 5  ;;  %v7915_v57 = vcombine.low %v9952_v43, %v11462_v27  ;;  %v12733_v5 = vcombine.low %v11381_v28, %v11383_v24 }
 0x43d   : > { %8954 = vmatpush3.bf16.msra.mxu1 %v9484_v46  ;;  %v8075_v46 = vrot.slane %v5186_v16, 9  ;;  %v8113_v41 = vcombine.low %v11450_v37, %v11456_v52  ;;  %8765 = vmatprep.subr.bf16.mxu0 %v9497_v50  ;;  %v11481_v16 = vsel %vm11306_vm14, %v8082_v62, %v5349_v12  ;;  %v5304_v28 = vsel %vm11306_vm14, %v5302_v6, %v5303_v10  ;;  %v3556_v52 = vld [vmem:[#allocation2 + $0x24] sm:$0xe] }
 0x43e   : > { %8955 = vmatprep.subr.bf16.mxu1 %v9489_v55  ;;  %v11485_v7 = vsel %vm11306_vm14, %v5351_v58, %v5352_v15  ;;  %v5314_v13 = vrot.slane %v11165_v56, 5  ;;  %v5294_v19 = vsel %vm11306_vm14, %v12735_v2, %v5293_v40  ;;  %v5187_v56 = vld [vmem:[#allocation2 + $0x78] sm:$0xe]  ;;  %v5309_v6 = vrot.slane %v5307_v33, 4  ;;  %v12738_v2 = vld [vmem:[#allocation11_spill] sm:$0xff] }
 0x43f   : > { %8734 = vmatmul.mubr.bf16.gmra.mrb[44].mxu0 %v12733_v5  ;;  %v8114_v45 = vcombine.low %v11481_v16, %v11485_v7  ;;  %v8106_v62 = vcombine.low %v5294_v19, %v5297_v48  ;;  %v5301_v12 = vsel %vm11306_vm14, %v8075_v46, %v5300_v47  ;;  %v7916_v40 = vcombine.low %v11127_v25, %v11132_v9  ;;  %v11519_v25 = vld [vmem:[%s12652_s7 + $0xc0] sm:$0xff]   ;;  %v9955_v48 = vld [vmem:[#allocation2 + $0x8] sm:$0x1] }
 0x440   : > { %8737 = vmatprep.mubr.bf16.mxu0 %v7915_v57  ;;  %8766 = vmatpush3.bf16.msra.mxu0 %v9497_v50  ;;  %v9498_v50 = vld [vmem:[%s12652_s7 + $0x1b8] sm:$0xff]   ;;  %v8107_v39 = vcombine.low %v5301_v12, %v5304_v28  ;;  %v5316_v58 = vrot.slane %v5314_v13, 4  ;;  %v8076_v22 = vrot.slane %v5187_v56, 9  ;;  %v7917_v47 = vcombine.low %v11142_v59, %v11144_v35  ;;  %v11514_v57 = vld [vmem:[%s12652_s7 + $0x1c0] sm:$0xff]   ;;  %v3557_v56 = vld [vmem:[#allocation2 + $0x30] sm:$0xe] }
 0x441   : > { %8956 = vmatpush3.bf16.msra.mxu1 %v9489_v55  ;;  %8767 = vmatprep.subr.bf16.mxu0 %v9499_v3  ;;  %v5310_v55 = vrot.slane %v11159_v17, 5  ;;  %v8077_v15 = vrot.slane %v5188_v53, 9  ;;  %v5317_v43 = vrot.slane %v11170_v32, 5  ;;  %v7918_v46 = vcombine.low %v11175_v63, %v11177_v60  ;;  %v3553_v5 = vld [vmem:[#allocation2] sm:$0xe]  ;;  %v12737_v28 = vld [vmem:[#allocation4_spill] sm:$0xff] }
 0x442   : > { %8957 = vmatprep.subr.bf16.mxu1 %v9494_v36  ;;  %v5308_v35 = vsel %vm11306_vm14, %v8076_v22, %v5307_v33  ;;  %v7919_v10 = vcombine.low %v11186_v26, %v11191_v0  ;;  %v7931_v63 = vrot.slane %v3553_v5, 9  ;;  %v3609_v26 = vrot.slane %v9955_v48, 5 }
 0x443   : > { %8926 = vmatmul.mubr.bf16.gmra.mrb[28].mxu1 %v8106_v62  ;;  %v5311_v9 = vsel %vm11306_vm14, %v5309_v6, %v5310_v55  ;;  %v5318_v59 = vsel %vm11306_vm14, %v5316_v58, %v5317_v43  ;;  %v5315_v32 = vsel %vm11306_vm14, %v8077_v15, %v5314_v13  ;;  %v7921_v0 = vcombine.low %v11234_v38, %v11236_v14  ;;  %v12736_v38 = vld [vmem:[#allocation10_spill] sm:$0xff]  ;;  %v9957_v62 = vld [vmem:[#allocation2 + $0x20] sm:$0x1]  ;;  %v3558_v6 = vld [vmem:[#allocation2 + $0x3c] sm:$0xe] }
 0x444   : > { %8768 = vmatpush3.bf16.msra.mxu0 %v9499_v3  ;;  %8929 = vmatprep.mubr.bf16.mxu1 %v8107_v39  ;;  %v8108_v17 = vcombine.low %v5308_v35, %v5311_v9  ;;  %v8109_v3 = vcombine.low %v5315_v32, %v5318_v59  ;;  %v3615_v33 = vrot.slane %v3613_v42, 4  ;;  %v3627_v13 = vrot.slane %v12737_v28, 5  ;;  %v9500_v58 = vld [vmem:[#allocation2 + $0x18] sm:$0xff]   ;;  %v9958_v55 = vld [vmem:[#allocation2 + $0x2c] sm:$0x1]  ;;  %v9502_v28 = vld [vmem:[#allocation2 + $0x24] sm:$0xff]  }
 0x445   : > { %8958 = vmatpush3.bf16.msra.mxu1 %v9494_v36  ;;  %8801 = vmatprep.subr.bf16.mxu0 %v11519_v25  ;;  %v3606_v36 = vrot.slane %v11299_v18, 5  ;;  %v7932_v19 = vrot.slane %v3554_v8, 9  ;;  %v3616_v51 = vrot.slane %v9956_v1, 5  ;;  %v3623_v12 = vrot.slane %v9957_v62, 5  ;;  %v9959_v59 = vld [vmem:[#allocation2 + $0x38] sm:$0x1] }
 0x446   : > { %8959 = vmatprep.subr.bf16.mxu1 %v9498_v50  ;;  %v3641_v53 = vrot.slane %v11362_v31, 5  ;;  %v7934_v43 = vrot.slane %v3556_v52, 9  ;;  %v7935_v9 = vrot.slane %v3557_v56, 9  ;;  %v3637_v35 = vrot.slane %v9959_v59, 5  ;;  %v9503_v1 = vld [vmem:[#allocation2 + $0x30] sm:$0xff]  }
 0x447   : > { %8738 = vmatmul.mubr.bf16.gmra.mrb[48].mxu0 %v7916_v40  ;;  %v3608_v60 = vrot.slane %v3606_v36, 4  ;;  %v3607_v18 = vsel %vm11306_vm14, %v7931_v63, %v3606_v36  ;;  %v3617_v37 = vsel %vm11306_vm14, %v3615_v33, %v3616_v51  ;;  %v3614_v40 = vsel %vm11306_vm14, %v7932_v19, %v3613_v42  ;;  %v9963_v33 = vld [vmem:[%s12652_s7 + $0xc8] sm:$0xff]   ;;  %v9965_v62 = vld [vmem:[#allocation2 + $0x5c] sm:$0x1]  ;;  %v3563_v52 = vld [vmem:[#allocation2 + $0x78] sm:$0xe] }
 0x448   : > { %8741 = vmatprep.mubr.bf16.mxu0 %v7917_v47  ;;  %v3630_v47 = vrot.slane %v9958_v55, 5  ;;  %v7964_v15 = vcombine.low %v3614_v40, %v3617_v37  ;;  %v3643_v16 = vrot.slane %v3641_v53, 4  ;;  %v3655_v7 = vrot.slane %v11383_v24, 5  ;;  %v9966_v56 = vld [vmem:[#allocation2 + $0x68] sm:$0x1] }
 0x449   : > { %8960 = vmatpush3.bf16.msra.mxu1 %v9498_v50  ;;  %v3610_v23 = vsel %vm11306_vm14, %v3608_v60, %v3609_v26  ;;  %v3628_v60 = vsel %vm11306_vm14, %v7934_v43, %v3627_v13  ;;  %v9961_v26 = vld [vmem:[#allocation2 + $0x44] sm:$0x1]  ;;  %v9507_v43 = vld [vmem:[%s12652_s7 + $0x1d0] sm:$0xff]   ;;  %v7941_v59 = vrot.slane %v3563_v52, 9 }
 0x44a   : > { %8993 = vmatprep.subr.bf16.mxu1 %v11514_v57  ;;  %v7963_v21 = vcombine.low %v3607_v18, %v3610_v23  ;;  %v3560_v18 = vld [vmem:[#allocation2 + $0x54] sm:$0xe]  ;;  %v11592_v23 = vld [vmem:[#allocation2 + $0x7c] sm:$0xf] }
 0x44b   : > { %8930 = vmatmul.mubr.bf16.gmra.mrb[0].mxu1 %v8108_v17  ;;  %v3559_v17 = vld [vmem:[#allocation2 + $0x48] sm:$0xe]  ;;  %v3676_v42 = vrot.slane %v11592_v23, 5 }
 0x44c   : > { %8933 = vmatprep.mubr.bf16.mxu1 %v8109_v3  ;;  %v7936_v3 = vrot.slane %v3558_v6, 9  ;;  %v7937_v5 = vrot.slane %v3559_v17, 9  ;;  %v3564_v6 = vld [vmem:[#allocation2 + $0x84] sm:$0xe]  ;;  %v6067_v23 = vld [vmem:[#allocation2 + $0x28] sm:$0xf] }
 0x44e   : > { %v11600_v8 = vsel %vm11306_vm14, %v7936_v3, %v3641_v53  ;;  %v9967_v53 = vld [vmem:[#allocation2 + $0x88] sm:$0xf] }
 0x44f   : > { %8742 = vmatmul.mubr.bf16.gmra.mrb[52].mxu0 %v7918_v46  ;;  %v12739_v46 = vld [vmem:[#allocation5_spill] sm:$0xff] }
 0x450   : > { %8745 = vmatprep.mubr.bf16.mxu0 %v7919_v10  ;;  %v3648_v10 = vrot.slane %v12739_v46, 5  ;;  %v7942_v46 = vrot.slane %v3564_v6, 9  ;;  %v9975_v6 = vld [vmem:[%s12652_s7 + $0xe0] sm:$0xff]  }
 0x452   : > { %v11618_v51 = vsel %vm11306_vm14, %v7937_v5, %v3648_v10 }
 0x453   : > { %8934 = vmatmul.mubr.bf16.gmra.mrb[4].mxu1 %v8110_v11  ;;  %v3620_v11 = vrot.slane %v11322_v54, 5  ;;  %v3634_v54 = vrot.slane %v12738_v2, 5 }
 0x454   : > { %8937 = vmatprep.mubr.bf16.mxu1 %v8111_v34  ;;  %v7922_v34 = vcombine.low %v12736_v38, %v11269_v4  ;;  %v3561_v38 = vld [vmem:[#allocation2 + $0x60] sm:$0xe] }
 0x455   : > { %v3622_v29 = vrot.slane %v3620_v11, 4  ;;  %v3636_v39 = vrot.slane %v3634_v54, 4  ;;  %v3635_v48 = vsel %vm11306_vm14, %v7935_v9, %v3634_v54  ;;  %v3657_v54 = vrot.slane %v3655_v7, 4 }
 0x457   : > { %8746 = vmatmul.mubr.bf16.gmra.mrb[56].mxu0 %v7920_v49  ;;  %v3624_v50 = vsel %vm11306_vm14, %v3622_v29, %v3623_v12  ;;  %v11581_v36 = vsel %vm11306_vm14, %v3636_v39, %v3637_v35  ;;  %v11585_v49 = vld [vmem:[#allocation2 + $0x70] sm:$0xf]  ;;  %v3658_v12 = vrot.slane %v9965_v62, 5  ;;  %v3678_v39 = vrot.slane %v3676_v42, 4  ;;  %v9969_v35 = vld [vmem:[#allocation2 + $0x80] sm:$0x1] }
 0x458   : > { %8749 = vmatprep.mubr.bf16.mxu0 %v7921_v0  ;;  %v3669_v63 = vrot.slane %v11585_v49, 5  ;;  %v3644_v0 = vrot.slane %v9961_v26, 5  ;;  %v9964_v29 = vld [vmem:[#allocation2 + $0x50] sm:$0x1]  ;;  %v3679_v17 = vrot.slane %v9969_v35, 5 }
 0x459   : > { %v3651_v2 = vrot.slane %v9964_v29, 5  ;;  %v11636_v9 = vsel %vm11306_vm14, %v3657_v54, %v3658_v12  ;;  %v11704_v12 = vld [vmem:[#allocation2 + $0xa8] sm:$0xe]  ;;  %v6069_v35 = vld [vmem:[#allocation2 + $0x30] sm:$0xf] }
 0x45a   : > { %v3671_v37 = vrot.slane %v3669_v63, 4 }
 0x45b   : > { %8938 = vmatmul.mubr.bf16.gmra.mrb[8].mxu1 %v8112_v61  ;;  %v7933_v61 = vrot.slane %v3555_v30, 9  ;;  %v3650_v30 = vrot.slane %v3648_v10, 4  ;;  %v3565_v10 = vld [vmem:[#allocation2 + $0x90] sm:$0xe] }
 0x45c   : > { %8941 = vmatprep.mubr.bf16.mxu1 %v8113_v41  ;;  %v3629_v41 = vrot.slane %v3627_v13, 4  ;;  %v11610_v13 = vsel %vm11306_vm14, %v3643_v16, %v3644_v0  ;;  %v11680_v0 = vld [vmem:[#allocation2 + $0x9c] sm:$0xe] }
 0x45d   : > { %v3621_v22 = vsel %vm11306_vm14, %v7933_v61, %v3620_v11  ;;  %v7938_v61 = vrot.slane %v3560_v18, 9  ;;  %v7968_v40 = vcombine.low %v11600_v8, %v11610_v13  ;;  %v6063_v18 = vld [vmem:[#allocation2 + $0x18] sm:$0xf]  ;;  %v6065_v8 = vld [vmem:[#allocation2 + $0x20] sm:$0x1] }
 0x45e   : > { %v7965_v31 = vcombine.low %v3621_v22, %v3624_v50  ;;  %v11576_v32 = vsel %vm11306_vm14, %v3629_v41, %v3630_v47  ;;  %v7939_v41 = vrot.slane %v3561_v38, 9  ;;  %v3665_v50 = vrot.slane %v9966_v56, 5  ;;  %v9968_v47 = vld [vmem:[#allocation2 + $0x74] sm:$0x1]  ;;  %v9973_v38 = vld [vmem:[#allocation2 + $0x8c] sm:$0x1] }
 0x45f   : > { %8750 = vmatmul.mubr.bf16.gmra.mrb[60].mxu0 %v7922_v34  ;;  %v7966_v11 = vcombine.low %v3628_v60, %v11576_v32  ;;  %v3562_v34 = vld [vmem:[#allocation2 + $0x6c] sm:$0xe]  ;;  %v11629_v22 = vsel %vm11306_vm14, %v3650_v30, %v3651_v2  ;;  %v11649_v32 = vsel %vm11306_vm14, %v7938_v61, %v3655_v7  ;;  %v11665_v7 = vsel %vm11306_vm14, %v3678_v39, %v3679_v17  ;;  %v9510_v30 = vld [vmem:[%s12652_s7 + $0x1d8] sm:$0xff]  }
 0x460   : > { %8769 = vmatprep.mubr.bf16.mxu0 %v7963_v21  ;;  %v7967_v21 = vcombine.low %v3635_v48, %v11581_v36  ;;  %v7940_v55 = vrot.slane %v3562_v34, 9  ;;  %v9971_v36 = vld [vmem:[#allocation2 + $0x94] sm:$0xf]  ;;  %v7969_v5 = vcombine.low %v11618_v51, %v11629_v22  ;;  %v7970_v48 = vcombine.low %v11649_v32, %v11636_v9 }
 0x461   : > { %v3690_v16 = vrot.slane %v9971_v36, 5  ;;  %v3686_v34 = vrot.slane %v9973_v38, 5  ;;  %v3697_v51 = vrot.slane %v11224_v44, 5  ;;  %v6112_v61 = vshrl.u32 %v6063_v18, 16 }
 0x462   : > { %v6115_v62 = vshll.u32 %v6063_v18, 16  ;;  %v7944_v44 = vrot.slane %v11680_v0, 9 }
 0x463   : > { %8942 = vmatmul.mubr.bf16.gmra.mrb[12].mxu1 %v8114_v45  ;;  %v3662_v45 = vrot.slane %v11462_v27, 5  ;;  %v11675_v27 = vsel %vm11306_vm14, %v7940_v55, %v3669_v63  ;;  %v11691_v63 = vsel %vm11306_vm14, %v7941_v59, %v3676_v42  ;;  %v3692_v54 = vrot.slane %v3690_v16, 4  ;;  %v3568_v59 = vld [vmem:[#allocation2 + $0xb4] sm:$0xe] }
 0x464   : > { %8961 = vmatprep.mubr.bf16.mxu1 %v9500_v58  ;;  %v3683_v58 = vrot.slane %v9967_v53, 5  ;;  %v7973_v29 = vcombine.low %v11691_v63, %v11665_v7  ;;  %v6145_v53 = vshll.u32 %v6067_v23, 16  ;;  %v3699_v17 = vrot.slane %v3697_v51, 4 }
 0x465   : > { %v3664_v19 = vrot.slane %v3662_v45, 4  ;;  %v11661_v24 = vsel %vm11306_vm14, %v7939_v41, %v3662_v45  ;;  %v9972_v45 = vld [vmem:[%s12652_s7 + $0xd8] sm:$0xff]   ;;  %v6114_v13 = vrot.slane %v6112_v61, 4  ;;  %v6131_v61 = vshll.u32 %v6065_v8, 16 }
 0x466   : > { %v3685_v60 = vrot.slane %v3683_v58, 4  ;;  %v11697_v2 = vsel %vm11306_vm14, %v7942_v46, %v3683_v58  ;;  %v6149_v58 = vshrl.u32 %v6067_v23, 16  ;;  %v9977_v46 = vld [vmem:[%s12652_s7 + $0xe8] sm:$0xff]   ;;  %v11736_v0 = vrot.slane %v6145_v53, 5 }
 0x467   : > { %8770 = vmatmul.mubr.bf16.vlgmr.msra.gmra.mrb[32].mxu0 %v7964_v15  ;;  %v3672_v15 = vrot.slane %v9968_v47, 5  ;;  %v9976_v47 = vld [vmem:[#allocation2 + $0xa4] sm:$0x1]  ;;  %v3711_v23 = vrot.slane %v11269_v4, 5 }
 0x468   : > { %8773 = vmatprep.mubr.bf16.mxu0 %v7965_v31  ;;  %8802 = vmatpush3.bf16.msra.mxu0 %v11519_v25  ;;  %v9504_v25 = vld [vmem:[%s12652_s7 + $0x1c8] sm:$0xff]   ;;  %v9970_v31 = vld [vmem:[%s12652_s7 + $0xd0] sm:$0xff]   ;;  %v11701_v42 = vsel %vm11306_vm14, %v3685_v60, %v3686_v34  ;;  %v6151_v18 = vrot.slane %v6149_v58, 4  ;;  %v11742_v34 = vsel %vm11306_vm14, %v7944_v44, %v3697_v51 }
 0x469   : > { %8803 = vmatprep.subr.bf16.mxu0 %v9963_v33  ;;  %v11653_v3 = vsel %vm11306_vm14, %v3671_v37, %v3672_v15  ;;  %v7974_v22 = vcombine.low %v11697_v2, %v11701_v42  ;;  %v3700_v15 = vrot.slane %v9976_v47, 5  ;;  %v12740_v58 = vld [vmem:[#allocation17_spill] sm:$0xff] }
 0x46a   : > { %v7972_v49 = vcombine.low %v11675_v27, %v11653_v3  ;;  %v6152_v4 = vor.u32 %v6151_v18, %v11736_v0  ;;  %v3714_v47 = vrot.slane %v12740_v58, 5 }
 0x46b   : > { %8962 = vmatmul.mubr.bf16.vlgmr.msra.gmra.mrb[16].mxu1 %v9502_v28  ;;  %v6066_v28 = vld [vmem:[#allocation2 + $0x24] sm:$0xf] }
 0x46c   : > { %8804 = vmatpush3.bf16.msra.mxu0 %v9963_v33  ;;  %8994 = vmatpush3.bf16.msra.mxu1 %v11514_v57  ;;  %v11640_v57 = vsel %vm11306_vm14, %v3664_v19, %v3665_v50  ;;  %v7943_v33 = vrot.slane %v3565_v10, 9  ;;  %v9974_v19 = vld [vmem:[#allocation2 + $0x98] sm:$0x1]  ;;  %v6136_v41 = vshrl.u32 %v6066_v28, 16  ;;  %v6139_v56 = vshll.u32 %v6066_v28, 16  ;;  %v9513_v50 = vld [vmem:[%s12652_s7 + $0x1e0] sm:$0xff]  }
 0x46d   : > { %8965 = vmatprep.mubr.bf16.mxu1 %v9503_v1  ;;  %8995 = vmatprep.subr.bf16.mxu1 %v9504_v25  ;;  %v7971_v26 = vcombine.low %v11661_v24, %v11640_v57  ;;  %v3693_v1 = vrot.slane %v9974_v19, 5  ;;  %v9978_v28 = vld [vmem:[#allocation2 + $0xb0] sm:$0x1]  ;;  %v11748_v19 = vsel %vm11306_vm14, %v3699_v17, %v3700_v15  ;;  %v11782_v17 = vld [vmem:[#allocation2 + $0x40] sm:$0xf]  ;;  %v9980_v57 = vld [vmem:[%s12652_s7 + $0xf8] sm:$0xff]  }
 0x46e   : > { %8805 = vmatprep.subr.bf16.mxu0 %v9970_v31  ;;  %v11711_v39 = vsel %vm11306_vm14, %v7943_v33, %v3690_v16  ;;  %v6138_v16 = vrot.slane %v6136_v41, 4  ;;  %v6141_v60 = vrot.slane %v6139_v56, 5  ;;  %v9979_v41 = vld [vmem:[%s12652_s7 + $0xf0] sm:$0xff]  }
 0x46f   : > { %8774 = vmatmul.mubr.bf16.gmra.mrb[36].mxu0 %v7966_v11  ;;  %v6064_v11 = vld [vmem:[#allocation2 + $0x1c] sm:$0xf]  ;;  %v11724_v55 = vsel %vm11306_vm14, %v3692_v54, %v3693_v1  ;;  %v11744_v54 = vld [vmem:[#allocation2 + $0x34] sm:$0xf]  ;;  %v7946_v1 = vrot.slane %v3568_v59, 9 }
 0x470   : > { %8777 = vmatprep.mubr.bf16.mxu0 %v7967_v21  ;;  %8806 = vmatpush3.bf16.msra.mxu0 %v9970_v31  ;;  %v9505_v21 = vld [vmem:[#allocation2 + $0x3c] sm:$0xff]   ;;  %v6121_v37 = vshll.u32 %v6064_v11, 16  ;;  %v6125_v52 = vshrl.u32 %v6064_v11, 16  ;;  %v7945_v31 = vrot.slane %v11704_v12, 9  ;;  %v6160_v11 = vshrl.u32 %v6069_v35, 16 }
 0x471   : > { %8996 = vmatpush3.bf16.msra.mxu1 %v9504_v25  ;;  %8807 = vmatprep.subr.bf16.mxu0 %v9972_v45  ;;  %v9506_v25 = vld [vmem:[#allocation2 + $0x48] sm:$0xff]   ;;  %v7975_v38 = vcombine.low %v11711_v39, %v11724_v55  ;;  %v6142_v12 = vor.u32 %v6141_v60, %v6138_v16  ;;  %v6173_v15 = vshrl.u32 %v11744_v54, 16  ;;  %v6072_v59 = vld [vmem:[#allocation2 + $0x3c] sm:$0xf]  ;;  %v11780_v32 = vsel %vm11306_vm14, %v7946_v1, %v3711_v23 }
 0x472   : > { %8997 = vmatprep.subr.bf16.mxu1 %v9507_v43  ;;  %v11731_v10 = vrot.slane %v6121_v37, 5  ;;  %v6127_v36 = vrot.slane %v6125_v52, 4  ;;  %v9519_v52 = vld [vmem:[%s12652_s7 + $0x1f0] sm:$0xff]   ;;  %v6162_v56 = vrot.slane %v6160_v11, 4  ;;  %v6187_v11 = vshll.u32 %v6072_v59, 16 }
 0x473   : > { %8966 = vmatmul.mubr.bf16.gmra.mrb[20].mxu1 %v9505_v21  ;;  %v6163_v21 = vshll.u32 %v6069_v35, 16  ;;  %v9511_v35 = vld [vmem:[#allocation2 + $0x6c] sm:$0xff]   ;;  %v6143_v8 = vrot.slane %v6142_v12, 4  ;;  %v6175_v18 = vrot.slane %v6173_v15, 4 }
 0x474   : > { %8808 = vmatpush3.bf16.msra.mxu0 %v9972_v45  ;;  %8969 = vmatprep.mubr.bf16.mxu1 %v9506_v25  ;;  %v9516_v45 = vld [vmem:[%s12652_s7 + $0x1e8] sm:$0xff]   ;;  %v3707_v25 = vrot.slane %v9978_v28, 5  ;;  %v6128_v51 = vor.u32 %v6127_v36, %v11731_v10  ;;  %v6153_v36 = vrot.slane %v6152_v4, 4  ;;  %v6189_v58 = vrot.slane %v6187_v11, 5 }
 0x475   : > { %8998 = vmatpush3.bf16.msra.mxu1 %v9507_v43  ;;  %8809 = vmatprep.subr.bf16.mxu0 %v9975_v6  ;;  %v3704_v43 = vrot.slane %v11236_v14, 5  ;;  %v6068_v14 = vld [vmem:[#allocation2 + $0x2c] sm:$0x1]  ;;  %v6165_v44 = vrot.slane %v6163_v21, 5  ;;  %v6193_v21 = vshll.u32 %v11782_v17, 16 }
 0x476   : > { %8999 = vmatprep.subr.bf16.mxu1 %v9510_v30  ;;  %v6155_v37 = vshll.u32 %v6068_v14, 16  ;;  %v11792_v14 = vld [vmem:[#allocation2 + $0x38] sm:$0x1] }
 0x477   : > { %8778 = vmatmul.mubr.bf16.gmra.mrb[40].mxu0 %v7968_v40  ;;  %v6117_v40 = vrot.slane %v6115_v62, 5  ;;  %v3706_v33 = vrot.slane %v3704_v43, 4  ;;  %v11767_v53 = vsel %vm11306_vm14, %v7945_v31, %v3704_v43  ;;  %v6133_v43 = vrot.slane %v6131_v61, 5  ;;  %v6075_v31 = vld [vmem:[#allocation2 + $0x48] sm:$0xf] }
 0x478   : > { %8781 = vmatprep.mubr.bf16.mxu0 %v7969_v5  ;;  %8810 = vmatpush3.bf16.msra.mxu0 %v9975_v6  ;;  %v9508_v5 = vld [vmem:[#allocation2 + $0x54] sm:$0xff]   ;;  %v7976_v6 = vcombine.low %v11742_v34, %v11748_v19  ;;  %v6166_v16 = vor.u32 %v6165_v44, %v6162_v56  ;;  %v6211_v28 = vshll.u32 %v6075_v31, 16  ;;  %v6179_v12 = vshll.u32 %v11792_v14, 16  ;;  %v9984_v61 = vld [vmem:[#allocation2 + $0x2c] sm:$0x1] }
 0x479   : > { %9000 = vmatpush3.bf16.msra.mxu1 %v9510_v30  ;;  %8811 = vmatprep.subr.bf16.mxu0 %v9977_v46  ;;  %v9509_v30 = vld [vmem:[#allocation2 + $0x60] sm:$0xff]   ;;  %v6118_v62 = vor.u32 %v6117_v40, %v6114_v13  ;;  %v11776_v9 = vsel %vm11306_vm14, %v3706_v33, %v3707_v25  ;;  %v6157_v13 = vrot.slane %v6155_v37, 5  ;;  %v11787_v40 = vld [vmem:[#allocation2 + $0x4c] sm:$0xf]  ;;  %v6208_v33 = vshrl.u32 %v6075_v31, 16 }
 0x47a   : > { %9001 = vmatprep.subr.bf16.mxu1 %v9513_v50  ;;  %v6217_v25 = vshll.u32 %v11787_v40, 16  ;;  %v6221_v1 = vshrl.u32 %v11787_v40, 16  ;;  %v6078_v37 = vld [vmem:[#allocation2 + $0x54] sm:$0xf]  ;;  %v11822_v44 = vld [vmem:[#allocation2 + $0x58] sm:$0xf]  ;;  %v7977_v3 = vcombine.low %v11767_v53, %v11776_v9 }
 0x47b   : > { %8970 = vmatmul.mubr.bf16.gmra.mrb[24].mxu1 %v9508_v5  ;;  %v6119_v24 = vrot.slane %v6118_v62, 4  ;;  %v6184_v5 = vshrl.u32 %v6072_v59, 16  ;;  %v6158_v4 = vsel %vm10716_vm3, %v6153_v36, %v6157_v13  ;;  %v6210_v59 = vrot.slane %v6208_v33, 4  ;;  %v11859_v33 = vld [vmem:[#allocation2 + $0x70] sm:$0xf]  ;;  %v9521_v9 = vld [vmem:[#allocation2 + $0xc0] sm:$0xff]  }
 0x47c   : > { %8812 = vmatpush3.bf16.msra.mxu0 %v9977_v46  ;;  %8973 = vmatprep.mubr.bf16.mxu1 %v9509_v30  ;;  %v9523_v46 = vld [vmem:[%s12652_s7 + $0x1f8] sm:$0xff]   ;;  %v6197_v30 = vshrl.u32 %v11782_v17, 16  ;;  %v6232_v27 = vshrl.u32 %v6078_v37, 16  ;;  %v6241_v31 = vshll.u32 %v11822_v44, 16  ;;  %v11930_v53 = vld [vmem:[#allocation2 + $0x90] sm:$0xf] }
 0x47d   : > { %9002 = vmatpush3.bf16.msra.mxu1 %v9513_v50  ;;  %8813 = vmatprep.subr.bf16.mxu0 %v9979_v41  ;;  %v6169_v50 = vshll.u32 %v11744_v54, 16  ;;  %v6124_v62 = vsel %vm10716_vm3, %v6119_v24, %v11731_v10  ;;  %v11820_v10 = vrot.slane %v6166_v16, 4  ;;  %v6186_v56 = vrot.slane %v6184_v5, 4  ;;  %v11855_v5 = vld [vmem:[#allocation2 + $0x64] sm:$0xf] }
 0x47e   : > { %9003 = vmatprep.subr.bf16.mxu1 %v9516_v45  ;;  %v6199_v15 = vrot.slane %v6197_v30, 4  ;;  %v6245_v24 = vshrl.u32 %v11822_v44, 16  ;;  %v6084_v30 = vld [vmem:[#allocation2 + $0x6c] sm:$0xf] }
 0x47f   : > { %8782 = vmatmul.mubr.bf16.gmra.mrb[44].mxu0 %v7970_v48  ;;  %v3713_v48 = vrot.slane %v3711_v23, 4  ;;  %v11794_v60 = vrot.slane %v6169_v50, 5  ;;  %v6190_v36 = vor.u32 %v6189_v58, %v6186_v56  ;;  %v6280_v58 = vshrl.u32 %v6084_v30, 16 }
 0x480   : > { %8785 = vmatprep.mubr.bf16.mxu0 %v7971_v26  ;;  %8814 = vmatpush3.bf16.msra.mxu0 %v9979_v41  ;;  %v6129_v26 = vrot.slane %v6128_v51, 4  ;;  %v11813_v41 = vld [vmem:[%s12652_s7 + $0x200] sm:$0xff]  }
 0x481   : > { %9004 = vmatpush3.bf16.msra.mxu1 %v9516_v45  ;;  %8815 = vmatprep.subr.bf16.mxu0 %v9980_v57  ;;  %v9512_v45 = vld [vmem:[#allocation2 + $0x78] sm:$0xff]   ;;  %v11802_v23 = vsel %vm11306_vm14, %v3713_v48, %v3714_v47  ;;  %v6176_v50 = vor.u32 %v6175_v18, %v11794_v60  ;;  %v11828_v47 = vrot.slane %v6193_v21, 5  ;;  %v11835_v48 = vrot.slane %v6217_v25, 5 }
 0x482   : > { %9005 = vmatprep.subr.bf16.mxu1 %v9519_v52  ;;  %v6134_v51 = vsel %vm10716_vm3, %v6129_v26, %v6133_v43  ;;  %v6223_v43 = vrot.slane %v6221_v1, 4  ;;  %v7978_v7 = vcombine.low %v11780_v32, %v11802_v23  ;;  %v6081_v26 = vld [vmem:[#allocation2 + $0x60] sm:$0xf]  ;;  %v6234_v25 = vrot.slane %v6232_v27, 4  ;;  %v6825_v32 = vld [vmem:[#allocation2 + $0x78] sm:$0xe] }
 0x483   : > { %8974 = vmatmul.mubr.bf16.gmra.mrb[28].mxu1 %v9511_v35  ;;  %v6213_v35 = vrot.slane %v6211_v28, 5  ;;  %v11842_v63 = vcombine.low %v6124_v62, %v6134_v51  ;;  %v6200_v18 = vor.u32 %v6199_v15, %v11828_v47  ;;  %v11861_v28 = vld [vmem:[#allocation2 + $0x50] sm:$0x1]  ;;  %v11863_v62 = vrot.slane %v6241_v31, 5 }
 0x484   : > { %8816 = vmatpush3.bf16.msra.mxu0 %v9980_v57  ;;  %8977 = vmatprep.mubr.bf16.mxu1 %v9512_v45  ;;  %v9514_v57 = vld [vmem:[#allocation2 + $0x84] sm:$0xff]   ;;  %v6177_v45 = vrot.slane %v6176_v50, 4  ;;  %v6224_v21 = vor.u32 %v6223_v43, %v11835_v48  ;;  %v6256_v51 = vshrl.u32 %v6081_v26, 16  ;;  %v6191_v56 = vrot.slane %v6190_v36, 4 }
 0x485   : > { %9006 = vmatpush3.bf16.msra.mxu1 %v9519_v52  ;;  %v6148_v52 = vsel %vm10716_vm3, %v6143_v8, %v11736_v0  ;;  %v11833_v0 = vld [vmem:[#allocation2 + $0x44] sm:$0x1]  ;;  %v9515_v8 = vld [vmem:[#allocation2 + $0x90] sm:$0xff]   ;;  %v6214_v11 = vor.u32 %v6213_v35, %v6210_v59  ;;  %v6283_v15 = vshll.u32 %v6084_v30, 16  ;;  %v6201_v59 = vrot.slane %v6200_v18, 4 }
 0x486   : > { %9007 = vmatprep.subr.bf16.mxu1 %v9523_v46  ;;  %v11848_v13 = vcombine.low %v6148_v52, %v6158_v4  ;;  %v6203_v16 = vshll.u32 %v11833_v0, 16  ;;  %v6265_v52 = vshll.u32 %v11855_v5, 16  ;;  %v6269_v4 = vshrl.u32 %v11855_v5, 16 }
 0x487   : > { %8786 = vmatmul.mubr.bf16.gmra.mrb[48].mxu0 %v7972_v49  ;;  %v6235_v49 = vshll.u32 %v6078_v37, 16  ;;  %v6259_v37 = vshll.u32 %v6081_v26, 16  ;;  %v6227_v35 = vshll.u32 %v11861_v28, 16  ;;  %v6289_v43 = vshll.u32 %v11859_v33, 16  ;;  %v11879_v26 = vld [vmem:[#allocation2 + $0x68] sm:$0x1] }
 0x488   : > { %8789 = vmatprep.mubr.bf16.mxu0 %v7973_v29  ;;  %v11845_v29 = vrot.slane %v6179_v12, 5  ;;  %v6247_v12 = vrot.slane %v6245_v24, 4  ;;  %v6205_v50 = vrot.slane %v6203_v16, 5  ;;  %v6293_v27 = vshrl.u32 %v11859_v33, 16 }
 0x489   : > { %9008 = vmatpush3.bf16.msra.mxu1 %v9523_v46  ;;  %v6172_v46 = vsel %vm10716_vm3, %v11820_v10, %v11794_v60  ;;  %v6237_v1 = vrot.slane %v6235_v49, 5  ;;  %v6215_v49 = vrot.slane %v6214_v11, 4  ;;  %v6225_v31 = vrot.slane %v6224_v21, 4  ;;  %v9520_v60 = vld [vmem:[#allocation2 + $0xb4] sm:$0xff]  }
 0x48a   : > { %9041 = vmatprep.subr.bf16.mxu1 %v11813_v41  ;;  %v6258_v42 = vrot.slane %v6256_v51, 4  ;;  %v6248_v24 = vor.u32 %v6247_v12, %v11863_v62  ;;  %v6261_v39 = vrot.slane %v6259_v37, 5  ;;  %v11881_v55 = vrot.slane %v6265_v52, 5  ;;  %v6087_v51 = vld [vmem:[#allocation2 + $0x78] sm:$0xf] }
 0x48b   : > { %8978 = vmatmul.mubr.bf16.gmra.mrb[0].mxu1 %v9514_v57  ;;  %v11876_v57 = vld [vmem:[#allocation2 + $0x5c] sm:$0x1]  ;;  %v6238_v2 = vor.u32 %v6237_v1, %v6234_v25  ;;  %v6182_v36 = vsel %vm10716_vm3, %v6177_v45, %v11845_v29  ;;  %v6196_v16 = vsel %vm10716_vm3, %v6191_v56, %v11828_v47  ;;  %v6282_v18 = vrot.slane %v6280_v58, 4 }
 0x48c   : > { %8981 = vmatprep.mubr.bf16.mxu1 %v9515_v8  ;;  %v9518_v8 = vld [vmem:[#allocation2 + $0xa8] sm:$0xff]   ;;  %v6285_v11 = vrot.slane %v6283_v15, 5  ;;  %v6229_v21 = vrot.slane %v6227_v35, 5  ;;  %v6251_v30 = vshll.u32 %v11876_v57, 16  ;;  %v11890_v25 = vrot.slane %v6289_v43, 5 }
 0x48d   : > { %v6295_v1 = vrot.slane %v6293_v27, 4  ;;  %v6206_v12 = vsel %vm10716_vm3, %v6201_v59, %v6205_v50  ;;  %v6220_v29 = vsel %vm10716_vm3, %v6215_v49, %v11835_v48  ;;  %v6239_v45 = vrot.slane %v6238_v2, 4  ;;  %v11898_v37 = vld [vmem:[#allocation2 + $0x7c] sm:$0xf]  ;;  %v11913_v50 = vld [vmem:[#allocation2 + $0x74] sm:$0x1] }
 0x48e   : > { %v6275_v47 = vshll.u32 %v11879_v26, 16  ;;  %v6230_v52 = vsel %vm10716_vm3, %v6225_v31, %v6229_v21  ;;  %v6262_v56 = vor.u32 %v6261_v39, %v6258_v42  ;;  %v11911_v48 = vcombine.low %v6172_v46, %v6182_v36  ;;  %v6090_v27 = vld [vmem:[#allocation2 + $0x84] sm:$0xf] }
 0x48f   : > { %8790 = vmatmul.mubr.bf16.gmra.mrb[52].mxu0 %v7974_v22  ;;  %v9517_v22 = vld [vmem:[#allocation2 + $0x9c] sm:$0xff]   ;;  %v6286_v15 = vor.u32 %v6285_v11, %v6282_v18  ;;  %v6304_v59 = vshrl.u32 %v6087_v51, 16  ;;  %v6307_v35 = vshll.u32 %v6087_v51, 16  ;;  %v6253_v43 = vrot.slane %v6251_v30, 5  ;;  %v6819_v30 = vld [vmem:[#allocation2 + $0x30] sm:$0xe] }
 0x490   : > { %8793 = vmatprep.mubr.bf16.mxu0 %v7975_v38  ;;  %v6271_v38 = vrot.slane %v6269_v4, 4  ;;  %v6249_v4 = vrot.slane %v6248_v24, 4  ;;  %v6296_v34 = vor.u32 %v6295_v1, %v11890_v25  ;;  %v6313_v19 = vshll.u32 %v11898_v37, 16  ;;  %v11939_v24 = vld [vmem:[#allocation2 + $0x88] sm:$0xf] }
 0x491   : > { %v11921_v10 = vcombine.low %v6196_v16, %v6206_v12  ;;  %v11923_v46 = vcombine.low %v6220_v29, %v6230_v52  ;;  %v6244_v49 = vsel %vm10716_vm3, %v6239_v45, %v11863_v62  ;;  %v11928_v31 = vrot.slane %v6275_v47, 5  ;;  %v9522_v45 = vld [vmem:[#allocation2 + $0xc] sm:$0xff]   ;;  %v6830_v47 = vld [vmem:[#allocation2 + $0xb4] sm:$0xe] }
 0x492   : > { %v6272_v58 = vor.u32 %v6271_v38, %v11881_v55  ;;  %v11934_v2 = vrot.slane %v6262_v56, 4  ;;  %v11941_v39 = vrot.slane %v6286_v15, 4  ;;  %v11943_v38 = vld [vmem:[#allocation2 + $0x80] sm:$0x1]  ;;  %v11945_v62 = vrot.slane %v6304_v59, 4 }
 0x493   : > { %8982 = vmatmul.mubr.bf16.gmra.mrb[4].mxu1 %v9517_v22  ;;  %v6299_v22 = vshll.u32 %v11913_v50, 16  ;;  %v6328_v36 = vshrl.u32 %v6090_v27, 16  ;;  %v11949_v16 = vrot.slane %v6296_v34, 4  ;;  %v11951_v18 = vrot.slane %v6313_v19, 5  ;;  %v6820_v34 = vld [vmem:[#allocation2 + $0x3c] sm:$0xe] }
 0x494   : > { %8985 = vmatprep.mubr.bf16.mxu1 %v9518_v8  ;;  %v11936_v42 = vrot.slane %v6272_v58, 4  ;;  %v11947_v8 = vrot.slane %v6307_v35, 5  ;;  %v6331_v21 = vshll.u32 %v6090_v27, 16  ;;  %v6337_v51 = vshll.u32 %v11939_v24, 16  ;;  %v11982_v35 = vld [vmem:[#allocation2 + $0x94] sm:$0xf] }
 0x495   : > { %v6341_v12 = vshrl.u32 %v11939_v24, 16  ;;  %v6352_v29 = vshrl.u32 %v11930_v53, 16  ;;  %v11980_v59 = vrot.slane %v6328_v36, 4  ;;  %v9524_v19 = vld [vmem:[#allocation2 + $0xcc] sm:$0xff]   ;;  %v6821_v27 = vld [vmem:[#allocation2 + $0x48] sm:$0xe] }
 0x496   : > { %v8206_v56 = vrot.slane %v6820_v34, 9  ;;  %v6907_v15 = vrot.slane %v11833_v0, 5  ;;  %v9525_v58 = vld [vmem:[#allocation2 + $0x18] sm:$0xff]   ;;  %v6829_v36 = vld [vmem:[#allocation2 + $0xa8] sm:$0xe] }
 0x497   : > { %8794 = vmatmul.mubr.bf16.gmra.mrb[56].mxu0 %v7976_v6  ;;  %v6317_v6 = vshrl.u32 %v11898_v37, 16  ;;  %v12111_v52 = vld [vmem:[#allocation2 + $0xb0] sm:$0x1] }
 0x498   : > { %8797 = vmatprep.mubr.bf16.mxu0 %v7977_v3  ;;  %v6254_v3 = vsel %vm10716_vm3, %v6249_v4, %v6253_v43  ;;  %v11968_v4 = vrot.slane %v6299_v22, 5  ;;  %v8205_v43 = vrot.slane %v6819_v30, 9  ;;  %v6822_v22 = vld [vmem:[#allocation2 + $0x54] sm:$0xe] }
 0x499   : > { %v11953_v11 = vrot.slane %v6317_v6, 4  ;;  %v11955_v1 = vcombine.low %v6244_v49, %v6254_v3  ;;  %v6897_v6 = vrot.slane %v11744_v54, 5  ;;  %v11995_v49 = vrot.slane %v6341_v12, 4 }
 0x49a   : > { %v8207_v12 = vrot.slane %v6821_v27, 9  ;;  %v8208_v34 = vrot.slane %v6822_v22, 9  ;;  %v9526_v27 = vld [vmem:[#allocation2 + $0x24] sm:$0xff]   ;;  %v6824_v22 = vld [vmem:[#allocation2 + $0x6c] sm:$0xe] }
 0x49b   : > { %8986 = vmatmul.mubr.bf16.gmra.mrb[8].mxu1 %v9520_v60  ;;  %v11993_v60 = vrot.slane %v6337_v51, 5  ;;  %v6899_v30 = vrot.slane %v6897_v6, 4  ;;  %v12005_v54 = vsel %vm11306_vm14, %v8205_v43, %v6897_v6  ;;  %v6904_v51 = vrot.slane %v11782_v17, 5 }
 0x49c   : > { %8989 = vmatprep.mubr.bf16.mxu1 %v9521_v9  ;;  %v11997_v9 = vrot.slane %v6352_v29, 4  ;;  %v6823_v29 = vld [vmem:[#allocation2 + $0x60] sm:$0xe]  ;;  %v6914_v17 = vrot.slane %v11861_v28, 5  ;;  %v6925_v43 = vrot.slane %v11855_v5, 5 }
 0x49d   : > { %v6906_v6 = vrot.slane %v6904_v51, 4 }
 0x49f   : > { %8798 = vmatmul.mubr.bf16.gmra.mrb[60].mxu0 %v7978_v7  ;;  %v11990_v7 = vrot.slane %v6331_v21, 5  ;;  %v6946_v21 = vrot.slane %v11939_v24, 5 }
 0x4a0   : > { %8817 = vmatprep.mubr.bf16.mxu0 %v9522_v45  ;;  %v6900_v45 = vrot.slane %v11792_v14, 5  ;;  %v6911_v14 = vrot.slane %v11787_v40, 5 }
 0x4a1   : > { %v6948_v24 = vrot.slane %v6946_v21, 4 }
 0x4a2   : > { %v12010_v23 = vsel %vm11306_vm14, %v6899_v30, %v6900_v45  ;;  %v12021_v30 = vsel %vm11306_vm14, %v8206_v56, %v6904_v51  ;;  %v12025_v40 = vsel %vm11306_vm14, %v8207_v12, %v6911_v14  ;;  %v6913_v0 = vrot.slane %v6911_v14, 4  ;;  %v6826_v12 = vld [vmem:[#allocation2 + $0x84] sm:$0xe] }
 0x4a3   : > { %8990 = vmatmul.mubr.bf16.gmra.mrb[12].mxu1 %v9524_v19  ;;  %v6918_v19 = vrot.slane %v11822_v44, 5  ;;  %v12029_v45 = vsel %vm11306_vm14, %v6906_v6, %v6907_v15  ;;  %v6921_v44 = vrot.slane %v11876_v57, 5  ;;  %v6928_v15 = vrot.slane %v11879_v26, 5  ;;  %v9530_v6 = vld [vmem:[%s12652_s7 + $0x208] sm:$0xff]  }
 0x4a4   : > { %9009 = vmatprep.mubr.bf16.mxu1 %v11842_v63  ;;  %v8209_v63 = vrot.slane %v6823_v29, 9  ;;  %v12037_v51 = vsel %vm11306_vm14, %v6913_v0, %v6914_v17  ;;  %v6927_v29 = vrot.slane %v6925_v43, 4  ;;  %v8210_v14 = vrot.slane %v6824_v22, 9  ;;  %v9528_v0 = vld [vmem:[#allocation2 + $0x30] sm:$0xff]  }
 0x4a5   : > { %v6920_v28 = vrot.slane %v6918_v19, 4  ;;  %v6932_v17 = vrot.slane %v11859_v33, 5  ;;  %v6939_v57 = vrot.slane %v11898_v37, 5  ;;  %v6942_v56 = vrot.slane %v11943_v38, 5  ;;  %v12079_v37 = vld [vmem:[#allocation2 + $0xac] sm:$0xf] }
 0x4a6   : > { %v12057_v26 = vsel %vm11306_vm14, %v8209_v63, %v6925_v43  ;;  %v12064_v22 = vsel %vm11306_vm14, %v6927_v29, %v6928_v15  ;;  %v9529_v43 = vld [vmem:[#allocation2 + $0x3c] sm:$0xff]   ;;  %v12069_v63 = vld [vmem:[#allocation2 + $0x98] sm:$0x1] }
 0x4a7   : > { %8818 = vmatmul.mubr.bf16.vlgmr.msra.gmra.mrb[32].mxu0 %v9525_v58  ;;  %v12041_v58 = vsel %vm11306_vm14, %v8208_v34, %v6918_v19  ;;  %v12048_v5 = vsel %vm11306_vm14, %v6920_v28, %v6921_v44  ;;  %12742 = vst [vmem:[#allocation12_spill] sm:$0xff] %v12057_v26  ;;  %v8211_v19 = vrot.slane %v6825_v32, 9  ;;  %v12060_v28 = vld [vmem:[#allocation2 + $0x8c] sm:$0x1]  ;;  %12743 = vst [vmem:[#allocation6_spill] sm:$0xff] %v12064_v22  ;;  %v6935_v44 = vrot.slane %v11913_v50, 5 }
 0x4a8   : > { %8821 = vmatprep.mubr.bf16.mxu0 %v9526_v27  ;;  %v6827_v27 = vld [vmem:[#allocation2 + $0x90] sm:$0xe]  ;;  %v8212_v34 = vrot.slane %v6826_v12, 9  ;;  %v6934_v32 = vrot.slane %v6932_v17, 4  ;;  %v12077_v50 = vld [vmem:[#allocation2 + $0xa0] sm:$0xf] }
 0x4a9   : > { %v12087_v15 = vsel %vm11306_vm14, %v8211_v19, %v6939_v57  ;;  %v6941_v12 = vrot.slane %v6939_v57, 4  ;;  %v8213_v29 = vrot.slane %v6827_v27, 9  ;;  %v6828_v33 = vld [vmem:[#allocation2 + $0x9c] sm:$0xe]  ;;  %v12098_v19 = vld [vmem:[#allocation2 + $0xa4] sm:$0x1] }
 0x4aa   : > { %12745 = vst [vmem:[#allocation7_spill] sm:$0xff] %v12087_v15  ;;  %v6960_v3 = vrot.slane %v12077_v50, 5  ;;  %v6832_v15 = vld [vmem:[#allocation2 + $0xcc] sm:$0xe] }
 0x4ab   : > { %9010 = vmatmul.mubr.bf16.vlgmr.msra.gmra.mrb[16].mxu1 %v11848_v13  ;;  %v12083_v13 = vsel %vm11306_vm14, %v8210_v14, %v6932_v17  ;;  %v6949_v14 = vrot.slane %v12060_v28, 5  ;;  %v6953_v17 = vrot.slane %v11982_v35, 5  ;;  %v12104_v27 = vsel %vm11306_vm14, %v6941_v12, %v6942_v56 }
 0x4ac   : > { %9042 = vmatpush3.bf16.msra.mxu1 %v11813_v41  ;;  %9013 = vmatprep.mubr.bf16.mxu1 %v11911_v48  ;;  %12744 = vst [vmem:[#allocation13_spill] sm:$0xff] %v12083_v13  ;;  %v9533_v41 = vld [vmem:[%s12652_s7 + $0x210] sm:$0xff]   ;;  %v12094_v48 = vsel %vm11306_vm14, %v6934_v32, %v6935_v44  ;;  %12747 = vst [vmem:[#allocation8_spill] sm:$0xff] %v12104_v27  ;;  %v12108_v44 = vsel %vm11306_vm14, %v8212_v34, %v6946_v21  ;;  %v6956_v32 = vrot.slane %v12069_v63, 5  ;;  %v12121_v21 = vld [vmem:[#allocation2 + $0xbc] sm:$0x1] }
 0x4ad   : > { %9043 = vmatprep.subr.bf16.mxu1 %v9530_v6  ;;  %12746 = vst [vmem:[#allocation14_spill] sm:$0xff] %v12094_v48  ;;  %12748 = vst [vmem:[#allocation15_spill] sm:$0xff] %v12108_v44  ;;  %v12119_v57 = vsel %vm11306_vm14, %v6948_v24, %v6949_v14  ;;  %v6955_v56 = vrot.slane %v6953_v17, 4  ;;  %v8214_v12 = vrot.slane %v6828_v33, 9  ;;  %v12123_v34 = vld [vmem:[#allocation2 + $0xc4] sm:$0xf]  ;;  %v12129_v48 = vsel %vm11306_vm14, %v8213_v29, %v6953_v17 }
 0x4ae   : > { %12749 = vst [vmem:[#allocation9_spill] sm:$0xff] %v12119_v57  ;;  %12750 = vst [vmem:[#allocation16_spill] sm:$0xff] %v12129_v48  ;;  %v8215_v27 = vrot.slane %v6829_v36, 9  ;;  %v9535_v33 = vld [vmem:[%s12652_s7 + $0x218] sm:$0xff]   ;;  %v6963_v24 = vrot.slane %v12098_v19, 5  ;;  %v6967_v14 = vrot.slane %v12079_v37, 5 }
 0x4af   : > { %8822 = vmatmul.mubr.bf16.gmra.mrb[36].mxu0 %v9528_v0  ;;  %v12113_v0 = vld [vmem:[#allocation2 + $0xb8] sm:$0xf]  ;;  %v6831_v57 = vld [vmem:[#allocation2 + $0xc0] sm:$0xe]  ;;  %v6962_v17 = vrot.slane %v6960_v3, 4  ;;  %v6970_v36 = vrot.slane %v12111_v52, 5 }
 0x4b0   : > { %8825 = vmatprep.mubr.bf16.mxu0 %v9529_v43  ;;  %9044 = vmatpush3.bf16.msra.mxu1 %v9530_v6  ;;  %v12137_v6 = vsel %vm11306_vm14, %v6955_v56, %v6956_v32  ;;  %v8216_v43 = vrot.slane %v6830_v47, 9  ;;  %v6974_v44 = vrot.slane %v12113_v0, 5  ;;  %v12146_v13 = vld [vmem:[#allocation2 + $0xc8] sm:$0x1]  ;;  %v12150_v32 = vsel %vm11306_vm14, %v8214_v12, %v6960_v3  ;;  %v9532_v12 = vld [vmem:[#allocation2 + $0x54] sm:$0xff]  }
 0x4b1   : > { %9045 = vmatprep.subr.bf16.mxu1 %v9533_v41  ;;  %12751 = vst [vmem:[#allocation10_spill] sm:$0xff] %v12137_v6  ;;  %v12154_v47 = vsel %vm11306_vm14, %v8215_v27, %v6967_v14  ;;  %v6969_v56 = vrot.slane %v6967_v14, 4  ;;  %v6977_v29 = vrot.slane %v12121_v21, 5  ;;  %v9531_v6 = vld [vmem:[#allocation2 + $0x48] sm:$0xff]   ;;  %v8217_v22 = vrot.slane %v6831_v57, 9  ;;  %v9536_v27 = vld [vmem:[%s12652_s7 + $0x220] sm:$0xff]  }
 0x4b2   : > { %v6976_v48 = vrot.slane %v6974_v44, 4  ;;  %v6981_v3 = vrot.slane %v12123_v34, 5  ;;  %v8218_v57 = vrot.slane %v6832_v15, 9  ;;  %v12767_v20 = vld [vmem:[#allocation12_spill] sm:$0xff] }
 0x4b3   : > { %9014 = vmatmul.mubr.bf16.gmra.mrb[20].mxu1 %v11921_v10  ;;  %v12160_v10 = vsel %vm11306_vm14, %v6962_v17, %v6963_v24  ;;  %v12176_v24 = vld [vmem:[#allocation2 + $0xd0] sm:$0xf]  ;;  %v12178_v17 = vld [vmem:[#allocation2 + $0xd4] sm:$0x1] }
 0x4b4   : > { %9017 = vmatprep.mubr.bf16.mxu1 %v11923_v46  ;;  %9046 = vmatpush3.bf16.msra.mxu1 %v9533_v41  ;;  %12752 = vst [vmem:[#allocation4_spill] sm:$0xff] %v12160_v10  ;;  %v12170_v46 = vsel %vm11306_vm14, %v6969_v56, %v6970_v36  ;;  %v12174_v41 = vsel %vm11306_vm14, %v8216_v43, %v6974_v44  ;;  %v6983_v10 = vrot.slane %v6981_v3, 4  ;;  %v6984_v36 = vrot.slane %v12146_v13, 5 }
 0x4b5   : > { %9047 = vmatprep.subr.bf16.mxu1 %v9535_v33  ;;  %v12184_v14 = vsel %vm11306_vm14, %v6976_v48, %v6977_v29  ;;  %v12753_v44 = vshll.u32 %v11930_v53, 16  ;;  %v6991_v56 = vrot.slane %v12178_v17, 5  ;;  %v12754_v48 = vsel %vm10716_vm3, %v11936_v42, %v11928_v31 }
 0x4b6   : > { %v12755_v29 = vsel %vm10716_vm3, %v11934_v2, %v11881_v55  ;;  %v12756_v53 = vshll.u32 %v11982_v35, 16  ;;  %v12209_v15 = vsel %vm11306_vm14, %v8217_v22, %v6981_v3  ;;  %v12213_v26 = vsel %vm11306_vm14, %v6983_v10, %v6984_v36  ;;  %v9537_v55 = vld [vmem:[%s12652_s7 + $0x228] sm:$0xff]   ;;  %v6096_v2 = vld [vmem:[#allocation2 + $0x9c] sm:$0xf] }
 0x4b7   : > { %8826 = vmatmul.mubr.bf16.gmra.mrb[40].mxu0 %v9531_v6  ;;  %v6357_v43 = vrot.slane %v12753_v44, 5  ;;  %v6988_v6 = vrot.slane %v12176_v24, 5  ;;  %v12757_v31 = vshrl.u32 %v11982_v35, 16  ;;  %v12758_v10 = vsel %vm10716_vm3, %v11949_v16, %v11968_v4 }
 0x4b8   : > { %8829 = vmatprep.mubr.bf16.mxu0 %v9532_v12  ;;  %v8185_v12 = vcombine.low %v12755_v29, %v12754_v48  ;;  %9048 = vmatpush3.bf16.msra.mxu1 %v9535_v33  ;;  %v12205_v44 = vrot.slane %v12756_v53, 5  ;;  %v12759_v35 = vsel %vm10716_vm3, %v11941_v39, %v11890_v25  ;;  %v12760_v48 = vor.u32 %v11947_v8, %v11945_v62  ;;  %v6099_v33 = vld [vmem:[#allocation2 + $0xa8] sm:$0xf]  ;;  %v9534_v8 = vld [vmem:[#allocation2 + $0x60] sm:$0xff]  }
 0x4b9   : > { %9049 = vmatprep.subr.bf16.mxu1 %v9536_v27  ;;  %v6367_v42 = vrot.slane %v12757_v31, 4  ;;  %v12224_v22 = vsel %vm11306_vm14, %v8218_v57, %v6988_v6  ;;  %v6990_v3 = vrot.slane %v6988_v6, 4  ;;  %v8186_v36 = vcombine.low %v12759_v35, %v12758_v10 }
 0x4ba   : > { %v6311_v29 = vrot.slane %v12760_v48, 4  ;;  %v12761_v57 = vor.u32 %v11953_v11, %v11951_v18  ;;  %v12762_v6 = vshll.u32 %v11943_v38, 16  ;;  %v6334_v16 = vor.u32 %v11990_v7, %v11980_v59 }
 0x4bb   : > { %9018 = vmatmul.mubr.bf16.gmra.mrb[24].mxu1 %v11955_v1  ;;  %v6344_v25 = vor.u32 %v11995_v49, %v11993_v60  ;;  %v6358_v39 = vor.u32 %v6357_v43, %v11997_v9  ;;  %v12252_v62 = vsel %vm11306_vm14, %v6990_v3, %v6991_v56  ;;  %v6376_v38 = vshrl.u32 %v6096_v2, 16  ;;  %v9538_v43 = vld [vmem:[%s12652_s7 + $0x230] sm:$0xff]  }
 0x4bc   : > { %v6321_v53 = vrot.slane %v12761_v57, 4  ;;  %v6325_v31 = vrot.slane %v12762_v6, 5  ;;  %9021 = vmatprep.mubr.bf16.mxu1 %v8185_v12  ;;  %9050 = vmatpush3.bf16.msra.mxu1 %v9536_v27  ;;  %v6379_v11 = vshll.u32 %v6096_v2, 16  ;;  %v6385_v4 = vshll.u32 %v12077_v50, 16 }
 0x4bd   : > { %v8250_v1 = vcombine.low %v12224_v22, %v12252_v62  ;;  %v6368_v59 = vor.u32 %v6367_v42, %v12205_v44  ;;  %9051 = vmatprep.subr.bf16.mxu1 %v9537_v55  ;;  %v6389_v7 = vshrl.u32 %v12077_v50, 16  ;;  %v6400_v49 = vshrl.u32 %v6099_v33, 16 }
 0x4be   : > { %v6403_v9 = vshll.u32 %v6099_v33, 16  ;;  %v6316_v27 = vsel %vm10716_vm3, %v6311_v29, %v11951_v18  ;;  %v6347_v56 = vshll.u32 %v12060_v28, 16  ;;  %v6409_v12 = vshll.u32 %v12079_v37, 16 }
 0x4bf   : > { %8830 = vmatmul.mubr.bf16.gmra.mrb[44].mxu0 %v9534_v8  ;;  %v6413_v42 = vshrl.u32 %v12079_v37, 16  ;;  %v6326_v50 = vsel %vm10716_vm3, %v6321_v53, %v6325_v31  ;;  %v6335_v2 = vrot.slane %v6334_v16, 4  ;;  %v6345_v33 = vrot.slane %v6344_v25, 4  ;;  %v9539_v37 = vld [vmem:[%s12652_s7 + $0x238] sm:$0xff]   ;;  %v6102_v25 = vld [vmem:[#allocation2 + $0xb4] sm:$0xf] }
 0x4c0   : > { %v6371_v3 = vshll.u32 %v12069_v63, 16  ;;  %v6359_v10 = vrot.slane %v6358_v39, 4  ;;  %v6378_v35 = vrot.slane %v6376_v38, 4  ;;  %v6381_v48 = vrot.slane %v6379_v11, 5  ;;  %9052 = vmatpush3.bf16.msra.mxu1 %v9537_v55 }
 0x4c1   : > { %v12271_v57 = vrot.slane %v6385_v4, 5  ;;  %v6369_v18 = vrot.slane %v6368_v59, 4  ;;  %v6391_v29 = vrot.slane %v6389_v7, 4  ;;  %v6402_v28 = vrot.slane %v6400_v49, 4  ;;  %9053 = vmatprep.subr.bf16.mxu1 %v9538_v43  ;;  %v6105_v59 = vld [vmem:[#allocation2 + $0xc0] sm:$0xf] }
 0x4c2   : > { %v6405_v6 = vrot.slane %v6403_v9, 5  ;;  %v8187_v53 = vcombine.low %v6316_v27, %v6326_v50  ;;  %v6349_v31 = vrot.slane %v6347_v56, 5  ;;  %v12276_v16 = vrot.slane %v6409_v12, 5 }
 0x4c3   : > { %v6415_v63 = vrot.slane %v6413_v42, 4  ;;  %9022 = vmatmul.mubr.bf16.gmra.mrb[28].mxu1 %v8186_v36  ;;  %v6340_v55 = vsel %vm10716_vm3, %v6335_v2, %v11993_v60  ;;  %v6373_v39 = vrot.slane %v6371_v3, 5  ;;  %v6364_v38 = vsel %vm10716_vm3, %v6359_v10, %v12205_v44 }
 0x4c4   : > { %9025 = vmatprep.mubr.bf16.mxu1 %v8187_v53  ;;  %v6350_v8 = vsel %vm10716_vm3, %v6345_v33, %v6349_v31  ;;  %v6382_v11 = vor.u32 %v6381_v48, %v6378_v35  ;;  %v6395_v4 = vshll.u32 %v12098_v19, 16  ;;  %9054 = vmatpush3.bf16.msra.mxu1 %v9538_v43  ;;  %v6392_v7 = vor.u32 %v6391_v29, %v12271_v57  ;;  %v6108_v29 = vld [vmem:[#allocation2 + $0xcc] sm:$0xf] }
 0x4c5   : > { %v6374_v36 = vsel %vm10716_vm3, %v6369_v18, %v6373_v39  ;;  %v6406_v60 = vor.u32 %v6405_v6, %v6402_v28  ;;  %v6424_v49 = vshrl.u32 %v6102_v25, 16  ;;  %9055 = vmatprep.subr.bf16.mxu1 %v9539_v37  ;;  %v6416_v9 = vor.u32 %v6415_v63, %v12276_v16 }
 0x4c6   : > { %v6427_v27 = vshll.u32 %v6102_v25, 16  ;;  %v6433_v56 = vshll.u32 %v12113_v0, 16  ;;  %v6437_v44 = vshrl.u32 %v12113_v0, 16  ;;  %v6448_v12 = vshrl.u32 %v6105_v59, 16 }
 0x4c7   : > { %v6451_v42 = vshll.u32 %v6105_v59, 16  ;;  %v6457_v19 = vshll.u32 %v12123_v34, 16  ;;  %v6461_v43 = vshrl.u32 %v12123_v34, 16  ;;  %v8188_v50 = vcombine.low %v6340_v55, %v6350_v8 }
 0x4c8   : > { %v8189_v2 = vcombine.low %v6364_v38, %v6374_v36  ;;  %v6383_v33 = vrot.slane %v6382_v11, 4  ;;  %v6397_v3 = vrot.slane %v6395_v4, 5  ;;  %9056 = vmatpush3.bf16.msra.mxu1 %v9539_v37  ;;  %v6393_v10 = vrot.slane %v6392_v7, 4 }
 0x4c9   : > { %v6407_v35 = vrot.slane %v6406_v60, 4  ;;  %v6419_v48 = vshll.u32 %v12111_v52, 16  ;;  %v6426_v18 = vrot.slane %v6424_v49, 4  ;;  %v6417_v28 = vrot.slane %v6416_v9, 4 }
 0x4ca   : > { %v6429_v6 = vrot.slane %v6427_v27, 5  ;;  %v6435_v0 = vrot.slane %v6433_v56, 5  ;;  %v6439_v53 = vrot.slane %v6437_v44, 4  ;;  %v6450_v31 = vrot.slane %v6448_v12, 4 }
 0x4cb   : > { %9026 = vmatmul.mubr.bf16.gmra.mrb[0].mxu1 %v8188_v50  ;;  %v6453_v63 = vrot.slane %v6451_v42, 5  ;;  %v6459_v25 = vrot.slane %v6457_v19, 5  ;;  %v6463_v34 = vrot.slane %v6461_v43, 4  ;;  %v6472_v55 = vshrl.u32 %v6108_v29, 16 }
 0x4cc   : > { %9029 = vmatprep.mubr.bf16.mxu1 %v8189_v2  ;;  %v6475_v39 = vshll.u32 %v6108_v29, 16  ;;  %v6481_v37 = vshll.u32 %v12176_v24, 16  ;;  %v6485_v8 = vshrl.u32 %v12176_v24, 16  ;;  %v6388_v52 = vsel %vm10716_vm3, %v6383_v33, %v12271_v57  ;;  %v9981_v29 = vld [vmem:[#allocation2 + $0x1c] sm:$0xf] }
 0x4cd   : > { %v6421_v38 = vrot.slane %v6419_v48, 5  ;;  %v6398_v11 = vsel %vm10716_vm3, %v6393_v10, %v6397_v3  ;;  %v6412_v4 = vsel %vm10716_vm3, %v6407_v35, %v12276_v16  ;;  %v6430_v59 = vor.u32 %v6429_v6, %v6426_v18 }
 0x4ce   : > { %v6440_v36 = vor.u32 %v6439_v53, %v6435_v0  ;;  %v6443_v60 = vshll.u32 %v12121_v21, 16  ;;  %v6454_v24 = vor.u32 %v6453_v63, %v6450_v31  ;;  %v6464_v49 = vor.u32 %v6463_v34, %v6459_v25  ;;  %v6817_v34 = vld [vmem:[#allocation2 + $0x18] sm:$0xe] }
 0x4cf   : > { %v6422_v7 = vsel %vm10716_vm3, %v6417_v28, %v6421_v38  ;;  %v6474_v9 = vrot.slane %v6472_v55, 4  ;;  %v6477_v27 = vrot.slane %v6475_v39, 5  ;;  %v6483_v57 = vrot.slane %v6481_v37, 5  ;;  %v9982_v37 = vld [vmem:[#allocation2 + $0x20] sm:$0x1] }
 0x4d0   : > { %v6487_v56 = vrot.slane %v6485_v8, 4  ;;  %v8190_v44 = vcombine.low %v6388_v52, %v6398_v11  ;;  %v6467_v12 = vshll.u32 %v12146_v13, 16  ;;  %v8191_v42 = vcombine.low %v6412_v4, %v6422_v7  ;;  %v9983_v52 = vld [vmem:[#allocation2 + $0x28] sm:$0xf] }
 0x4d1   : > { %v6431_v19 = vrot.slane %v6430_v59, 4  ;;  %v6441_v43 = vrot.slane %v6440_v36, 4  ;;  %v6455_v16 = vrot.slane %v6454_v24, 4  ;;  %v6465_v50 = vrot.slane %v6464_v49, 4  ;;  %v6818_v36 = vld [vmem:[#allocation2 + $0x24] sm:$0xe] }
 0x4d2   : > { %v6445_v2 = vrot.slane %v6443_v60, 5  ;;  %v6478_v33 = vor.u32 %v6477_v27, %v6474_v9  ;;  %v6488_v3 = vor.u32 %v6487_v56, %v6483_v57  ;;  %v6491_v21 = vshll.u32 %v12178_v17, 16 }
 0x4d3   : > { %9030 = vmatmul.mubr.bf16.gmra.mrb[4].mxu1 %v8190_v44  ;;  %v6469_v10 = vrot.slane %v6467_v12, 5  ;;  %v6436_v35 = vsel %vm10716_vm3, %v6431_v19, %v6435_v0  ;;  %v6460_v13 = vsel %vm10716_vm3, %v6455_v16, %v6459_v25  ;;  %v6883_v28 = vrot.slane %v9981_v29, 5  ;;  %v12768_v19 = vld [vmem:[#allocation6_spill] sm:$0xff]  ;;  %v12770_v16 = vld [vmem:[#allocation13_spill] sm:$0xff] }
 0x4d4   : > { %9033 = vmatprep.mubr.bf16.mxu1 %v8191_v42  ;;  %v6446_v48 = vsel %vm10716_vm3, %v6441_v43, %v6445_v2  ;;  %v6479_v6 = vrot.slane %v6478_v33, 4  ;;  %v6489_v53 = vrot.slane %v6488_v3, 4  ;;  %v6493_v31 = vrot.slane %v6491_v21, 5  ;;  %v12774_v2 = vld [vmem:[#allocation8_spill] sm:$0xff]  ;;  %v12777_v33 = vld [vmem:[#allocation9_spill] sm:$0xff]  ;;  %v12780_v3 = vld [vmem:[#allocation10_spill] sm:$0xff] }
 0x4d5   : > { %v6470_v18 = vsel %vm10716_vm3, %v6465_v50, %v6469_v10  ;;  %v8192_v63 = vcombine.low %v6436_v35, %v6446_v48  ;;  %v6885_v55 = vrot.slane %v6883_v28, 4  ;;  %v8203_v39 = vrot.slane %v6817_v34, 9  ;;  %v12771_v50 = vld [vmem:[#allocation14_spill] sm:$0xff] }
 0x4d6   : > { %v8193_v17 = vcombine.low %v6460_v13, %v6470_v18  ;;  %v6484_v0 = vsel %vm10716_vm3, %v6479_v6, %v6483_v57  ;;  %v6494_v25 = vsel %vm10716_vm3, %v6489_v53, %v6493_v31  ;;  %v6886_v8 = vrot.slane %v9982_v37, 5 }
 0x4d7   : > { %v6890_v38 = vrot.slane %v9983_v52, 5  ;;  %v8194_v11 = vcombine.low %v6484_v0, %v6494_v25  ;;  %v6884_v59 = vsel %vm11306_vm14, %v8203_v39, %v6883_v28  ;;  %v8204_v24 = vrot.slane %v6818_v36, 9 }
 0x4d8   : > { %v6887_v4 = vsel %vm11306_vm14, %v6885_v55, %v6886_v8  ;;  %v6893_v49 = vrot.slane %v9984_v61, 5  ;;  %v12763_v56 = vcombine.low %v12005_v54, %v12010_v23  ;;  %v12764_v44 = vcombine.low %v12021_v30, %v12029_v45  ;;  %v12773_v54 = vld [vmem:[#allocation7_spill] sm:$0xff] }
 0x4d9   : > { %v8235_v7 = vcombine.low %v6884_v59, %v6887_v4  ;;  %v6892_v60 = vrot.slane %v6890_v38, 4  ;;  %v6891_v27 = vsel %vm11306_vm14, %v8204_v24, %v6890_v38  ;;  %v12765_v12 = vcombine.low %v12025_v40, %v12037_v51  ;;  %v12776_v45 = vld [vmem:[#allocation15_spill] sm:$0xff]  ;;  %v12779_v51 = vld [vmem:[#allocation16_spill] sm:$0xff] }
 0x4da   : > { %v12766_v42 = vcombine.low %v12041_v58, %v12048_v5  ;;  %v12769_v43 = vcombine.low %v12767_v20, %v12768_v19  ;;  %v12772_v23 = vcombine.low %v12770_v16, %v12771_v50  ;;  %v12775_v30 = vcombine.low %v12773_v54, %v12774_v2  ;;  %v12782_v5 = vld [vmem:[#allocation4_spill] sm:$0xff] }
 0x4db   : > { %9034 = vmatmul.mubr.bf16.gmra.mrb[8].mxu1 %v8192_v63  ;;  %v6894_v9 = vsel %vm11306_vm14, %v6892_v60, %v6893_v49  ;;  %v12778_v40 = vcombine.low %v12776_v45, %v12777_v33  ;;  %v12781_v58 = vcombine.low %v12779_v51, %v12780_v3  ;;  %v12783_v21 = vcombine.low %v12150_v32, %v12782_v5  ;;  %v12416_v60 = vld [vmem:[%s12653_s8] ss:$0 sm:$0xff] }
 0x4dc   : > { %9037 = vmatprep.mubr.bf16.mxu1 %v8193_v17  ;;  %v8236_v57 = vcombine.low %v6891_v27, %v6894_v9  ;;  %v12784_v10 = vcombine.low %v12154_v47, %v12170_v46  ;;  %v12785_v35 = vcombine.low %v12174_v41, %v12184_v14  ;;  %v12786_v48 = vcombine.low %v12209_v15, %v12213_v26 }
 0x4e3   : > { %9038 = vmatmul.mubr.bf16.gmra.mrb[12].mxu1 %v8194_v11 }
 0x4e4   : > { %9057 = vmatprep.mubr.bf16.mxu1 %v8235_v7 }
 0x4eb   : > { %9058 = vmatmul.mubr.bf16.vlgmr.msra.gmra.mrb[16].mxu1 %v8236_v57 }
 0x4ec   : > { %9061 = vmatprep.mubr.bf16.mxu1 %v12763_v56 }
 0x4f3   : > { %9062 = vmatmul.mubr.bf16.gmra.mrb[20].mxu1 %v12764_v44 }
 0x4f4   : > { %9065 = vmatprep.mubr.bf16.mxu1 %v12765_v12 }
 0x4fb   : > { %9066 = vmatmul.mubr.bf16.gmra.mrb[24].mxu1 %v12766_v42 }
 0x4fc   : > { %9069 = vmatprep.mubr.bf16.mxu1 %v12769_v43 }
 0x503   : > { %9070 = vmatmul.mubr.bf16.gmra.mrb[28].mxu1 %v12772_v23 }
 0x504   : > { %9073 = vmatprep.mubr.bf16.mxu1 %v12775_v30 }
 0x50b   : > { %9074 = vmatmul.mubr.bf16.gmra.mrb[0].mxu1 %v12778_v40 }
 0x50c   : > { %9077 = vmatprep.mubr.bf16.mxu1 %v12781_v58 }
 0x513   : > { %9078 = vmatmul.mubr.bf16.gmra.mrb[4].mxu1 %v12783_v21 }
 0x514   : > { %9081 = vmatprep.mubr.bf16.mxu1 %v12784_v10 }
 0x51b   : > { %9082 = vmatmul.mubr.bf16.gmra.mrb[8].mxu1 %v12785_v35 }
 0x51c   : > { %9085 = vmatprep.mubr.bf16.mxu1 %v12786_v48 }
 0x523   : > { %9086 = vmatmul.mubr.bf16.gmra.mrb[12].mxu1 %v8250_v1 }
 0x55a   : > { %v12373_v13 = vpop.f32.mrb[48].mxu0 }
 0x55b   : > { %v12375_v32 = vpop.f32.mrb[49].mxu0 }
 0x55c   : > { %v12377_v18 = vpop.f32.mrb[50].mxu0 }
 0x55d   : > { %v12379_v47 = vpop.f32.mrb[51].mxu0 }
 0x562   : > { %v12381_v46 = vpop.f32.mrb[52].mxu0 }
 0x563   : > { %v12383_v14 = vpop.f32.mrb[53].mxu0 }
 0x564   : > { %v12385_v41 = vpop.f32.mrb[54].mxu0 }
 0x565   : > { %v12387_v26 = vpop.f32.mrb[55].mxu0 }
 0x56a   : > { %v12389_v15 = vpop.f32.mrb[56].mxu0 }
 0x56b   : > { %v12391_v22 = vpop.f32.mrb[57].mxu0 }
 0x56c   : > { %v12393_v62 = vpop.f32.mrb[58].mxu0 }
 0x56d   : > { %v12395_v1 = vpop.f32.mrb[59].mxu0 }
 0x572   : > { %v12397_v29 = vpop.f32.mrb[60].mxu0 }
 0x573   : > { %v12399_v28 = vpop.f32.mrb[61].mxu0 }
 0x574   : > { %v12401_v6 = vpop.f32.mrb[62].mxu0 }
 0x575   : > { %v12403_v53 = vpop.f32.mrb[63].mxu0 }
 0x57a   : > { %v8819_v31 = vpop.f32.mrb[32].mxu0 }
 0x57b   : > { %v4265_v63 = vpop.f32.mrb[33].mxu0 }
 0x57c   : > { %v8820_v17 = vpop.f32.mrb[34].mxu0 }
 0x57d   : > { %v4268_v34 = vpop.f32.mrb[35].mxu0 }
 0x582   : > { %v8823_v55 = vpop.f32.mrb[36].mxu0 }
 0x583   : > { %v4281_v0 = vpop.f32.mrb[37].mxu0 }
 0x584   : > { %v8824_v25 = vpop.f32.mrb[38].mxu0 }
 0x585   : > { %v4284_v39 = vpop.f32.mrb[39].mxu0 }
 0x58a   : > { %v8827_v37 = vpop.f32.mrb[40].mxu0 }
 0x58b   : > { %v4297_v8 = vpop.f32.mrb[41].mxu0 }
 0x58c   : > { %v8828_v52 = vpop.f32.mrb[42].mxu0 }
 0x58d   : > { %v4300_v38 = vpop.f32.mrb[43].mxu0 }
 0x592   : > { %v12405_v11 = vpop.f32.mrb[44].mxu0 }
 0x593   : > { %v12407_v4 = vpop.f32.mrb[45].mxu0 }
 0x594   : > { %v12409_v59 = vpop.f32.mrb[46].mxu0 }
 0x595   : > { %v12411_v36 = vpop.f32.mrb[47].mxu0 }
 0x5be   : > { %v9059_v7 = vpop.f32.mrb[16].mxu1 }
 0x5bf   : > { %v9105_v24 = vadd.f32 %v9059_v7, %v8819_v31  ;;  %v7156_v61 = vpop.f32.mrb[17].mxu1 }
 0x5c0   : > { %v9106_v49 = vadd.f32 %v7156_v61, %v4265_v63  ;;  %v9060_v9 = vpop.f32.mrb[18].mxu1 }
 0x5c1   : > { %v12419_v27 = vadd.f32 %v9105_v24, %v12416_v60  ;;  %v9107_v57 = vadd.f32 %v9060_v9, %v8820_v17  ;;  %v7159_v56 = vpop.f32.mrb[19].mxu1 }
 0x5c2   : > { %v12422_v44 = vadd.f32 %v9106_v49, %v12416_v60  ;;  %v9108_v12 = vadd.f32 %v7159_v56, %v4268_v34 }
 0x5c3   : > { %v8262_v42 = vmul.f32 -1.442695, %v12419_v27  ;;  %v12426_v20 = vadd.f32 %v9107_v57, %v12416_v60 }
 0x5c4   : > { %v8260_v19 = vmul.f32 -1.442695, %v12422_v44  ;;  %v12430_v43 = vadd.f32 %v9108_v12, %v12416_v60 }
 0x5c5   : > { %v8263_v23 = vmul.f32 -1.442695, %v12426_v20 }
 0x5c6   : > { %9796 = vpow2.f32 %v8260_v19  ;;  %v8261_v16 = vmul.f32 -1.442695, %v12430_v43  ;;  %v9063_v50 = vpop.f32.mrb[20].mxu1 }
 0x5c7   : > { %9798 = vpow2.f32 %v8262_v42  ;;  %v9109_v54 = vadd.f32 %v9063_v50, %v8823_v55  ;;  %v7172_v2 = vpop.f32.mrb[21].mxu1 }
 0x5c8   : > { %9800 = vpow2.f32 %v8261_v16  ;;  %v9110_v30 = vadd.f32 %v7172_v2, %v4281_v0  ;;  %v9064_v45 = vpop.f32.mrb[22].mxu1 }
 0x5c9   : > { %v9111_v33 = vadd.f32 %v9064_v45, %v8824_v25  ;;  %v7175_v40 = vpop.f32.mrb[23].mxu1  ;;  %9802 = vpow2.f32 %v8263_v23  ;;  %v12442_v21 = vadd.f32 %v9109_v54, %v12416_v60 }
 0x5ca   : > { %v12435_v51 = vadd.f32 %v9110_v30, %v12416_v60  ;;  %v9112_v3 = vadd.f32 %v7175_v40, %v4284_v39 }
 0x5cb   : > { %v8266_v24 = vmul.f32 -1.442695, %v12442_v21  ;;  %v12447_v9 = vadd.f32 %v9111_v33, %v12416_v60 }
 0x5cc   : > { %v8264_v58 = vmul.f32 -1.442695, %v12435_v51  ;;  %v12439_v5 = vadd.f32 %v9112_v3, %v12416_v60 }
 0x5cd   : > { %v8267_v56 = vmul.f32 -1.442695, %v12447_v9 }
 0x5ce   : > { %v8265_v10 = vmul.f32 -1.442695, %v12439_v5  ;;  %v9067_v35 = vpop.f32.mrb[24].mxu1  ;;  %9804 = vpow2.f32 %v8264_v58 }
 0x5cf   : > { %v9113_v48 = vadd.f32 %v9067_v35, %v8827_v37  ;;  %v7188_v31 = vpop.f32.mrb[25].mxu1 }
 0x5d0   : > { %v9797_v63 = vpop.eup %9796  ;;  %v9114_v17 = vadd.f32 %v7188_v31, %v4297_v8  ;;  %v9068_v34 = vpop.f32.mrb[26].mxu1  ;;  %9806 = vpow2.f32 %v8265_v10 }
 0x5d1   : > { %v9799_v55 = vpop.eup %9798  ;;  %v7450_v0 = vadd.f32 1.0, %v9797_v63  ;;  %v9115_v25 = vadd.f32 %v9068_v34, %v8828_v52  ;;  %v7191_v39 = vpop.f32.mrb[27].mxu1 }
 0x5d2   : > { %v9801_v7 = vpop.eup %9800  ;;  %v9116_v61 = vadd.f32 %v7191_v39, %v4300_v38  ;;  %v7452_v57 = vadd.f32 1.0, %v9799_v55  ;;  %v12451_v52 = vadd.f32 %v9114_v17, %v12416_v60 }
 0x5d3   : > { %9808 = vrcp.f32 %v7450_v0  ;;  %v7451_v49 = vadd.f32 1.0, %v9801_v7  ;;  %v9803_v37 = vpop.eup %9802 }
 0x5d4   : > { %v7453_v19 = vadd.f32 1.0, %v9803_v37  ;;  %v8268_v30 = vmul.f32 -1.442695, %v12451_v52  ;;  %v12463_v45 = vadd.f32 %v9116_v61, %v12416_v60  ;;  %v12483_v61 = vadd.f32 %v9115_v25, %v12416_v60 }
 0x5d5   : > { %9810 = vrcp.f32 %v7451_v49 }
 0x5d6   : > { %9812 = vpow2.f32 %v8266_v24  ;;  %v9071_v8 = vpop.f32.mrb[28].mxu1 }
 0x5d7   : > { %v9117_v12 = vadd.f32 %v9071_v8, %v12405_v11  ;;  %v7204_v42 = vpop.f32.mrb[29].mxu1  ;;  %9814 = vrcp.f32 %v7452_v57 }
 0x5d8   : > { %v9118_v38 = vadd.f32 %v7204_v42, %v12407_v4  ;;  %v9072_v16 = vpop.f32.mrb[30].mxu1  ;;  %v9805_v54 = vpop.eup %9804  ;;  %9816 = vpow2.f32 %v8267_v56 }
 0x5d9   : > { %v12456_v50 = vadd.f32 %v9072_v16, %v12409_v59  ;;  %v7207_v23 = vpop.f32.mrb[31].mxu1  ;;  %9818 = vrcp.f32 %v7453_v19  ;;  %v7454_v4 = vadd.f32 1.0, %v9805_v54  ;;  %v12467_v59 = vadd.f32 %v9113_v48, %v12416_v60 }
 0x5da   : > { %v12459_v2 = vadd.f32 %v7207_v23, %v12411_v36  ;;  %v9807_v11 = vpop.eup %9806  ;;  %9820 = vpow2.f32 %v8268_v30  ;;  %v8269_v36 = vmul.f32 -1.442695, %v12463_v45  ;;  %v12490_v37 = vadd.f32 %v9117_v12, %v12416_v60 }
 0x5db   : > { %v7455_v63 = vadd.f32 1.0, %v9807_v11  ;;  %9822 = vrcp.f32 %v7454_v4  ;;  %v8270_v39 = vmul.f32 -1.442695, %v12467_v59  ;;  %v8271_v19 = vmul.f32 -1.442695, %v12483_v61 }
 0x5dc   : > { %9824 = vpow2.f32 %v8269_v36  ;;  %v12500_v16 = vadd.f32 %v9118_v38, %v12416_v60  ;;  %v8274_v4 = vmul.f32 -1.442695, %v12490_v37 }
 0x5dd   : > { %v9809_v33 = vpop.eup %9808  ;;  %9826 = vrcp.f32 %v7455_v63 }
 0x5de   : > { %v7546_v40 = vmul.f32 %v9809_v33, %v12422_v44  ;;  %v9075_v3 = vpop.f32.mrb[0].mxu1  ;;  %9828 = vpow2.f32 %v8270_v39  ;;  %v8272_v36 = vmul.f32 -1.442695, %v12500_v16 }
 0x5df   : > { %v9811_v58 = vpop.eup %9810  ;;  %v9121_v10 = vadd.f32 %v9075_v3, %v12373_v13  ;;  %v7220_v35 = vpop.f32.mrb[1].mxu1 }
 0x5e0   : > { %v9813_v31 = vpop.eup %9812  ;;  %v9122_v17 = vadd.f32 %v7220_v35, %v12375_v32  ;;  %v9076_v34 = vpop.f32.mrb[2].mxu1  ;;  %7578 = vxpose.xlu1.b32.start [1/16] %v7546_v40, 128  ;;  %v7547_v0 = vmul.f32 %v9811_v58, %v12430_v43 }
 0x5e1   : > { %v12473_v44 = vadd.f32 %v9121_v10, %v12416_v60  ;;  %v9123_v48 = vadd.f32 %v9076_v34, %v12377_v18  ;;  %v7223_v55 = vpop.f32.mrb[3].mxu1  ;;  %v9815_v24 = vpop.eup %9814  ;;  %v7456_v32 = vadd.f32 1.0, %v9813_v31 }
 0x5e2   : > { %v12479_v13 = vadd.f32 %v9122_v17, %v12416_v60  ;;  %v9124_v7 = vadd.f32 %v7223_v55, %v12379_v47  ;;  %v9817_v43 = vpop.eup %9816  ;;  %v7548_v8 = vmul.f32 %v9815_v24, %v12419_v27 }
 0x5e3   : > { %v8278_v57 = vmul.f32 -1.442695, %v12473_v44  ;;  %v9819_v47 = vpop.eup %9818  ;;  %v12495_v25 = vadd.f32 %v9123_v48, %v12416_v60  ;;  %9830 = vrcp.f32 %v7456_v32  ;;  %v7457_v54 = vadd.f32 1.0, %v9817_v43 }
 0x5e4   : > { %v8276_v49 = vmul.f32 -1.442695, %v12479_v13  ;;  %v12487_v18 = vadd.f32 %v9124_v7, %v12416_v60  ;;  %7579 = vxpose.xlu1.b32.cont [2/16] %v7547_v0, 128  ;;  %v9821_v11 = vpop.eup %9820  ;;  %v7549_v33 = vmul.f32 %v9819_v47, %v12426_v20  ;;  %v12515_v20 = vadd.f32 %v12459_v2, %v12416_v60 }
 0x5e5   : > { %v8279_v38 = vmul.f32 -1.442695, %v12495_v25  ;;  %v7458_v10 = vadd.f32 1.0, %v9821_v11 }
 0x5e6   : > { %v8277_v56 = vmul.f32 -1.442695, %v12487_v18  ;;  %v9079_v42 = vpop.f32.mrb[4].mxu1  ;;  %9832 = vpow2.f32 %v8276_v49  ;;  %v8273_v34 = vmul.f32 -1.442695, %v12515_v20 }
 0x5e7   : > { %v9125_v12 = vadd.f32 %v9079_v42, %v12381_v46  ;;  %v7236_v23 = vpop.f32.mrb[5].mxu1  ;;  %9834 = vpow2.f32 %v8278_v57 }
 0x5e8   : > { %v9126_v27 = vadd.f32 %v7236_v23, %v12383_v14  ;;  %v9080_v30 = vpop.f32.mrb[6].mxu1  ;;  %7580 = vxpose.xlu1.b32.cont [3/16] %v7548_v8, 128  ;;  %9836 = vpow2.f32 %v8277_v56  ;;  %v9823_v14 = vpop.eup %9822 }
 0x5e9   : > { %v9127_v40 = vadd.f32 %v9080_v30, %v12385_v41  ;;  %v7239_v3 = vpop.f32.mrb[7].mxu1  ;;  %9838 = vpow2.f32 %v8271_v19  ;;  %v9825_v41 = vpop.eup %9824  ;;  %v7550_v31 = vmul.f32 %v9823_v14, %v12435_v51  ;;  %v12527_v32 = vadd.f32 %v9125_v12, %v12416_v60 }
 0x5ea   : > { %v12509_v46 = vadd.f32 %v9126_v27, %v12416_v60  ;;  %v9128_v58 = vadd.f32 %v7239_v3, %v12387_v26  ;;  %9840 = vrcp.f32 %v7457_v54  ;;  %v9827_v35 = vpop.eup %9826  ;;  %v7459_v0 = vadd.f32 1.0, %v9825_v41 }
 0x5eb   : > { %9842 = vpow2.f32 %v8274_v4  ;;  %v9829_v55 = vpop.eup %9828  ;;  %v7551_v24 = vmul.f32 %v9827_v35, %v12439_v5  ;;  %v8282_v11 = vmul.f32 -1.442695, %v12527_v32 }
 0x5ec   : > { %7581 = vxpose.xlu1.b32.cont [4/16] %v7549_v33, 128  ;;  %9844 = vpow2.f32 %v8279_v38  ;;  %v8280_v63 = vmul.f32 -1.442695, %v12509_v46  ;;  %v12520_v26 = vadd.f32 %v9128_v58, %v12416_v60  ;;  %v7460_v12 = vadd.f32 1.0, %v9829_v55 }
 0x5ed   : > { %9846 = vpow2.f32 %v8272_v36  ;;  %v9831_v51 = vpop.eup %9830  ;;  %v12551_v33 = vadd.f32 %v9127_v40, %v12416_v60 }
 0x5ee   : > { %v9083_v17 = vpop.f32.mrb[8].mxu1  ;;  %9848 = vrcp.f32 %v7458_v10  ;;  %v8281_v47 = vmul.f32 -1.442695, %v12520_v26  ;;  %v7552_v30 = vmul.f32 %v9831_v51, %v12442_v21 }
 0x5ef   : > { %v9129_v2 = vadd.f32 %v9083_v17, %v12389_v15  ;;  %v7252_v48 = vpop.f32.mrb[9].mxu1  ;;  %9850 = vpow2.f32 %v8280_v63 }
 0x5f0   : > { %v9130_v39 = vadd.f32 %v7252_v48, %v12391_v22  ;;  %v9084_v7 = vpop.f32.mrb[10].mxu1  ;;  %7582 = vxpose.xlu1.b32.cont [5/16] %v7550_v31, 128  ;;  %v9833_v57 = vpop.eup %9832  ;;  %9852 = vpow2.f32 %v8273_v34  ;;  %v8283_v34 = vmul.f32 -1.442695, %v12551_v33 }
 0x5f1   : > { %v12530_v49 = vadd.f32 %v9129_v2, %v12416_v60  ;;  %v9131_v43 = vadd.f32 %v9084_v7, %v12393_v62  ;;  %v7255_v15 = vpop.f32.mrb[11].mxu1  ;;  %v9835_v56 = vpop.eup %9834  ;;  %v7466_v5 = vadd.f32 1.0, %v9833_v57  ;;  %9854 = vrcp.f32 %v7459_v0 }
 0x5f2   : > { %v12535_v22 = vadd.f32 %v9130_v39, %v12416_v60  ;;  %v9132_v8 = vadd.f32 %v7255_v15, %v12395_v1  ;;  %v9837_v19 = vpop.eup %9836  ;;  %v12543_v62 = vadd.f32 %v12456_v50, %v12416_v60  ;;  %v7468_v50 = vadd.f32 1.0, %v9835_v56 }
 0x5f3   : > { %v12539_v42 = vadd.f32 %v9131_v43, %v12416_v60  ;;  %v9839_v54 = vpop.eup %9838  ;;  %9856 = vrcp.f32 %v7466_v5  ;;  %v7467_v1 = vadd.f32 1.0, %v9837_v19 }
 0x5f4   : > { %v12546_v23 = vadd.f32 %v9132_v8, %v12416_v60  ;;  %7583 = vxpose.xlu1.b32.cont [6/16] %v7551_v24, 128  ;;  %v9841_v27 = vpop.eup %9840  ;;  %9858 = vpow2.f32 %v8281_v47  ;;  %v8275_v36 = vmul.f32 -1.442695, %v12543_v62  ;;  %v7461_v35 = vadd.f32 1.0, %v9839_v54 }
 0x5f5   : > { %v9843_v3 = vpop.eup %9842  ;;  %9860 = vrcp.f32 %v7467_v1  ;;  %v7553_v40 = vmul.f32 %v9841_v27, %v12447_v9 }
 0x5f6   : > { %v9087_v4 = vpop.f32.mrb[12].mxu1  ;;  %v9845_v14 = vpop.eup %9844  ;;  %9862 = vrcp.f32 %v7460_v12  ;;  %v8285_v5 = vmul.f32 -1.442695, %v12546_v23  ;;  %v7464_v1 = vadd.f32 1.0, %v9843_v3 }
 0x5f7   : > { %v9133_v38 = vadd.f32 %v9087_v4, %v12397_v29  ;;  %v7268_v58 = vpop.f32.mrb[13].mxu1  ;;  %v9847_v41 = vpop.eup %9846  ;;  %9864 = vpow2.f32 %v8282_v11  ;;  %v7469_v48 = vadd.f32 1.0, %v9845_v14 }
 0x5f8   : > { %v9134_v10 = vadd.f32 %v7268_v58, %v12399_v28  ;;  %v9088_v21 = vpop.f32.mrb[14].mxu1  ;;  %7584 = vxpose.xlu1.b32.cont [7/16] %v7552_v30, 128  ;;  %v9849_v29 = vpop.eup %9848  ;;  %9866 = vrcp.f32 %v7468_v50  ;;  %v7462_v39 = vadd.f32 1.0, %v9847_v41  ;;  %v8286_v30 = vmul.f32 -1.442695, %v12530_v49 }
 0x5f9   : > { %v12558_v31 = vadd.f32 %v9133_v38, %v12416_v60  ;;  %v9135_v63 = vadd.f32 %v9088_v21, %v12401_v6  ;;  %v7271_v17 = vpop.f32.mrb[15].mxu1  ;;  %v9851_v55 = vpop.eup %9850  ;;  %9868 = vpow2.f32 %v8275_v36  ;;  %v7554_v51 = vmul.f32 %v9849_v29, %v12451_v52 }
 0x5fa   : > { %v12563_v2 = vadd.f32 %v9134_v10, %v12416_v60  ;;  %v9136_v28 = vadd.f32 %v7271_v17, %v12403_v53  ;;  %v9853_v6 = vpop.eup %9852  ;;  %9870 = vrcp.f32 %v7461_v35  ;;  %v8284_v53 = vmul.f32 -1.442695, %v12535_v22 }
 0x5fb   : > { %v12567_v9 = vadd.f32 %v9135_v63, %v12416_v60  ;;  %v9855_v7 = vpop.eup %9854  ;;  %9872 = vpow2.f32 %v8283_v34  ;;  %v7470_v43 = vadd.f32 1.0, %v9851_v55  ;;  %v8287_v58 = vmul.f32 -1.442695, %v12539_v42 }
 0x5fc   : > { %v12570_v0 = vadd.f32 %v9136_v28, %v12416_v60  ;;  %7585 = vxpose.xlu1.b32.cont [8/16] %v7553_v40, 128  ;;  %9874 = vrcp.f32 %v7469_v48  ;;  %v7463_v60 = vadd.f32 1.0, %v9853_v6  ;;  %v7555_v56 = vmul.f32 %v9855_v7, %v12463_v45 }
 0x5fd   : > { %v9857_v24 = vpop.eup %9856  ;;  %9876 = vrcp.f32 %v7462_v39  ;;  %v8288_v41 = vmul.f32 -1.442695, %v12563_v2 }
 0x5fe   : > { %v9859_v15 = vpop.eup %9858  ;;  %v7562_v57 = vmul.f32 %v9857_v24, %v12479_v13  ;;  %9878 = vpow2.f32 %v8284_v53 }
 0x5ff   : > { %v9861_v47 = vpop.eup %9860  ;;  %9880 = vrcp.f32 %v7470_v43  ;;  %v7471_v52 = vadd.f32 1.0, %v9859_v15 }
 0x600   : > { %7586 = vxpose.xlu1.b32.cont [9/16] %v7554_v51, 128  ;;  %v9863_v8 = vpop.eup %9862  ;;  %7610 = vxpose.xlu0.b32.start [1/16] %v7562_v57, 128  ;;  %v7563_v12 = vmul.f32 %v9861_v47, %v12487_v18  ;;  %9882 = vrcp.f32 %v7463_v60 }
 0x601   : > { %v9865_v19 = vpop.eup %9864  ;;  %v7556_v27 = vmul.f32 %v9863_v8, %v12467_v59  ;;  %9884 = vpow2.f32 %v8285_v5 }
 0x602   : > { %v9867_v54 = vpop.eup %9866  ;;  %v7472_v11 = vadd.f32 1.0, %v9865_v19  ;;  %9886 = vrcp.f32 %v7471_v52 }
 0x603   : > { %v9869_v13 = vpop.eup %9868  ;;  %v7564_v50 = vmul.f32 %v9867_v54, %v12473_v44  ;;  %9888 = vrcp.f32 %v7464_v1 }
 0x604   : > { %7587 = vxpose.xlu1.b32.cont [10/16] %v7555_v56, 128  ;;  %7611 = vxpose.xlu0.b32.cont [2/16] %v7563_v12, 128  ;;  %v9871_v45 = vpop.eup %9870  ;;  %v7465_v18 = vadd.f32 1.0, %v9869_v13  ;;  %9890 = vpow2.f32 %v8286_v30 }
 0x605   : > { %v9873_v4 = vpop.eup %9872  ;;  %v7557_v3 = vmul.f32 %v9871_v45, %v12483_v61  ;;  %9892 = vrcp.f32 %v7472_v11 }
 0x606   : > { %v9875_v38 = vpop.eup %9874  ;;  %v7473_v14 = vadd.f32 1.0, %v9873_v4  ;;  %9894 = vrcp.f32 %v7465_v18 }
 0x607   : > { %v9877_v59 = vpop.eup %9876  ;;  %v7565_v10 = vmul.f32 %v9875_v38, %v12495_v25  ;;  %9896 = vpow2.f32 %v8287_v58  ;;  %v8289_v25 = vmul.f32 -1.442695, %v12570_v0 }
 0x608   : > { %7588 = vxpose.xlu1.b32.cont [11/16] %v7556_v27, 128  ;;  %7612 = vxpose.xlu0.b32.cont [3/16] %v7564_v50, 128  ;;  %v9879_v36 = vpop.eup %9878  ;;  %v7558_v44 = vmul.f32 %v9877_v59, %v12500_v16  ;;  %9898 = vrcp.f32 %v7473_v14 }
 0x609   : > { %v9881_v21 = vpop.eup %9880  ;;  %v7474_v40 = vadd.f32 1.0, %v9879_v36  ;;  %9900 = vpow2.f32 %v8288_v41 }
 0x60a   : > { %v9883_v61 = vpop.eup %9882  ;;  %v7566_v63 = vmul.f32 %v9881_v21, %v12509_v46  ;;  %v8290_v46 = vmul.f32 -1.442695, %v12558_v31 }
 0x60b   : > { %v9885_v35 = vpop.eup %9884  ;;  %v7559_v29 = vmul.f32 %v9883_v61, %v12515_v20  ;;  %9902 = vrcp.f32 %v7474_v40 }
 0x60c   : > { %7589 = vxpose.xlu1.b32.cont [12/16] %v7557_v3, 128  ;;  %7613 = vxpose.xlu0.b32.cont [4/16] %v7565_v10, 128  ;;  %v9887_v17 = vpop.eup %9886  ;;  %v7475_v16 = vadd.f32 1.0, %v9885_v35  ;;  %9904 = vpow2.f32 %v8289_v25 }
 0x60d   : > { %v9889_v34 = vpop.eup %9888  ;;  %v7567_v48 = vmul.f32 %v9887_v17, %v12520_v26  ;;  %v8291_v26 = vmul.f32 -1.442695, %v12567_v9 }
 0x60e   : > { %v9891_v28 = vpop.eup %9890  ;;  %v7560_v6 = vmul.f32 %v9889_v34, %v12490_v37  ;;  %9906 = vrcp.f32 %v7475_v16 }
 0x60f   : > { %v9893_v55 = vpop.eup %9892  ;;  %v7476_v20 = vadd.f32 1.0, %v9891_v28  ;;  %9908 = vpow2.f32 %v8290_v46 }
 0x610   : > { %7590 = vxpose.xlu1.b32.cont [13/16] %v7558_v44, 128  ;;  %7614 = vxpose.xlu0.b32.cont [5/16] %v7566_v63, 128  ;;  %v9895_v39 = vpop.eup %9894  ;;  %v7568_v51 = vmul.f32 %v9893_v55, %v12527_v32 }
 0x611   : > { %v9897_v7 = vpop.eup %9896  ;;  %v7561_v24 = vmul.f32 %v9895_v39, %v12543_v62  ;;  %9910 = vrcp.f32 %v7476_v20 }
 0x612   : > { %v9899_v53 = vpop.eup %9898  ;;  %v7477_v37 = vadd.f32 1.0, %v9897_v7  ;;  %9912 = vpow2.f32 %v8291_v26 }
 0x613   : > { %v9901_v43 = vpop.eup %9900  ;;  %v7569_v15 = vmul.f32 %v9899_v53, %v12551_v33 }
 0x614   : > { %7591 = vxpose.xlu1.b32.cont [14/16] %v7559_v29, 128  ;;  %7615 = vxpose.xlu0.b32.cont [6/16] %v7567_v48, 128  ;;  %9914 = vrcp.f32 %v7477_v37  ;;  %v7478_v47 = vadd.f32 1.0, %v9901_v43 }
 0x615   : > { %v9903_v57 = vpop.eup %9902 }
 0x616   : > { %v9905_v32 = vpop.eup %9904  ;;  %v7570_v60 = vmul.f32 %v9903_v57, %v12535_v22  ;;  %9916 = vrcp.f32 %v7478_v47 }
 0x617   : > { %v7479_v62 = vadd.f32 1.0, %v9905_v32 }
 0x618   : > { %7592 = vxpose.xlu1.b32.cont [15/16] %v7560_v6, 128  ;;  %7616 = vxpose.xlu0.b32.cont [7/16] %v7568_v51, 128  ;;  %v9907_v8 = vpop.eup %9906 }
 0x619   : > { %v9909_v56 = vpop.eup %9908  ;;  %v7571_v5 = vmul.f32 %v9907_v8, %v12546_v23  ;;  %9918 = vrcp.f32 %v7479_v62 }
 0x61a   : > { %v7480_v19 = vadd.f32 1.0, %v9909_v56 }
 0x61b   : > { %v9911_v52 = vpop.eup %9910 }
 0x61c   : > { %7593 = vxpose.xlu1.b32.end [16/16] %v7561_v24, 128  ;;  %7617 = vxpose.xlu0.b32.cont [8/16] %v7569_v15, 128  ;;  %v9913_v33 = vpop.eup %9912  ;;  %v7572_v12 = vmul.f32 %v9911_v52, %v12530_v49  ;;  %9920 = vrcp.f32 %v7480_v19 }
 0x61d   : > { %v7481_v1 = vadd.f32 1.0, %v9913_v33 }
 0x61e   : > { %v9915_v54 = vpop.eup %9914 }
 0x61f   : > { %v7573_v22 = vmul.f32 %v9915_v54, %v12539_v42  ;;  %9922 = vrcp.f32 %v7481_v1 }
 0x620   : > { %7618 = vxpose.xlu0.b32.cont [9/16] %v7570_v60, 128  ;;  %v9917_v13 = vpop.eup %9916 }
 0x621   : > { %v7574_v27 = vmul.f32 %v9917_v13, %v12563_v2 }
 0x623   : > { %v9919_v23 = vpop.eup %9918 }
 0x624   : > { %7619 = vxpose.xlu0.b32.cont [10/16] %v7571_v5, 128  ;;  %v7575_v30 = vmul.f32 %v9919_v23, %v12570_v0 }
 0x626   : > { %v9921_v45 = vpop.eup %9920 }
 0x627   : > { %v7576_v49 = vmul.f32 %v9921_v45, %v12558_v31 }
 0x628   : > { %7620 = vxpose.xlu0.b32.cont [11/16] %v7572_v12, 128 }
 0x629   : > { %v9923_v11 = vpop.eup %9922 }
 0x62a   : > { %v7577_v4 = vmul.f32 %v9923_v11, %v12567_v9 }
 0x62c   : > { %7621 = vxpose.xlu0.b32.cont [12/16] %v7573_v22, 128 }
 0x630   : > { %7622 = vxpose.xlu0.b32.cont [13/16] %v7574_v27, 128 }
 0x634   : > { %7623 = vxpose.xlu0.b32.cont [14/16] %v7575_v30, 128 }
 0x638   : > { %7624 = vxpose.xlu0.b32.cont [15/16] %v7576_v49, 128 }
 0x63c   : > { %7625 = vxpose.xlu0.b32.end [16/16] %v7577_v4, 128 }
 0x660   : > { %v7594_v42 = vpop.trf.xlu1 }
 0x661   : > { %7642 = vst [vmem:[%s12608_s19] sm:$0xff] %v7594_v42 }
 0x664   : > { %v7595_v31 = vpop.trf.xlu1 }
 0x665   : > { %7644 = vst [vmem:[%s12608_s19 + $0x10] sm:$0xff] %v7595_v31 }
 0x668   : > { %v7596_v2 = vpop.trf.xlu1 }
 0x669   : > { %7646 = vst [vmem:[%s12608_s19 + $0x20] sm:$0xff] %v7596_v2 }
 0x66c   : > { %v7597_v9 = vpop.trf.xlu1 }
 0x66d   : > { %7648 = vst [vmem:[%s12608_s19 + $0x30] sm:$0xff] %v7597_v9 }
 0x670   : > { %v7598_v0 = vpop.trf.xlu1 }
 0x671   : > { %7650 = vst [vmem:[%s12608_s19 + $0x40] sm:$0xff] %v7598_v0 }
 0x674   : > { %v7599_v50 = vpop.trf.xlu1 }
 0x675   : > { %7652 = vst [vmem:[%s12608_s19 + $0x50] sm:$0xff] %v7599_v50 }
 0x678   : > { %v7600_v38 = vpop.trf.xlu1 }
 0x679   : > { %7654 = vst [vmem:[%s12608_s19 + $0x60] sm:$0xff] %v7600_v38 }
 0x67c   : > { %v7601_v18 = vpop.trf.xlu1 }
 0x67d   : > { %7656 = vst [vmem:[%s12608_s19 + $0x70] sm:$0xff] %v7601_v18 }
 0x680   : > { %v7602_v3 = vpop.trf.xlu1  ;;  %v7626_v58 = vpop.trf.xlu0 }
 0x681   : > { %7658 = vst [vmem:[%s12608_s19 + $0x80] sm:$0xff] %v7602_v3  ;;  %7643 = vst [vmem:[%s12608_s19 + $0x8] sm:$0xff] %v7626_v58 }
 0x684   : > { %v7603_v59 = vpop.trf.xlu1  ;;  %v7627_v14 = vpop.trf.xlu0 }
 0x685   : > { %7660 = vst [vmem:[%s12608_s19 + $0x90] sm:$0xff] %v7603_v59  ;;  %7645 = vst [vmem:[%s12608_s19 + $0x18] sm:$0xff] %v7627_v14 }
 0x688   : > { %v7604_v36 = vpop.trf.xlu1  ;;  %v7628_v10 = vpop.trf.xlu0 }
 0x689   : > { %7662 = vst [vmem:[%s12608_s19 + $0xa0] sm:$0xff] %v7604_v36  ;;  %7647 = vst [vmem:[%s12608_s19 + $0x28] sm:$0xff] %v7628_v10 }
 0x68c   : > { %v7605_v21 = vpop.trf.xlu1  ;;  %v7629_v44 = vpop.trf.xlu0 }
 0x68d   : > { %7664 = vst [vmem:[%s12608_s19 + $0xb0] sm:$0xff] %v7605_v21  ;;  %7649 = vst [vmem:[%s12608_s19 + $0x38] sm:$0xff] %v7629_v44 }
 0x690   : > { %v7606_v41 = vpop.trf.xlu1  ;;  %v7630_v61 = vpop.trf.xlu0 }
 0x691   : > { %7666 = vst [vmem:[%s12608_s19 + $0xc0] sm:$0xff] %v7606_v41  ;;  %7651 = vst [vmem:[%s12608_s19 + $0x48] sm:$0xff] %v7630_v61 }
 0x694   : > { %v7607_v40 = vpop.trf.xlu1  ;;  %v7631_v35 = vpop.trf.xlu0 }
 0x695   : > { %7668 = vst [vmem:[%s12608_s19 + $0xd0] sm:$0xff] %v7607_v40  ;;  %7653 = vst [vmem:[%s12608_s19 + $0x58] sm:$0xff] %v7631_v35 }
 0x698   : > { %v7608_v63 = vpop.trf.xlu1  ;;  %v7632_v17 = vpop.trf.xlu0 }
 0x699   : > { %7670 = vst [vmem:[%s12608_s19 + $0xe0] sm:$0xff] %v7608_v63  ;;  %7655 = vst [vmem:[%s12608_s19 + $0x68] sm:$0xff] %v7632_v17 }
 0x69c   : > { %v7609_v29 = vpop.trf.xlu1  ;;  %v7633_v25 = vpop.trf.xlu0 }
 0x69d   : > { %7672 = vst [vmem:[%s12608_s19 + $0xf0] sm:$0xff] %v7609_v29  ;;  %7657 = vst [vmem:[%s12608_s19 + $0x78] sm:$0xff] %v7633_v25 }
 0x6a0   : > { %v7634_v34 = vpop.trf.xlu0 }
 0x6a1   : > { %7659 = vst [vmem:[%s12608_s19 + $0x88] sm:$0xff] %v7634_v34 }
 0x6a4   : > { %v7635_v16 = vpop.trf.xlu0 }
 0x6a5   : > { %7661 = vst [vmem:[%s12608_s19 + $0x98] sm:$0xff] %v7635_v16 }
 0x6a8   : > { %v7636_v28 = vpop.trf.xlu0 }
 0x6a9   : > { %7663 = vst [vmem:[%s12608_s19 + $0xa8] sm:$0xff] %v7636_v28 }
 0x6ac   : > { %v7637_v48 = vpop.trf.xlu0 }
 0x6ad   : > { %7665 = vst [vmem:[%s12608_s19 + $0xb8] sm:$0xff] %v7637_v48 }
 0x6b0   : > { %v7638_v55 = vpop.trf.xlu0 }
 0x6b1   : > { %7667 = vst [vmem:[%s12608_s19 + $0xc8] sm:$0xff] %v7638_v55 }
 0x6b4   : > { %v7639_v6 = vpop.trf.xlu0 }
 0x6b5   : > { %7669 = vst [vmem:[%s12608_s19 + $0xd8] sm:$0xff] %v7639_v6 }
 0x6b8   : > { %v7640_v46 = vpop.trf.xlu0 }
 0x6b9   : > { %7671 = vst [vmem:[%s12608_s19 + $0xe8] sm:$0xff] %v7640_v46 }
 0x6bc   : > { %v7641_v39 = vpop.trf.xlu0 }
 0x6bd   : > { %7673 = vst [vmem:[%s12608_s19 + $0xf8] sm:$0xff] %v7641_v39 }
 0x6be PF: > { %s21_s11 = sadd.s32 1, %s9991_s11  }
 0x6bf   : > { %p18_p4 = scmp.ge.s32.totalorder %s21_s11, 4  }
 0x6c1   :  { %20 = sbr.rel (!%p18_p4) target bundleno = 3 (0x3), region = 99 }

</bundles_post_ra>
